<compile_context>
chip_gen: v7x
topology: tpu7x:2x2x1
jax: 0.10.0
libtpu: 0.0.40
codegen_flags: <defaults>
</compile_context>

<pallas_src>
import functools

import jax
import jax.numpy as jnp
from jax import lax
from jax.experimental import pallas as pl
from jax.experimental.pallas import tpu as pltpu

_LANE = 128
_EPS = 1e-5


def _round_up(x, m):
    return pl.cdiv(x, m) * m


def _vmem_budget_bytes():
    """Generation-aware VMEM budget (~40 MiB on v7x, ~80 MiB on v5e/v6e)."""
    cap = 64 << 20
    try:
        info = pltpu.get_tpu_info()
        cap = int(getattr(info, "vmem_capacity_bytes", cap) or cap)
    except Exception:
        pass
    return int(min(int(cap * 0.625), 96 << 20))


def _vmem_limit(footprint, budget):
    return int(min(max(int(footprint) + (8 << 20), 16 << 20), budget))


def _conv_footprint(th, w, pad, c_in, cp, kkc):
    rows = th * w
    return (2 * (th + 2 * pad) * (w + 2 * pad) * c_in * 2   # haloed input tile (bf16, 2x buf)
            + 2 * kkc * cp * 2                              # folded weights (bf16, 2x)
            + 2 * rows * cp * 2                             # conv-out tile (bf16, 2x)
            + 2 * 2 * cp * 4                                # partial stats tile (f32, 2x)
            + rows * _round_up(kkc, _LANE) * 2              # LHS gather scratch (bf16)
            + 2 * rows * cp * 4)                            # f32 accumulator / temporaries


def _bn_footprint(tr, cp, c_out):
    return (2 * tr * cp * 2          # conv-out tile in (bf16, 2x)
            + 2 * c_out * tr * 4     # output tile (f32, 2x)
            + 2 * tr * cp * 4        # upcast + transpose temporaries
            + 8 * cp * 4)


def _pick_conv_row_tile(h, w, pad, c_in, cp, kkc, budget, max_rows):
    """Largest row tile th | h (th*w rows) that stays under the VMEM budget."""
    target = 1024 if max_rows is None else max_rows

    def fits(th):
        return _conv_footprint(th, w, pad, c_in, cp, kkc) + (2 << 20) <= budget

    cands = [t for t in range(1, h + 1)
             if h % t == 0 and (t == h or (t * w) % 8 == 0)]
    good = [t for t in cands if t * w <= target and fits(t)]
    if good:
        return max(good)
    good = [t for t in cands if fits(t)]
    if good:
        return min(good)
    return min(cands)


def _pick_bn_row_tile(hw, cp, c_out, budget):
    cands = [t for t in range(_LANE, hw + 1, _LANE) if hw % t == 0]
    if not cands:
        return hw                       # tiny spatial extent: one full-dim tile

    def fits(tr):
        return _bn_footprint(tr, cp, c_out) + (2 << 20) <= budget

    good = [t for t in cands if t <= 2048 and fits(t)]
    if good:
        return max(good)
    good = [t for t in cands if fits(t)]
    return min(good) if good else min(cands)


# ---------------------------------------------------------------------------
# Kernel 1: tap-folded conv (one MXU matmul, contraction K*K*C_in) for a haloed
#           row tile + per-tile BN partial statistics (sum / sum-of-squares).
# ---------------------------------------------------------------------------
def _conv_stats_kernel(x_ref, w_ref, y_ref, stats_ref, lhs_ref, *, k, th, w, c_in):
    # x_ref:    (1, 1, th+2p, w+2p, c_in) bf16   haloed input row tile
    # w_ref:    (k*k*c_in, cp)            bf16   tap-folded weights (resident)
    # y_ref:    (1, th*w, cp)             bf16   conv output tile
    # stats_ref:(1, 1, 2, cp)             f32    per-tile [sum; sum-of-squares]
    # lhs_ref:  (th*w, k*k*c_in)          bf16   scratch: gathered im2col tile
    rows = th * w

    # Gather the K*K taps into a (rows, K*K*C_in) LHS so a single matmul carries a
    # contraction of K*K*C_in instead of C_in (small-C_in regime).
    # TODO(synk): for c_in >= 128 skip this gather and use K*K shifted matmuls with a
    # register accumulator (the contraction already fills the MXU there).
    for dy in range(k):
        for dx in range(k):
            tap = x_ref[0, 0, dy:dy + th, dx:dx + w, :]          # (th, w, c_in)
            col = (dy * k + dx) * c_in
            lhs_ref[:, col:col + c_in] = tap.reshape(rows, c_in)

    acc = jnp.dot(lhs_ref[...], w_ref[...],
                  preferred_element_type=jnp.float32)             # (rows, cp) f32
    yb = acc.astype(y_ref.dtype)
    y_ref[0, :, :] = yb                                           # single store, no RMW

    # BN partial statistics from the same (bf16-rounded) values kernel 2 will read.
    y32 = yb.astype(jnp.float32)
    stats_ref[0, 0, :, :] = jnp.concatenate(
        [jnp.sum(y32, axis=0, keepdims=True),
         jnp.sum(y32 * y32, axis=0, keepdims=True)], axis=0)


# ---------------------------------------------------------------------------
# Kernel 2: normalize (precomputed scale/shift) + ReLU + t_emb add, writing a
#           channel-major (C_out, rows) tile (in-kernel XLU transpose).
# ---------------------------------------------------------------------------
def _bn_relu_add_t_kernel(y_ref, scale_ref, shift_ref, tproj_ref, o_ref, *, c_out):
    # y_ref: (1, tr, cp) bf16   scale/shift: (1, cp) f32   tproj: (1, 1, cp) f32
    # o_ref: (1, c_out, tr) f32
    y = y_ref[0].astype(jnp.float32)                               # (tr, cp)
    z = jnp.maximum(y * scale_ref[...] + shift_ref[...], 0.0) + tproj_ref[0]
    zt = z.T                                                       # XLU: (cp, tr)
    o_ref[0, :, :] = zt[:c_out, :]


# ---------------------------------------------------------------------------
# Full forward.
# ---------------------------------------------------------------------------
@functools.partial(jax.jit, static_argnames=("kernel_size", "max_conv_tile_rows"))
def conv_block_forward(x_nchw, t_emb, params, kernel_size=3, max_conv_tile_rows=None):
    k = kernel_size
    pad = k // 2
    n, c_in, h, w = x_nchw.shape
    c_out = params["w_hwio"].shape[-1]
    hw = h * w
    cp = _round_up(c_out, _LANE)           # lane-dense padded channel axis
    wp = w + 2 * pad
    kkc = k * k * c_in
    budget = _vmem_budget_bytes()

    # ---- cheap XLA glue on the (small) input / parameters ----------------------
    x = jnp.transpose(x_nchw, (0, 2, 3, 1)).astype(jnp.bfloat16)        # NHWC, bf16
    x_pad = jnp.pad(x, ((0, 0), (pad, pad), (pad, pad), (0, 0)))

    th = _pick_conv_row_tile(h, w, pad, c_in, cp, kkc, budget, max_conv_tile_rows)
    gh = h // th
    rows = th * w
    # Haloed row tiles (only duplicates 2*pad rows of the small C_in tensor).
    x_tiles = jnp.stack(
        [x_pad[:, j * th:j * th + th + 2 * pad] for j in range(gh)], axis=1)

    # Tap-folded weights (K, K, C_in, C_out) -> (K*K*C_in, cp); conv bias dropped
    # (exactly cancelled by train-mode BN mean subtraction).
    w_p = jnp.pad(params["w_hwio"], ((0, 0), (0, 0), (0, 0), (0, cp - c_out)))
    w_p = w_p.reshape(kkc, cp).astype(jnp.bfloat16)

    conv_out, stats_part = pl.pallas_call(
        functools.partial(_conv_stats_kernel, k=k, th=th, w=w, c_in=c_in),
        out_shape=(jax.ShapeDtypeStruct((n, hw, cp), jnp.bfloat16),
                   jax.ShapeDtypeStruct((n, gh, 2, cp), jnp.float32)),
        grid=(n, gh),
        in_specs=[
            pl.BlockSpec((1, 1, th + 2 * pad, wp, c_in),
                         lambda i, j: (i, j, 0, 0, 0)),
            pl.BlockSpec((kkc, cp), lambda i, j: (0, 0)),
        ],
        out_specs=(
            pl.BlockSpec((1, rows, cp), lambda i, j: (i, j, 0)),
            pl.BlockSpec((1, 1, 2, cp), lambda i, j: (i, j, 0, 0)),
        ),
        scratch_shapes=[pltpu.VMEM((rows, kkc), jnp.bfloat16)],
        compiler_params=pltpu.CompilerParams(
            dimension_semantics=("parallel", "parallel"),
            vmem_limit_bytes=_vmem_limit(
                _conv_footprint(th, w, pad, c_in, cp, kkc), budget)),
    )(x_tiles, w_p)

    # ---- batch statistics -> per-channel scale / shift (tiny (2, cp) XLA op) ----
    stats = jnp.sum(stats_part, axis=(0, 1))                    # (2, cp)
    cnt = float(n * hw)
    mean = stats[0] / cnt
    var = jnp.maximum(stats[1] / cnt - mean * mean, 0.0)        # guard cancellation
    gamma = jnp.pad(params["gamma"].reshape(-1), (0, cp - c_out))
    beta = jnp.pad(params["beta"].reshape(-1), (0, cp - c_out))
    scale_v = gamma * lax.rsqrt(var + _EPS)
    shift_v = beta - mean * scale_v
    scale = scale_v.reshape(1, cp).astype(jnp.float32)
    shift = shift_v.reshape(1, cp).astype(jnp.float32)

    # Time projection hoisted to XLA: tiny (N, E) x (E, C_out) matmul.
    tproj = (jnp.dot(t_emb, params["wt"], precision=lax.Precision.HIGHEST)
             + params["bt"].reshape(1, -1)).astype(jnp.float32)
    tproj = jnp.pad(tproj, ((0, 0), (0, cp - c_out))).reshape(n, 1, cp)

    # ---- kernel 2: normalize + ReLU + t_emb add, channel-major output ----------
    tr = _pick_bn_row_tile(hw, cp, c_out, budget)
    out = pl.pallas_call(
        functools.partial(_bn_relu_add_t_kernel, c_out=c_out),
        out_shape=jax.ShapeDtypeStruct((n, c_out, hw), jnp.float32),
        grid=(n, hw // tr),
        in_specs=[
            pl.BlockSpec((1, tr, cp), lambda i, j: (i, j, 0)),
            pl.BlockSpec((1, cp), lambda i, j: (0, 0)),
            pl.BlockSpec((1, cp), lambda i, j: (0, 0)),
            pl.BlockSpec((1, 1, cp), lambda i, j: (i, 0, 0)),
        ],
        out_specs=pl.BlockSpec((1, c_out, tr), lambda i, j: (i, 0, j)),
        compiler_params=pltpu.CompilerParams(
            dimension_semantics=("parallel", "parallel"),
            vmem_limit_bytes=_vmem_limit(_bn_footprint(tr, cp, c_out), budget)),
    )(conv_out, scale, shift, tproj)

    # NCHW view: free reshape of the contiguous channel-major output.
    return out.reshape(n, c_out, h, w)


# ---------------------------------------------------------------------------
# Pure-JAX reference (PyTorch module semantics). With match_kernel_precision=True
# it mirrors the kernel's numeric path: bf16 conv inputs/weights (f32 accumulate),
# bias omitted (cancelled by train-mode BN), bf16 storage of the conv intermediate.
# ---------------------------------------------------------------------------
def ref_forward(x_nchw, t_emb, params, match_kernel_precision=False):
    x = jnp.transpose(x_nchw, (0, 2, 3, 1))
    wc = params["w_hwio"]
    if match_kernel_precision:
        x = x.astype(jnp.bfloat16).astype(jnp.float32)
        wc = wc.astype(jnp.bfloat16).astype(jnp.float32)
        bias = jnp.zeros((wc.shape[-1],), jnp.float32)
    else:
        bias = params["b_conv"]
    y = lax.conv_general_dilated(
        x, wc, (1, 1), "SAME",
        dimension_numbers=("NHWC", "HWIO", "NHWC"),
        precision=lax.Precision.HIGHEST,
    ) + bias.reshape(1, 1, 1, -1)
    if match_kernel_precision:
        y = y.astype(jnp.bfloat16).astype(jnp.float32)
    mean = y.mean(axis=(0, 1, 2))
    var = ((y - mean) ** 2).mean(axis=(0, 1, 2))
    y = (y - mean) * lax.rsqrt(var + _EPS)
    y = y * params["gamma"].reshape(-1) + params["beta"].reshape(-1)
    y = jnp.maximum(y, 0.0)
    tproj = jnp.dot(t_emb, params["wt"],
                    precision=lax.Precision.HIGHEST) + params["bt"].reshape(-1)
    y = y + tproj[:, None, None, :]
    return jnp.transpose(y, (0, 3, 1, 2))


# ---------------------------------------------------------------------------
if __name__ == "__main__":
    N, C_IN, C_OUT, H, W, K, E = 2, 4, 8, 16, 16, 3, 32

    key = jax.random.PRNGKey(0)
    ks = jax.random.split(key, 8)

    fan_in_conv = C_IN * K * K
    params = {
        "w_hwio": jax.random.uniform(ks[0], (K, K, C_IN, C_OUT), jnp.float32,
                                     -1.0, 1.0) / jnp.sqrt(fan_in_conv),
        "b_conv": jax.random.uniform(ks[1], (C_OUT,), jnp.float32,
                                     -1.0, 1.0) / jnp.sqrt(fan_in_conv),
        "gamma": 1.0 + 0.1 * jax.random.normal(ks[2], (C_OUT,), jnp.float32),
        "beta": 0.1 * jax.random.normal(ks[3], (C_OUT,), jnp.float32),
        "wt": jax.random.uniform(ks[4], (E, C_OUT), jnp.float32,
                                 -1.0, 1.0) / jnp.sqrt(E),
        "bt": jax.random.uniform(ks[5], (C_OUT,), jnp.float32,
                                 -1.0, 1.0) / jnp.sqrt(E),
    }

    x = jax.random.normal(ks[6], (N, C_IN, H, W), jnp.float32)
    t_emb = jax.random.normal(ks[7], (N, E), jnp.float32)

    out = jax.block_until_ready(conv_block_forward(x, t_emb, params, kernel_size=K))
    assert out.shape == (N, C_OUT, H, W)

    # Check against a precision-matched reference (bf16 conv inputs + bf16 intermediate).
    ref_q = ref_forward(x, t_emb, params, match_kernel_precision=True)
    err_q = float(jnp.max(jnp.abs(out - ref_q)))
    assert jnp.allclose(out, ref_q, atol=1e-2, rtol=1e-2), f"matched-ref max err {err_q}"

    # Looser check against full-f32 module semantics (difference = bf16 quantization).
    ref_f = ref_forward(x, t_emb, params, match_kernel_precision=False)
    err_f = float(jnp.max(jnp.abs(out - ref_f)))
    assert jnp.allclose(out, ref_f, atol=5e-2, rtol=5e-2), f"f32 ref max err {err_f}"

    # Exercise the spatially tiled (haloed row-tile, multi-tile partial-stats) conv path.
    out_tiled = jax.block_until_ready(
        conv_block_forward(x, t_emb, params, kernel_size=K, max_conv_tile_rows=128))
    err_t = float(jnp.max(jnp.abs(out_tiled - ref_q)))
    assert jnp.allclose(out_tiled, ref_q, atol=1e-2, rtol=1e-2), f"tiled max err {err_t}"
    assert jnp.allclose(out_tiled, out, atol=1e-4, rtol=1e-4), "tiled vs untiled mismatch"

    print("KERNEL_OK")
</pallas_src>

<mosaic_0001>
module attributes {stable_mosaic.version = 11 : i64} {
  func.func @_bn_relu_add_t_kernel(%arg0: i32, %arg1: i32, %arg2: memref<1x256x128xbf16, #tpu.memory_space<vmem>>, %arg3: memref<1x128xf32, #tpu.memory_space<vmem>>, %arg4: memref<1x128xf32, #tpu.memory_space<vmem>>, %arg5: memref<1x1x128xf32, #tpu.memory_space<vmem>>, %arg6: memref<1x8x256xf32, #tpu.memory_space<vmem>>) attributes {dimension_semantics = [#tpu.dimension_semantics<parallel>, #tpu.dimension_semantics<parallel>], iteration_bounds = array<i64: 2, 1>, scalar_prefetch = 0 : i64, scratch_operands = 0 : i64, tpu.core_type = #tpu.core_type<tc>, window_params = [{transform_indices = @transform_0, window_bounds = array<i64: 1, 256, 128>}, {pipeline_mode = #tpu.pipeline_mode<synchronous>, transform_indices = @transform_1, window_bounds = array<i64: 1, 128>}, {pipeline_mode = #tpu.pipeline_mode<synchronous>, transform_indices = @transform_2, window_bounds = array<i64: 1, 128>}, {transform_indices = @transform_3, window_bounds = array<i64: 1, 1, 128>}, {transform_indices = @transform_4, window_bounds = array<i64: 1, 8, 256>}]} {
    %c0 = arith.constant 0 : index
    %c0_0 = arith.constant 0 : index
    %c0_1 = arith.constant 0 : index
    %0 = vector.load %arg2[%c0, %c0_0, %c0_1] : memref<1x256x128xbf16, #tpu.memory_space<vmem>>, vector<1x256x128xbf16>
    %1 = vector.shape_cast %0 : vector<1x256x128xbf16> to vector<256x128xbf16>
    %2 = arith.extf %1 : vector<256x128xbf16> to vector<256x128xf32>
    %c0_2 = arith.constant 0 : index
    %c0_3 = arith.constant 0 : index
    %3 = vector.load %arg3[%c0_2, %c0_3] : memref<1x128xf32, #tpu.memory_space<vmem>>, vector<1x128xf32>
    %4 = vector.broadcast %3 : vector<1x128xf32> to vector<256x128xf32>
    %5 = arith.mulf %2, %4 : vector<256x128xf32>
    %c0_4 = arith.constant 0 : index
    %c0_5 = arith.constant 0 : index
    %6 = vector.load %arg4[%c0_4, %c0_5] : memref<1x128xf32, #tpu.memory_space<vmem>>, vector<1x128xf32>
    %7 = vector.broadcast %6 : vector<1x128xf32> to vector<256x128xf32>
    %8 = arith.addf %5, %7 : vector<256x128xf32>
    %cst = arith.constant 0.000000e+00 : f32
    %9 = vector.broadcast %cst : f32 to vector<256x128xf32>
    %10 = arith.maximumf %8, %9 : vector<256x128xf32>
    %c0_6 = arith.constant 0 : index
    %c0_7 = arith.constant 0 : index
    %c0_8 = arith.constant 0 : index
    %11 = vector.load %arg5[%c0_6, %c0_7, %c0_8] : memref<1x1x128xf32, #tpu.memory_space<vmem>>, vector<1x1x128xf32>
    %12 = vector.shape_cast %11 : vector<1x1x128xf32> to vector<1x128xf32>
    %13 = vector.broadcast %12 : vector<1x128xf32> to vector<256x128xf32>
    %14 = arith.addf %10, %13 : vector<256x128xf32>
    %15 = tpu.transpose %14, [1, 0] : vector<256x128xf32> -> vector<128x256xf32>
    %16 = vector.extract_strided_slice %15 {offsets = [0, 0], sizes = [8, 256], strides = [1, 1]} : vector<128x256xf32> to vector<8x256xf32>
    %c0_9 = arith.constant 0 : index
    %c0_10 = arith.constant 0 : index
    %c0_11 = arith.constant 0 : index
    %17 = vector.load %arg6[%c0_9, %c0_10, %c0_11] : memref<1x8x256xf32, #tpu.memory_space<vmem>>, vector<1x8x256xf32>
    %18 = vector.shape_cast %17 : vector<1x8x256xf32> to vector<8x256xf32>
    %19 = vector.shape_cast %16 : vector<8x256xf32> to vector<1x8x256xf32>
    tpu.vector_store %arg6[%c0_9, %c0_10, %c0_11], %19 {strides = array<i32>} : memref<1x8x256xf32, #tpu.memory_space<vmem>>, vector<1x8x256xf32>,
    return
  }
  func.func @transform_0(%arg0: i32, %arg1: i32) -> (i32, i32, i32) {
    %c0_i32 = arith.constant 0 : i32
    %c0_i32_0 = arith.constant 0 : i32
    return %arg0, %arg1, %c0_i32 : i32, i32, i32
  }
  func.func @transform_1(%arg0: i32, %arg1: i32) -> (i32, i32) {
    %c0_i32 = arith.constant 0 : i32
    %c0_i32_0 = arith.constant 0 : i32
    %c0_i32_1 = arith.constant 0 : i32
    return %c0_i32, %c0_i32_0 : i32, i32
  }
  func.func @transform_2(%arg0: i32, %arg1: i32) -> (i32, i32) {
    %c0_i32 = arith.constant 0 : i32
    %c0_i32_0 = arith.constant 0 : i32
    %c0_i32_1 = arith.constant 0 : i32
    return %c0_i32, %c0_i32_0 : i32, i32
  }
  func.func @transform_3(%arg0: i32, %arg1: i32) -> (i32, i32, i32) {
    %c0_i32 = arith.constant 0 : i32
    %c0_i32_0 = arith.constant 0 : i32
    %c0_i32_1 = arith.constant 0 : i32
    return %arg0, %c0_i32, %c0_i32_0 : i32, i32, i32
  }
  func.func @transform_4(%arg0: i32, %arg1: i32) -> (i32, i32, i32) {
    %c0_i32 = arith.constant 0 : i32
    %c0_i32_0 = arith.constant 0 : i32
    return %arg0, %c0_i32, %arg1 : i32, i32, i32
  }
}

module attributes {stable_mosaic.version = 11 : i64} {
  func.func @_conv_stats_kernel(%arg0: i32, %arg1: i32, %arg2: memref<1x1x18x18x4xbf16, #tpu.memory_space<vmem>>, %arg3: memref<36x128xbf16, #tpu.memory_space<vmem>>, %arg4: memref<1x256x128xbf16, #tpu.memory_space<vmem>>, %arg5: memref<1x1x2x128xf32, #tpu.memory_space<vmem>>, %arg6: memref<256x36xbf16, #tpu.memory_space<vmem>>) attributes {dimension_semantics = [#tpu.dimension_semantics<parallel>, #tpu.dimension_semantics<parallel>], iteration_bounds = array<i64: 2, 1>, scalar_prefetch = 0 : i64, scratch_operands = 1 : i64, tpu.core_type = #tpu.core_type<tc>, window_params = [{transform_indices = @transform_0, window_bounds = array<i64: 1, 1, 18, 18, 4>}, {pipeline_mode = #tpu.pipeline_mode<synchronous>, transform_indices = @transform_1, window_bounds = array<i64: 36, 128>}, {transform_indices = @transform_2, window_bounds = array<i64: 1, 256, 128>}, {transform_indices = @transform_3, window_bounds = array<i64: 1, 1, 2, 128>}]} {
    %c0 = arith.constant 0 : index
    %c0_0 = arith.constant 0 : index
    %c0_1 = arith.constant 0 : index
    %c0_2 = arith.constant 0 : index
    %c0_3 = arith.constant 0 : index
    %0 = vector.load %arg2[%c0, %c0_0, %c0_1, %c0_2, %c0_3] : memref<1x1x18x18x4xbf16, #tpu.memory_space<vmem>>, vector<1x1x16x16x4xbf16>
    %1 = vector.shape_cast %0 : vector<1x1x16x16x4xbf16> to vector<16x16x4xbf16>
    %2 = vector.shape_cast %1 : vector<16x16x4xbf16> to vector<256x4xbf16>
    %c0_4 = arith.constant 0 : index
    %c0_5 = arith.constant 0 : index
    %3 = vector.load %arg6[%c0_4, %c0_5] : memref<256x36xbf16, #tpu.memory_space<vmem>>, vector<256x4xbf16>
    tpu.vector_store %arg6[%c0_4, %c0_5], %2 {strides = array<i32>} : memref<256x36xbf16, #tpu.memory_space<vmem>>, vector<256x4xbf16>,
    %c0_6 = arith.constant 0 : index
    %c0_7 = arith.constant 0 : index
    %c0_8 = arith.constant 0 : index
    %c1 = arith.constant 1 : index
    %c0_9 = arith.constant 0 : index
    %4 = vector.load %arg2[%c0_6, %c0_7, %c0_8, %c1, %c0_9] : memref<1x1x18x18x4xbf16, #tpu.memory_space<vmem>>, vector<1x1x16x16x4xbf16>
    %5 = vector.shape_cast %4 : vector<1x1x16x16x4xbf16> to vector<16x16x4xbf16>
    %6 = vector.shape_cast %5 : vector<16x16x4xbf16> to vector<256x4xbf16>
    %c0_10 = arith.constant 0 : index
    %c4 = arith.constant 4 : index
    %7 = vector.load %arg6[%c0_10, %c4] : memref<256x36xbf16, #tpu.memory_space<vmem>>, vector<256x4xbf16>
    tpu.vector_store %arg6[%c0_10, %c4], %6 {strides = array<i32>} : memref<256x36xbf16, #tpu.memory_space<vmem>>, vector<256x4xbf16>,
    %c0_11 = arith.constant 0 : index
    %c0_12 = arith.constant 0 : index
    %c0_13 = arith.constant 0 : index
    %c2 = arith.constant 2 : index
    %c0_14 = arith.constant 0 : index
    %8 = vector.load %arg2[%c0_11, %c0_12, %c0_13, %c2, %c0_14] : memref<1x1x18x18x4xbf16, #tpu.memory_space<vmem>>, vector<1x1x16x16x4xbf16>
    %9 = vector.shape_cast %8 : vector<1x1x16x16x4xbf16> to vector<16x16x4xbf16>
    %10 = vector.shape_cast %9 : vector<16x16x4xbf16> to vector<256x4xbf16>
    %c0_15 = arith.constant 0 : index
    %c8 = arith.constant 8 : index
    %11 = vector.load %arg6[%c0_15, %c8] : memref<256x36xbf16, #tpu.memory_space<vmem>>, vector<256x4xbf16>
    tpu.vector_store %arg6[%c0_15, %c8], %10 {strides = array<i32>} : memref<256x36xbf16, #tpu.memory_space<vmem>>, vector<256x4xbf16>,
    %c0_16 = arith.constant 0 : index
    %c0_17 = arith.constant 0 : index
    %c1_18 = arith.constant 1 : index
    %c0_19 = arith.constant 0 : index
    %c0_20 = arith.constant 0 : index
    %12 = vector.load %arg2[%c0_16, %c0_17, %c1_18, %c0_19, %c0_20] : memref<1x1x18x18x4xbf16, #tpu.memory_space<vmem>>, vector<1x1x16x16x4xbf16>
    %13 = vector.shape_cast %12 : vector<1x1x16x16x4xbf16> to vector<16x16x4xbf16>
    %14 = vector.shape_cast %13 : vector<16x16x4xbf16> to vector<256x4xbf16>
    %c0_21 = arith.constant 0 : index
    %c12 = arith.constant 12 : index
    %15 = vector.load %arg6[%c0_21, %c12] : memref<256x36xbf16, #tpu.memory_space<vmem>>, vector<256x4xbf16>
    tpu.vector_store %arg6[%c0_21, %c12], %14 {strides = array<i32>} : memref<256x36xbf16, #tpu.memory_space<vmem>>, vector<256x4xbf16>,
    %c0_22 = arith.constant 0 : index
    %c0_23 = arith.constant 0 : index
    %c1_24 = arith.constant 1 : index
    %c1_25 = arith.constant 1 : index
    %c0_26 = arith.constant 0 : index
    %16 = vector.load %arg2[%c0_22, %c0_23, %c1_24, %c1_25, %c0_26] : memref<1x1x18x18x4xbf16, #tpu.memory_space<vmem>>, vector<1x1x16x16x4xbf16>
    %17 = vector.shape_cast %16 : vector<1x1x16x16x4xbf16> to vector<16x16x4xbf16>
    %18 = vector.shape_cast %17 : vector<16x16x4xbf16> to vector<256x4xbf16>
    %c0_27 = arith.constant 0 : index
    %c16 = arith.constant 16 : index
    %19 = vector.load %arg6[%c0_27, %c16] : memref<256x36xbf16, #tpu.memory_space<vmem>>, vector<256x4xbf16>
    tpu.vector_store %arg6[%c0_27, %c16], %18 {strides = array<i32>} : memref<256x36xbf16, #tpu.memory_space<vmem>>, vector<256x4xbf16>,
    %c0_28 = arith.constant 0 : index
    %c0_29 = arith.constant 0 : index
    %c1_30 = arith.constant 1 : index
    %c2_31 = arith.constant 2 : index
    %c0_32 = arith.constant 0 : index
    %20 = vector.load %arg2[%c0_28, %c0_29, %c1_30, %c2_31, %c0_32] : memref<1x1x18x18x4xbf16, #tpu.memory_space<vmem>>, vector<1x1x16x16x4xbf16>
    %21 = vector.shape_cast %20 : vector<1x1x16x16x4xbf16> to vector<16x16x4xbf16>
    %22 = vector.shape_cast %21 : vector<16x16x4xbf16> to vector<256x4xbf16>
    %c0_33 = arith.constant 0 : index
    %c20 = arith.constant 20 : index
    %23 = vector.load %arg6[%c0_33, %c20] : memref<256x36xbf16, #tpu.memory_space<vmem>>, vector<256x4xbf16>
    tpu.vector_store %arg6[%c0_33, %c20], %22 {strides = array<i32>} : memref<256x36xbf16, #tpu.memory_space<vmem>>, vector<256x4xbf16>,
    %c0_34 = arith.constant 0 : index
    %c0_35 = arith.constant 0 : index
    %c2_36 = arith.constant 2 : index
    %c0_37 = arith.constant 0 : index
    %c0_38 = arith.constant 0 : index
    %24 = vector.load %arg2[%c0_34, %c0_35, %c2_36, %c0_37, %c0_38] : memref<1x1x18x18x4xbf16, #tpu.memory_space<vmem>>, vector<1x1x16x16x4xbf16>
    %25 = vector.shape_cast %24 : vector<1x1x16x16x4xbf16> to vector<16x16x4xbf16>
    %26 = vector.shape_cast %25 : vector<16x16x4xbf16> to vector<256x4xbf16>
    %c0_39 = arith.constant 0 : index
    %c24 = arith.constant 24 : index
    %27 = vector.load %arg6[%c0_39, %c24] : memref<256x36xbf16, #tpu.memory_space<vmem>>, vector<256x4xbf16>
    tpu.vector_store %arg6[%c0_39, %c24], %26 {strides = array<i32>} : memref<256x36xbf16, #tpu.memory_space<vmem>>, vector<256x4xbf16>,
    %c0_40 = arith.constant 0 : index
    %c0_41 = arith.constant 0 : index
    %c2_42 = arith.constant 2 : index
    %c1_43 = arith.constant 1 : index
    %c0_44 = arith.constant 0 : index
    %28 = vector.load %arg2[%c0_40, %c0_41, %c2_42, %c1_43, %c0_44] : memref<1x1x18x18x4xbf16, #tpu.memory_space<vmem>>, vector<1x1x16x16x4xbf16>
    %29 = vector.shape_cast %28 : vector<1x1x16x16x4xbf16> to vector<16x16x4xbf16>
    %30 = vector.shape_cast %29 : vector<16x16x4xbf16> to vector<256x4xbf16>
    %c0_45 = arith.constant 0 : index
    %c28 = arith.constant 28 : index
    %31 = vector.load %arg6[%c0_45, %c28] : memref<256x36xbf16, #tpu.memory_space<vmem>>, vector<256x4xbf16>
    tpu.vector_store %arg6[%c0_45, %c28], %30 {strides = array<i32>} : memref<256x36xbf16, #tpu.memory_space<vmem>>, vector<256x4xbf16>,
    %c0_46 = arith.constant 0 : index
    %c0_47 = arith.constant 0 : index
    %c2_48 = arith.constant 2 : index
    %c2_49 = arith.constant 2 : index
    %c0_50 = arith.constant 0 : index
    %32 = vector.load %arg2[%c0_46, %c0_47, %c2_48, %c2_49, %c0_50] : memref<1x1x18x18x4xbf16, #tpu.memory_space<vmem>>, vector<1x1x16x16x4xbf16>
    %33 = vector.shape_cast %32 : vector<1x1x16x16x4xbf16> to vector<16x16x4xbf16>
    %34 = vector.shape_cast %33 : vector<16x16x4xbf16> to vector<256x4xbf16>
    %c0_51 = arith.constant 0 : index
    %c32 = arith.constant 32 : index
    %35 = vector.load %arg6[%c0_51, %c32] : memref<256x36xbf16, #tpu.memory_space<vmem>>, vector<256x4xbf16>
    tpu.vector_store %arg6[%c0_51, %c32], %34 {strides = array<i32>} : memref<256x36xbf16, #tpu.memory_space<vmem>>, vector<256x4xbf16>,
    %c0_52 = arith.constant 0 : index
    %c0_53 = arith.constant 0 : index
    %36 = vector.load %arg6[%c0_52, %c0_53] : memref<256x36xbf16, #tpu.memory_space<vmem>>, vector<256x36xbf16>
    %c0_54 = arith.constant 0 : index
    %c0_55 = arith.constant 0 : index
    %37 = vector.load %arg3[%c0_54, %c0_55] : memref<36x128xbf16, #tpu.memory_space<vmem>>, vector<36x128xbf16>
    %cst = arith.constant dense<0.000000e+00> : vector<256x128xf32>
    %38 = tpu.matmul %36, %37, %cst {dimension_numbers = #tpu.dot_dimension_numbers<[1], [0], [0], [1], [0, 0, 1, 1], [], []>} : vector<256x36xbf16>, vector<36x128xbf16>, vector<256x128xf32> -> vector<256x128xf32>
    %39 = arith.truncf %38 : vector<256x128xf32> to vector<256x128xbf16>
    %c0_56 = arith.constant 0 : index
    %c0_57 = arith.constant 0 : index
    %c0_58 = arith.constant 0 : index
    %40 = vector.load %arg4[%c0_56, %c0_57, %c0_58] : memref<1x256x128xbf16, #tpu.memory_space<vmem>>, vector<1x256x128xbf16>
    %41 = vector.shape_cast %40 : vector<1x256x128xbf16> to vector<256x128xbf16>
    %42 = vector.shape_cast %39 : vector<256x128xbf16> to vector<1x256x128xbf16>
    tpu.vector_store %arg4[%c0_56, %c0_57, %c0_58], %42 {strides = array<i32>} : memref<1x256x128xbf16, #tpu.memory_space<vmem>>, vector<1x256x128xbf16>,
    %43 = arith.extf %39 : vector<256x128xbf16> to vector<256x128xf32>
    %cst_59 = arith.constant dense<0.000000e+00> : vector<128xf32>
    %44 = vector.multi_reduction <add>, %43, %cst_59 [0] : vector<256x128xf32> to vector<128xf32>
    %45 = vector.shape_cast %44 : vector<128xf32> to vector<1x128xf32>
    %46 = arith.mulf %43, %43 : vector<256x128xf32>
    %cst_60 = arith.constant dense<0.000000e+00> : vector<128xf32>
    %47 = vector.multi_reduction <add>, %46, %cst_60 [0] : vector<256x128xf32> to vector<128xf32>
    %48 = vector.shape_cast %47 : vector<128xf32> to vector<1x128xf32>
    %49 = tpu.concatenate %45, %48 in 0 : vector<1x128xf32>, vector<1x128xf32> -> vector<2x128xf32>
    %c0_61 = arith.constant 0 : index
    %c0_62 = arith.constant 0 : index
    %c0_63 = arith.constant 0 : index
    %c0_64 = arith.constant 0 : index
    %50 = vector.load %arg5[%c0_61, %c0_62, %c0_63, %c0_64] : memref<1x1x2x128xf32, #tpu.memory_space<vmem>>, vector<1x1x2x128xf32>
    %51 = vector.shape_cast %50 : vector<1x1x2x128xf32> to vector<2x128xf32>
    %52 = vector.shape_cast %49 : vector<2x128xf32> to vector<1x1x2x128xf32>
    tpu.vector_store %arg5[%c0_61, %c0_62, %c0_63, %c0_64], %52 {strides = array<i32>} : memref<1x1x2x128xf32, #tpu.memory_space<vmem>>, vector<1x1x2x128xf32>,
    return
  }
  func.func @transform_0(%arg0: i32, %arg1: i32) -> (i32, i32, i32, i32, i32) {
    %c0_i32 = arith.constant 0 : i32
    %c0_i32_0 = arith.constant 0 : i32
    %c0_i32_1 = arith.constant 0 : i32
    %c0_i32_2 = arith.constant 0 : i32
    return %arg0, %arg1, %c0_i32, %c0_i32_0, %c0_i32_1 : i32, i32, i32, i32, i32
  }
  func.func @transform_1(%arg0: i32, %arg1: i32) -> (i32, i32) {
    %c0_i32 = arith.constant 0 : i32
    %c0_i32_0 = arith.constant 0 : i32
    %c0_i32_1 = arith.constant 0 : i32
    return %c0_i32, %c0_i32_0 : i32, i32
  }
  func.func @transform_2(%arg0: i32, %arg1: i32) -> (i32, i32, i32) {
    %c0_i32 = arith.constant 0 : i32
    %c0_i32_0 = arith.constant 0 : i32
    return %arg0, %arg1, %c0_i32 : i32, i32, i32
  }
  func.func @transform_3(%arg0: i32, %arg1: i32) -> (i32, i32, i32, i32) {
    %c0_i32 = arith.constant 0 : i32
    %c0_i32_0 = arith.constant 0 : i32
    %c0_i32_1 = arith.constant 0 : i32
    return %arg0, %arg1, %c0_i32, %c0_i32_0 : i32, i32, i32, i32
  }
}

</mosaic_0001>

<bundles_post_ra>
// kernel: conv_block_forward.3
= control target key start
LH: loop header
LB: loop body
LE: loop exit
PB: predicated region body
PF: predicated region fallthrough
CT: control target
= control target key end

     0   :  { %s794_s15 = smov 0   ;;  %s796_s16 = smov 0   ;;  %s961_s0 = inlined_call_operand.vmem [shape: bf16[2,256,128], index: 0, kind: input, shape index: {}]   ;;  %s962_s1 = inlined_call_operand.vmem [shape: f32[1,128], index: 1, kind: input, shape index: {}]   ;;  %s963_s2 = inlined_call_operand.vmem [shape: f32[1,128], index: 2, kind: input, shape index: {}]   ;;  %s964_s3 = inlined_call_operand.vmem [shape: f32[2,1,128], index: 3, kind: input, shape index: {}]   ;;  %s965_s4 = inlined_call_operand.vmem [shape: f32[2,8,256], index: 4, kind: output, shape index: {}]  }
   0x1   :  { %s798_s17 = smov 0  }
   0x2 LB: > { %s26_s18 = sadd.s32 1, %s763_s16  ;;  %p630_p0 = scmp.ge.s32.totalorder %s767_s17, 1  ;;  %s767_s17 = sphi %s798_s17, %s14_s17   ;;  %s763_s16 = sphi %s796_s16, %s967_s16   ;;  %s759_s15 = sphi %s794_s15, %s966_s15  }
   0x3   : > { %p28_p1 = scmp.ge.s32.totalorder %s26_s18, 2  ;;  %p191_p2 = scmp.lt.s32.totalorder %s767_s17, 3 }
   0x5   : > { %s969_s18 = smov (%p28_p1, %s26_s18), 0  ;;  %p192_p3 = pnand %p630_p0, %p191_p2 }
   0x6   : > { %p229_p4 = scmp.lt.s32.totalorder (!%p192_p3), %s759_s15, 1  ;;  %v823_v0 = vld [vmem:[%s962_s1] ss:$0 sm:$0xff] (!%p192_p3) }
   0x7   : > { %195 = sbr.rel (%p192_p3) target bundleno = 159 (0x9f), region = 36  ;;  %v832_v9 = vld [vmem:[%s963_s2] ss:$0 sm:$0xff] (!%p192_p3) }
   0xe   : > { %s971_s15 = smov (!%p229_p4, %s759_s15), 1 }
   0xf   : > { %s640_s19 = sshll.u32 %s971_s15, 7  ;;  %s240_s29 = scalar_lea.vmem %s964_s3, %s971_s15 }
  0x10   : > { %s818_s22 = scalar_lea.vmem %s961_s0, %s640_s19  ;;  %v849_v25 = vld [vmem:[%s240_s29] ss:$0 sm:$0xff]  ;;  %s641_s30 = sshll.u32 %s971_s15, 4 }
  0x11   : > { %v713_v1 = vld [vmem:[%s818_s22 + $0x40] sm:$0xff]   ;;  %v714_v3 = vld [vmem:[%s818_s22 + $0x48] sm:$0xff]   ;;  %v715_v33 = vld [vmem:[%s818_s22 + $0x50] sm:$0xff]   ;;  %s249_s7 = scalar_lea.vmem %s965_s4, %s641_s30 }
  0x12   : > { %v643_v2 = vld [vmem:[%s818_s22] sm:$0xff]   ;;  %v676_v4 = vunpack.c.l.bf16 %v713_v1  ;;  %v677_v6 = vunpack.c.h.bf16 %v713_v1  ;;  %v706_v8 = vld [vmem:[%s818_s22 + $0x8] sm:$0xff]   ;;  %v680_v10 = vunpack.c.l.bf16 %v714_v3  ;;  %v681_v12 = vunpack.c.h.bf16 %v714_v3  ;;  %v707_v34 = vld [vmem:[%s818_s22 + $0x10] sm:$0xff]  }
  0x13   : > { %v644_v5 = vunpack.c.l.bf16 %v643_v2  ;;  %v645_v7 = vunpack.c.h.bf16 %v643_v2  ;;  %v648_v11 = vunpack.c.l.bf16 %v706_v8  ;;  %v649_v13 = vunpack.c.h.bf16 %v706_v8  ;;  %v716_v47 = vld [vmem:[%s818_s22 + $0x58] sm:$0xff]   ;;  %v717_v8 = vld [vmem:[%s818_s22 + $0x60] sm:$0xff]  }
  0x14   : > { %v338_v14 = vmul.f32 %v676_v4, %v823_v0  ;;  %v339_v16 = vmul.f32 %v677_v6, %v823_v0  ;;  %v340_v18 = vmul.f32 %v680_v10, %v823_v0  ;;  %v341_v20 = vmul.f32 %v681_v12, %v823_v0  ;;  %v708_v48 = vld [vmem:[%s818_s22 + $0x18] sm:$0xff]   ;;  %v709_v10 = vld [vmem:[%s818_s22 + $0x20] sm:$0xff]  }
  0x15   : > { %v322_v15 = vmul.f32 %v644_v5, %v823_v0  ;;  %v323_v17 = vmul.f32 %v645_v7, %v823_v0  ;;  %v324_v19 = vmul.f32 %v648_v11, %v823_v0  ;;  %v325_v28 = vmul.f32 %v649_v13, %v823_v0 }
  0x16   : > { %v377_v21 = vadd.f32 %v832_v9, %v338_v14  ;;  %v378_v23 = vadd.f32 %v832_v9, %v339_v16  ;;  %v379_v26 = vadd.f32 %v832_v9, %v340_v18  ;;  %v380_v38 = vadd.f32 %v832_v9, %v341_v20 }
  0x17   : > { %v361_v22 = vadd.f32 %v832_v9, %v322_v15  ;;  %v362_v24 = vadd.f32 %v832_v9, %v323_v17  ;;  %v363_v27 = vadd.f32 %v832_v9, %v324_v19  ;;  %v364_v42 = vadd.f32 %v832_v9, %v325_v28  ;;  %v718_v28 = vld [vmem:[%s818_s22 + $0x68] sm:$0xff]  }
  0x18   : > { %v409_v29 = vmax.f32 %v377_v21, 0.0  ;;  %v410_v31 = vmax.f32 %v378_v23, 0.0  ;;  %v411_v37 = vmax.f32 %v379_v26, 0.0  ;;  %v684_v43 = vunpack.c.l.bf16 %v715_v33 }
  0x19   : > { %v393_v30 = vmax.f32 %v361_v22, 0.0  ;;  %v394_v32 = vmax.f32 %v362_v24, 0.0  ;;  %v395_v41 = vmax.f32 %v363_v27, 0.0  ;;  %v652_v44 = vunpack.c.l.bf16 %v707_v34 }
  0x1a   : > { %v448_v35 = vadd.f32 %v849_v25, %v409_v29  ;;  %v449_v39 = vadd.f32 %v849_v25, %v410_v31  ;;  %v685_v45 = vunpack.c.h.bf16 %v715_v33  ;;  %v653_v46 = vunpack.c.h.bf16 %v707_v34  ;;  %v710_v33 = vld [vmem:[%s818_s22 + $0x28] sm:$0xff]  }
  0x1b   : > { %v432_v36 = vadd.f32 %v849_v25, %v393_v30  ;;  %v433_v40 = vadd.f32 %v849_v25, %v394_v32  ;;  %v450_v49 = vadd.f32 %v849_v25, %v411_v37  ;;  %v412_v50 = vmax.f32 %v380_v38, 0.0 }
  0x1c   : > { %496 = vxpose.xlu1.b32.start [1/16] (narrow) %v448_v35, 8  ;;  %v342_v51 = vmul.f32 %v684_v43, %v823_v0  ;;  %v326_v52 = vmul.f32 %v652_v44, %v823_v0  ;;  %v434_v53 = vadd.f32 %v849_v25, %v395_v41  ;;  %v343_v54 = vmul.f32 %v685_v45, %v823_v0 }
  0x1d   : > { %464 = vxpose.xlu0.b32.start [1/16] (narrow) %v432_v36, 8  ;;  %v688_v55 = vunpack.c.l.bf16 %v716_v47  ;;  %v656_v56 = vunpack.c.l.bf16 %v708_v48  ;;  %v396_v57 = vmax.f32 %v364_v42, 0.0  ;;  %v327_v60 = vmul.f32 %v653_v46, %v823_v0 }
  0x1e   : > { %v381_v58 = vadd.f32 %v832_v9, %v342_v51  ;;  %v365_v59 = vadd.f32 %v832_v9, %v326_v52  ;;  %v689_v61 = vunpack.c.h.bf16 %v716_v47  ;;  %v657_v62 = vunpack.c.h.bf16 %v708_v48 }
  0x1f   : > { %v451_v63 = vadd.f32 %v849_v25, %v412_v50  ;;  %v382_v1 = vadd.f32 %v832_v9, %v343_v54  ;;  %v344_v2 = vmul.f32 %v688_v55, %v823_v0  ;;  %v328_v3 = vmul.f32 %v656_v56, %v823_v0  ;;  %v719_v54 = vld [vmem:[%s818_s22 + $0x70] sm:$0xff]  }
  0x20   : > { %497 = vxpose.xlu1.b32.cont [2/16] (narrow) %v449_v39, 8  ;;  %v435_v4 = vadd.f32 %v849_v25, %v396_v57  ;;  %v413_v5 = vmax.f32 %v381_v58, 0.0  ;;  %v397_v6 = vmax.f32 %v365_v59, 0.0  ;;  %v366_v7 = vadd.f32 %v832_v9, %v327_v60  ;;  %v711_v55 = vld [vmem:[%s818_s22 + $0x30] sm:$0xff]  }
  0x21   : > { %465 = vxpose.xlu0.b32.cont [2/16] (narrow) %v433_v40, 8  ;;  %v345_v11 = vmul.f32 %v689_v61, %v823_v0  ;;  %v329_v12 = vmul.f32 %v657_v62, %v823_v0  ;;  %v414_v13 = vmax.f32 %v382_v1, 0.0  ;;  %v383_v14 = vadd.f32 %v832_v9, %v344_v2 }
  0x22   : > { %v367_v15 = vadd.f32 %v832_v9, %v328_v3  ;;  %v692_v16 = vunpack.c.l.bf16 %v717_v8  ;;  %v452_v17 = vadd.f32 %v849_v25, %v413_v5  ;;  %v436_v18 = vadd.f32 %v849_v25, %v397_v6 }
  0x23   : > { %v398_v19 = vmax.f32 %v366_v7, 0.0  ;;  %v660_v20 = vunpack.c.l.bf16 %v709_v10  ;;  %v384_v21 = vadd.f32 %v832_v9, %v345_v11  ;;  %v368_v22 = vadd.f32 %v832_v9, %v329_v12 }
  0x24   : > { %498 = vxpose.xlu1.b32.cont [3/16] (narrow) %v450_v49, 8  ;;  %v453_v23 = vadd.f32 %v849_v25, %v414_v13  ;;  %v415_v24 = vmax.f32 %v383_v14, 0.0  ;;  %v399_v26 = vmax.f32 %v367_v15, 0.0  ;;  %v693_v27 = vunpack.c.h.bf16 %v717_v8  ;;  %v720_v14 = vld [vmem:[%s818_s22 + $0x78] sm:$0xff]  }
  0x25   : > { %466 = vxpose.xlu0.b32.cont [3/16] (narrow) %v434_v53, 8  ;;  %v437_v29 = vadd.f32 %v849_v25, %v398_v19  ;;  %v346_v30 = vmul.f32 %v692_v16, %v823_v0  ;;  %v330_v31 = vmul.f32 %v660_v20, %v823_v0  ;;  %v661_v32 = vunpack.c.h.bf16 %v709_v10  ;;  %v712_v15 = vld [vmem:[%s818_s22 + $0x38] sm:$0xff]  }
  0x26   : > { %v416_v34 = vmax.f32 %v384_v21, 0.0  ;;  %v696_v35 = vunpack.c.l.bf16 %v718_v28  ;;  %v454_v36 = vadd.f32 %v849_v25, %v415_v24  ;;  %v438_v37 = vadd.f32 %v849_v25, %v399_v26 }
  0x27   : > { %v347_v38 = vmul.f32 %v693_v27, %v823_v0  ;;  %v664_v39 = vunpack.c.l.bf16 %v710_v33  ;;  %v400_v40 = vmax.f32 %v368_v22, 0.0  ;;  %v385_v41 = vadd.f32 %v832_v9, %v346_v30 }
  0x28   : > { %499 = vxpose.xlu1.b32.cont [4/16] (narrow) %v451_v63, 8  ;;  %v369_v42 = vadd.f32 %v832_v9, %v330_v31  ;;  %v331_v43 = vmul.f32 %v661_v32, %v823_v0  ;;  %v348_v44 = vmul.f32 %v696_v35, %v823_v0  ;;  %v697_v45 = vunpack.c.h.bf16 %v718_v28 }
  0x29   : > { %467 = vxpose.xlu0.b32.cont [4/16] (narrow) %v435_v4, 8  ;;  %v665_v46 = vunpack.c.h.bf16 %v710_v33  ;;  %v455_v47 = vadd.f32 %v849_v25, %v416_v34  ;;  %v386_v48 = vadd.f32 %v832_v9, %v347_v38  ;;  %v332_v49 = vmul.f32 %v664_v39, %v823_v0 }
  0x2a   : > { %v439_v50 = vadd.f32 %v849_v25, %v400_v40  ;;  %v417_v51 = vmax.f32 %v385_v41, 0.0  ;;  %v401_v52 = vmax.f32 %v369_v42, 0.0  ;;  %v370_v53 = vadd.f32 %v832_v9, %v331_v43 }
  0x2b   : > { %v387_v56 = vadd.f32 %v832_v9, %v348_v44  ;;  %v349_v57 = vmul.f32 %v697_v45, %v823_v0  ;;  %v333_v58 = vmul.f32 %v665_v46, %v823_v0  ;;  %v418_v59 = vmax.f32 %v386_v48, 0.0 }
  0x2c   : > { %500 = vxpose.xlu1.b32.cont [5/16] (narrow) %v452_v17, 8  ;;  %v371_v60 = vadd.f32 %v832_v9, %v332_v49  ;;  %v700_v61 = vunpack.c.l.bf16 %v719_v54  ;;  %v456_v62 = vadd.f32 %v849_v25, %v417_v51  ;;  %v440_v63 = vadd.f32 %v849_v25, %v401_v52 }
  0x2d   : > { %468 = vxpose.xlu0.b32.cont [5/16] (narrow) %v436_v18, 8  ;;  %v402_v1 = vmax.f32 %v370_v53, 0.0  ;;  %v668_v2 = vunpack.c.l.bf16 %v711_v55  ;;  %v419_v3 = vmax.f32 %v387_v56, 0.0  ;;  %v388_v4 = vadd.f32 %v832_v9, %v349_v57 }
  0x2e   : > { %v372_v5 = vadd.f32 %v832_v9, %v333_v58  ;;  %v457_v6 = vadd.f32 %v849_v25, %v418_v59  ;;  %v403_v7 = vmax.f32 %v371_v60, 0.0  ;;  %v350_v8 = vmul.f32 %v700_v61, %v823_v0 }
  0x2f   : > { %v441_v10 = vadd.f32 %v849_v25, %v402_v1  ;;  %v334_v11 = vmul.f32 %v668_v2, %v823_v0  ;;  %v701_v12 = vunpack.c.h.bf16 %v719_v54  ;;  %v669_v13 = vunpack.c.h.bf16 %v711_v55 }
  0x30   : > { %501 = vxpose.xlu1.b32.cont [6/16] (narrow) %v453_v23, 8  ;;  %v458_v16 = vadd.f32 %v849_v25, %v419_v3  ;;  %v420_v17 = vmax.f32 %v388_v4, 0.0  ;;  %v404_v18 = vmax.f32 %v372_v5, 0.0  ;;  %v442_v19 = vadd.f32 %v849_v25, %v403_v7 }
  0x31   : > { %469 = vxpose.xlu0.b32.cont [6/16] (narrow) %v437_v29, 8  ;;  %v389_v20 = vadd.f32 %v832_v9, %v350_v8  ;;  %v704_v21 = vunpack.c.l.bf16 %v720_v14  ;;  %v672_v22 = vunpack.c.l.bf16 %v712_v15  ;;  %v373_v23 = vadd.f32 %v832_v9, %v334_v11 }
  0x32   : > { %v351_v24 = vmul.f32 %v701_v12, %v823_v0  ;;  %v335_v26 = vmul.f32 %v669_v13, %v823_v0  ;;  %v459_v27 = vadd.f32 %v849_v25, %v420_v17  ;;  %v443_v28 = vadd.f32 %v849_v25, %v404_v18 }
  0x33   : > { %v352_v29 = vmul.f32 %v704_v21, %v823_v0  ;;  %v336_v30 = vmul.f32 %v672_v22, %v823_v0  ;;  %v705_v31 = vunpack.c.h.bf16 %v720_v14  ;;  %v673_v32 = vunpack.c.h.bf16 %v712_v15 }
  0x34   : > { %502 = vxpose.xlu1.b32.cont [7/16] (narrow) %v454_v36, 8  ;;  %v421_v33 = vmax.f32 %v389_v20, 0.0  ;;  %v405_v34 = vmax.f32 %v373_v23, 0.0  ;;  %v390_v35 = vadd.f32 %v832_v9, %v351_v24  ;;  %v374_v36 = vadd.f32 %v832_v9, %v335_v26 }
  0x35   : > { %470 = vxpose.xlu0.b32.cont [7/16] (narrow) %v438_v37, 8  ;;  %v391_v37 = vadd.f32 %v832_v9, %v352_v29  ;;  %v375_v38 = vadd.f32 %v832_v9, %v336_v30  ;;  %v353_v39 = vmul.f32 %v705_v31, %v823_v0  ;;  %v337_v40 = vmul.f32 %v673_v32, %v823_v0 }
  0x36   : > { %v460_v41 = vadd.f32 %v849_v25, %v421_v33  ;;  %v444_v42 = vadd.f32 %v849_v25, %v405_v34  ;;  %v422_v43 = vmax.f32 %v390_v35, 0.0  ;;  %v406_v44 = vmax.f32 %v374_v36, 0.0 }
  0x37   : > { %v392_v45 = vadd.f32 %v832_v9, %v353_v39  ;;  %v376_v46 = vadd.f32 %v832_v9, %v337_v40  ;;  %v423_v0 = vmax.f32 %v391_v37, 0.0  ;;  %v407_v49 = vmax.f32 %v375_v38, 0.0 }
  0x38   : > { %503 = vxpose.xlu1.b32.cont [8/16] (narrow) %v455_v47, 8  ;;  %v461_v47 = vadd.f32 %v849_v25, %v422_v43  ;;  %v445_v48 = vadd.f32 %v849_v25, %v406_v44 }
  0x39   : > { %471 = vxpose.xlu0.b32.cont [8/16] (narrow) %v439_v50, 8  ;;  %v462_v50 = vadd.f32 %v849_v25, %v423_v0  ;;  %v446_v51 = vadd.f32 %v849_v25, %v407_v49  ;;  %v424_v52 = vmax.f32 %v392_v45, 0.0  ;;  %v408_v53 = vmax.f32 %v376_v46, 0.0 }
  0x3b   : > { %v463_v9 = vadd.f32 %v849_v25, %v424_v52  ;;  %v447_v54 = vadd.f32 %v849_v25, %v408_v53 }
  0x3c   : > { %504 = vxpose.xlu1.b32.cont [9/16] (narrow) %v456_v62, 8 }
  0x3d   : > { %472 = vxpose.xlu0.b32.cont [9/16] (narrow) %v440_v63, 8 }
  0x40   : > { %505 = vxpose.xlu1.b32.cont [10/16] (narrow) %v457_v6, 8 }
  0x41   : > { %473 = vxpose.xlu0.b32.cont [10/16] (narrow) %v441_v10, 8 }
  0x44   : > { %506 = vxpose.xlu1.b32.cont [11/16] (narrow) %v458_v16, 8 }
  0x45   : > { %474 = vxpose.xlu0.b32.cont [11/16] (narrow) %v442_v19, 8 }
  0x48   : > { %507 = vxpose.xlu1.b32.cont [12/16] (narrow) %v459_v27, 8 }
  0x49   : > { %475 = vxpose.xlu0.b32.cont [12/16] (narrow) %v443_v28, 8 }
  0x4c   : > { %508 = vxpose.xlu1.b32.cont [13/16] (narrow) %v460_v41, 8 }
  0x4d   : > { %476 = vxpose.xlu0.b32.cont [13/16] (narrow) %v444_v42, 8 }
  0x50   : > { %509 = vxpose.xlu1.b32.cont [14/16] (narrow) %v461_v47, 8 }
  0x51   : > { %477 = vxpose.xlu0.b32.cont [14/16] (narrow) %v445_v48, 8 }
  0x54   : > { %510 = vxpose.xlu1.b32.cont [15/16] (narrow) %v462_v50, 8 }
  0x55   : > { %478 = vxpose.xlu0.b32.cont [15/16] (narrow) %v446_v51, 8 }
  0x58   : > { %511 = vxpose.xlu1.b32.end [16/16] (narrow) %v463_v9, 8 }
  0x59   : > { %479 = vxpose.xlu0.b32.end [16/16] (narrow) %v447_v54, 8 }
  0x9c   : > { %v512_v55 = vpop.trf.xlu1 }
  0x9d   : > { %v480_v56 = vpop.trf.xlu0  ;;  %529 = vst [vmem:[%s249_s7 + $0x8] sm:$0xff] %v512_v55 }
  0x9e   : > { %528 = vst [vmem:[%s249_s7] sm:$0xff] %v480_v56 }
  0x9f PF: > { %s14_s17 = sadd.s32 1, %s767_s17   ;;  %s966_s15 = smov %s763_s16 }
  0xa0   : > { %p11_p5 = scmp.ge.s32.totalorder %s14_s17, 4   ;;  %s967_s16 = smov %s969_s18 }
  0xa2   :  { %13 = sbr.rel (!%p11_p5) target bundleno = 2 (0x2), region = 69 }

// kernel: conv_block_forward.2
= control target key start
LH: loop header
LB: loop body
LE: loop exit
PB: predicated region body
PF: predicated region fallthrough
CT: control target
= control target key end

     0   :  { %s4854_s12 = smov 0   ;;  %s4856_s13 = smov 0   ;;  %s5985_s0 = inlined_call_operand.vmem [shape: bf16[2,1,18,18,4], index: 0, kind: input, shape index: {}]   ;;  %s5986_s1 = inlined_call_operand.vmem [shape: bf16[36,128], index: 1, kind: input, shape index: {}]   ;;  %s5987_s2 = inlined_call_operand.vmem [shape: bf16[2,256,128], index: 2, kind: output, shape index: {0}]   ;;  %s5988_s3 = inlined_call_operand.vmem [shape: f32[2,1,2,128], index: 3, kind: output, shape index: {1}]  }
   0x1   :  { %s4858_s14 = smov 0  }
   0x2 LB: > { %s26_s15 = sadd.s32 1, %s4820_s13  ;;  %p4019_p0 = scmp.ge.s32.totalorder %s4824_s14, 1  ;;  %s4824_s14 = sphi %s4858_s14, %s14_s14   ;;  %s4820_s13 = sphi %s4856_s13, %s5994_s13   ;;  %s4816_s12 = sphi %s4854_s12, %s5993_s12  }
   0x3   : > { %p28_p1 = scmp.ge.s32.totalorder %s26_s15, 2  ;;  %p162_p2 = scmp.lt.s32.totalorder %s4824_s14, 3 }
   0x5   : > { %s5996_s15 = smov (%p28_p1, %s26_s15), 0  ;;  %p163_p3 = pnand %p4019_p0, %p162_p2 }
   0x6   : > { %p201_p4 = scmp.lt.s32.totalorder (!%p163_p3), %s4816_s12, 1  ;;  %vm1017_vm0 = vcmask (!%p163_p3), 1042432   ;;  %vm1018_vm1 = vcmask (!%p163_p3), 1046532   ;;  %s4826_s20 = smov (!%p163_p3), 12   ;;  %vm421_vm3 = vsmask.f32 (!%p163_p3), 3328 }
   0x7   : > { %166 = sbr.rel (%p163_p3) target bundleno = 682 (0x2aa), region = 28  ;;  %vm4880_vm2 = vmor (!%p163_p3), %vm1017_vm0, %vm1018_vm1  ;;  %vm422_vm4 = vsmask.f32 (!%p163_p3), 7440  ;;  %s4827_s21 = smov (!%p163_p3), 20   ;;  %vm356_vm6 = vcmask (!%p163_p3), 31744   ;;  %vm904_vm7 = vcmask (!%p163_p3), 64544  }
   0x8   : > { %s4828_s22 = smov (!%p163_p3), 8   ;;  %vm4921_vm5 = vmor (!%p163_p3), %vm421_vm3, %vm422_vm4  ;;  %s4829_s23 = smov (!%p163_p3), 4   ;;  %vm1228_vm8 = vcmask (!%p163_p3), 97344   ;;  %vm1406_vm9 = vcmask (!%p163_p3), 130144   ;;  %vm1951_vm10 = vcmask (!%p163_p3), 162944   ;;  %vm2272_vm11 = vcmask (!%p163_p3), 195744  }
   0x9   : > { %s4830_s24 = smov (!%p163_p3), 16   ;;  %s4831_s25 = smov (!%p163_p3), 24   ;;  %vm2450_vm12 = vcmask (!%p163_p3), 228544   ;;  %vm2995_vm13 = vcmask (!%p163_p3), 261344   ;;  %vm3316_vm14 = vcmask (!%p163_p3), 294144   ;;  %vm3418_vm15 = vcmask (!%p163_p3), 1041408  }
   0xa   : > { %s4832_s26 = smov (!%p163_p3), 28   ;;  %s4833_s27 = smov (!%p163_p3), 32   ;;  %vm3369_vm0 = vcmask (!%p163_p3), 293888   ;;  %vm3881_vm1 = vcmask (!%p163_p3), 1040384  }
   0xe   : > { %s5998_s12 = smov (!%p201_p4, %s4816_s12), 1 }
   0xf   : > { %s4718_s16 = smul.u32 216, %s5998_s12  ;;  %s4525_s7 = sshll.u32 %s5998_s12, 7 }
  0x10   : > { %s5941_s10 = scalar_lea.vmem %s5987_s2, %s4525_s7  ;;  %s4023_s11 = sshll.u32 %s5998_s12, 1 }
  0x11   : > { %s4878_s19 = scalar_lea.vmem %s5985_s0, %s4718_s16  ;;  %s226_s18 = scalar_lea.vmem %s5988_s3, %s4023_s11 }
  0x12   : > { %v4751_v1 = vld [vmem:[%s4878_s19 + $0x18] sm:$0xff]   ;;  %v4752_v2 = vld [vmem:[%s4878_s19 + $0xc] sm:$0xff]   ;;  %v4202_v5 = vld [vmem:[%s4878_s19 + $0x14] sm:$0x1] }
  0x13   : > { %1360 = vrot.lane.b32.xlu1 %v4751_v1, %s4826_s20  ;;  %v4200_v3 = vld [vmem:[%s4878_s19 + $0xc] sm:$0xe]  ;;  %v4201_v4 = vld [vmem:[%s4878_s19 + $0x10] sm:$0xf]  ;;  %1358 = vrot.lane.b32.xlu0 %v4752_v2, %s4826_s20  ;;  %v2069_v8 = vrot.slane %v4202_v5, 5 }
  0x14   : > { %v4248_v6 = vrot.slane %v4200_v3, 9  ;;  %v2066_v7 = vrot.slane %v4201_v4, 5  ;;  %v921_v9 = vld [vmem:[%s4878_s19] sm:$0xe]  ;;  %v922_v10 = vld [vmem:[%s4878_s19 + $0x4] sm:$0xf] }
  0x15   : > { %v923_v11 = vld [vmem:[%s4878_s19 + $0x8] sm:$0x1]  ;;  %v4056_v12 = vrot.slane %v921_v9, 9  ;;  %v1022_v15 = vrot.slane %v922_v10, 5  ;;  %v924_v17 = vld [vmem:[%s4878_s19 + $0xc] sm:$0xe] }
  0x16   : > { %v2067_v13 = vsel %vm4880_vm2, %v4248_v6, %v2066_v7  ;;  %v2068_v14 = vrot.slane %v2066_v7, 4  ;;  %v1025_v16 = vrot.slane %v923_v11, 5  ;;  %v925_v18 = vld [vmem:[%s4878_s19 + $0x10] sm:$0xf]  ;;  %v926_v19 = vld [vmem:[%s4878_s19 + $0x14] sm:$0x1] }
  0x17   : > { %v4057_v20 = vrot.slane %v924_v17, 9  ;;  %v1023_v22 = vsel %vm4880_vm2, %v4056_v12, %v1022_v15  ;;  %v1024_v23 = vrot.slane %v1022_v15, 4  ;;  %v1029_v24 = vrot.slane %v925_v18, 5  ;;  %v373_v25 = vld [vmem:[%s4878_s19] sm:$0xf] }
  0x18   : > { %v2070_v21 = vsel %vm4880_vm2, %v2068_v14, %v2069_v8  ;;  %v374_v26 = vld [vmem:[%s4878_s19 + $0x4] sm:$0xf]  ;;  %v1032_v28 = vrot.slane %v926_v19, 5  ;;  %v375_v29 = vld [vmem:[%s4878_s19 + $0x8] sm:$0x1]  ;;  %v425_v30 = vshrl.u32 %v373_v25, 16 }
  0x19   : > { %v4264_v27 = vcombine.low %v2067_v13, %v2070_v21  ;;  %v428_v31 = vshll.u32 %v373_v25, 16  ;;  %v1026_v32 = vsel %vm4880_vm2, %v1024_v23, %v1025_v16  ;;  %v1030_v33 = vsel %vm4880_vm2, %v4057_v20, %v1029_v24  ;;  %v4203_v36 = vld [vmem:[%s4878_s19 + $0x18] sm:$0xe]  ;;  %v4204_v37 = vld [vmem:[%s4878_s19 + $0x1c] sm:$0xf] }
  0x1a   : > { %v1031_v34 = vrot.slane %v1029_v24, 4  ;;  %v434_v35 = vshll.u32 %v374_v26, 16  ;;  %v4072_v38 = vcombine.low %v1023_v22, %v1026_v32  ;;  %v427_v39 = vrot.slane %v425_v30, 4  ;;  %v4205_v42 = vld [vmem:[%s4878_s19 + $0x20] sm:$0x1] }
  0x1b   : > { %2224 = vrot.lane.b32.xlu0 %v4264_v27, %s4827_s21  ;;  %v430_v40 = vrot.slane %v428_v31, 5  ;;  %v438_v41 = vshrl.u32 %v374_v26, 16  ;;  %v444_v45 = vshll.u32 %v375_v29, 16  ;;  %v4249_v46 = vrot.slane %v4203_v36, 9  ;;  %v376_v47 = vld [vmem:[%s4878_s19 + $0xc] sm:$0xf] }
  0x1c   : > { %v1033_v43 = vsel %vm4880_vm2, %v1031_v34, %v1032_v28  ;;  %v436_v44 = vrot.slane %v434_v35, 5  ;;  %1180 = vrot.lane.b32.xlu1 %v4072_v38, %s4828_s22  ;;  %v2073_v51 = vrot.slane %v4204_v37, 5  ;;  %v377_v52 = vld [vmem:[%s4878_s19 + $0x10] sm:$0xf]  ;;  %v2076_v55 = vrot.slane %v4205_v42, 5 }
  0x1d   : > { %v4073_v48 = vcombine.low %v1030_v33, %v1033_v43  ;;  %v431_v49 = vor.u32 %v430_v40, %v427_v39  ;;  %v440_v50 = vrot.slane %v438_v41, 4  ;;  %v446_v54 = vrot.slane %v444_v45, 5  ;;  %v378_v56 = vld [vmem:[%s4878_s19 + $0x14] sm:$0x1]  ;;  %v4139_v63 = vld [vmem:[%s4878_s19 + $0x18] sm:$0xf] }
  0x1e   : > { %v449_v57 = vshrl.u32 %v376_v47, 16  ;;  %v452_v58 = vshll.u32 %v376_v47, 16  ;;  %v2074_v61 = vsel %vm4880_vm2, %v4249_v46, %v2073_v51  ;;  %v2075_v62 = vrot.slane %v2073_v51, 4  ;;  %v4140_v5 = vld [vmem:[%s4878_s19 + $0x1c] sm:$0xf] }
  0x1f   : > { %v432_v59 = vrot.slane %v431_v49, 4  ;;  %v441_v60 = vor.u32 %v440_v50, %v436_v44  ;;  %v458_v3 = vshll.u32 %v377_v52, 16  ;;  %v462_v4 = vshrl.u32 %v377_v52, 16  ;;  %v4141_v10 = vld [vmem:[%s4878_s19 + $0x20] sm:$0x1] }
  0x20   : > { %v451_v1 = vrot.slane %v449_v57, 4  ;;  %v454_v2 = vrot.slane %v452_v58, 5  ;;  %1182 = vrot.lane.b32.xlu1 %v4073_v48, %s4828_s22  ;;  %v2077_v8 = vsel %vm4880_vm2, %v2075_v62, %v2076_v55  ;;  %v468_v9 = vshll.u32 %v378_v56, 16  ;;  %v4136_v11 = vld [vmem:[%s4878_s19 + $0xc] sm:$0xf] }
  0x21   : > { %v437_v6 = vsel %vm4921_vm5, %v432_v59, %v436_v44  ;;  %v442_v7 = vrot.slane %v441_v60, 4  ;;  %v4265_v12 = vcombine.low %v2074_v61, %v2077_v8  ;;  %v460_v14 = vrot.slane %v458_v3, 5  ;;  %v4137_v28 = vld [vmem:[%s4878_s19 + $0x10] sm:$0xf]  ;;  %v4138_v32 = vld [vmem:[%s4878_s19 + $0x14] sm:$0x1] }
  0x22   : > { %v455_v13 = vor.u32 %v454_v2, %v451_v1  ;;  %v464_v15 = vrot.slane %v462_v4, 4  ;;  %v470_v17 = vrot.slane %v468_v9, 5  ;;  %v1496_v18 = vshrl.u32 %v4139_v63, 16  ;;  %v4328_v38 = vld [vmem:[%s4878_s19 + $0x18] sm:$0xf] }
  0x23   : > { %v447_v16 = vsel %vm4921_vm5, %v442_v7, %v446_v54  ;;  %v1499_v19 = vshll.u32 %v4139_v63, 16  ;;  %v1505_v23 = vshll.u32 %v4140_v5, 16  ;;  %v1509_v26 = vshrl.u32 %v4140_v5, 16  ;;  %v4329_v47 = vld [vmem:[%s4878_s19 + $0x1c] sm:$0xf] }
  0x24   : > { %v4040_v20 = vcombine.low %v437_v6, %v447_v16  ;;  %v456_v21 = vrot.slane %v455_v13, 4  ;;  %v465_v22 = vor.u32 %v464_v15, %v460_v14  ;;  %2226 = vrot.lane.b32.xlu1 %v4265_v12, %s4827_s21  ;;  %v1498_v24 = vrot.slane %v1496_v18, 4  ;;  %v4330_v56 = vld [vmem:[%s4878_s19 + $0x20] sm:$0x1]  ;;  %v4331_v62 = vld [vmem:[%s4878_s19 + $0x24] sm:$0xf] }
  0x25   : > { %v1501_v25 = vrot.slane %v1499_v19, 5  ;;  %v1515_v27 = vshll.u32 %v4141_v10, 16  ;;  %v1507_v31 = vrot.slane %v1505_v23, 5  ;;  %v1472_v33 = vshrl.u32 %v4136_v11, 16  ;;  %v4332_v4 = vld [vmem:[%s4878_s19 + $0x28] sm:$0xf] }
  0x26   : > { %856 = vrot.lane.b32.xlu0 %v4040_v20, %s4829_s23  ;;  %v461_v29 = vsel %vm4921_vm5, %v456_v21, %v460_v14  ;;  %v466_v30 = vrot.slane %v465_v22, 4  ;;  %v1511_v35 = vrot.slane %v1509_v26, 4  ;;  %v1475_v37 = vshll.u32 %v4136_v11, 16  ;;  %v4333_v12 = vld [vmem:[%s4878_s19 + $0x2c] sm:$0x1]  ;;  %v4754_v16 = vld [vmem:[%s4878_s19 + $0x24] sm:$0xff]  }
  0x27   : > { %v1502_v34 = vor.u32 %v1501_v25, %v1498_v24  ;;  %v1517_v36 = vrot.slane %v1515_v27, 5  ;;  %v1474_v40 = vrot.slane %v1472_v33, 4  ;;  %v1481_v41 = vshll.u32 %v4137_v28, 16  ;;  %v4392_v14 = vld [vmem:[%s4878_s19 + $0x18] sm:$0xe] }
  0x28   : > { %v471_v39 = vsel %vm4921_vm5, %v466_v30, %v470_v17  ;;  %v1485_v42 = vshrl.u32 %v4137_v28, 16  ;;  %v1512_v45 = vor.u32 %v1511_v35, %v1507_v31  ;;  %v1477_v46 = vrot.slane %v1475_v37, 5  ;;  %v4393_v20 = vld [vmem:[%s4878_s19 + $0x1c] sm:$0xf]  ;;  %v4394_v25 = vld [vmem:[%s4878_s19 + $0x20] sm:$0x1] }
  0x29   : > { %v4041_v43 = vcombine.low %v461_v29, %v471_v39  ;;  %v1503_v44 = vrot.slane %v1502_v34, 4  ;;  %v1483_v48 = vrot.slane %v1481_v41, 5  ;;  %v1491_v50 = vshll.u32 %v4138_v32, 16  ;;  %v379_v30 = vld [vmem:[%s4878_s19 + $0x18] sm:$0xf] }
  0x2a   : > { %v1487_v49 = vrot.slane %v1485_v42, 4  ;;  %v2516_v51 = vshrl.u32 %v4328_v38, 16  ;;  %v1513_v54 = vrot.slane %v1512_v45, 4  ;;  %v1478_v55 = vor.u32 %v1477_v46, %v1474_v40  ;;  %v381_v41 = vld [vmem:[%s4878_s19 + $0x20] sm:$0x1] }
  0x2b   : > { %858 = vrot.lane.b32.xlu0 %v4041_v43, %s4829_s23  ;;  %v1508_v52 = vsel %vm4921_vm5, %v1503_v44, %v1507_v31  ;;  %v2519_v57 = vshll.u32 %v4328_v38, 16  ;;  %v1493_v59 = vrot.slane %v1491_v50, 5  ;;  %v2525_v61 = vshll.u32 %v4329_v47, 16  ;;  %v4753_v31 = vld [vmem:[%s4878_s19 + $0x18] sm:$0xff]   ;;  %v4395_v42 = vld [vmem:[%s4878_s19 + $0x24] sm:$0xe] }
  0x2c   : > { %v1488_v58 = vor.u32 %v1487_v49, %v1483_v48  ;;  %v2518_v60 = vrot.slane %v2516_v51, 4  ;;  %v1518_v63 = vsel %vm4921_vm5, %v1513_v54, %v1517_v36  ;;  %v1479_v1 = vrot.slane %v1478_v55, 4  ;;  %v380_v36 = vld [vmem:[%s4878_s19 + $0x1c] sm:$0xf]  ;;  %v382_v54 = vld [vmem:[%s4878_s19 + $0x24] sm:$0xf] }
  0x2d   : > { %v2521_v2 = vrot.slane %v2519_v57, 5  ;;  %v2529_v3 = vshrl.u32 %v4329_v47, 16  ;;  %v4185_v5 = vcombine.low %v1508_v52, %v1518_v63  ;;  %v2527_v7 = vrot.slane %v2525_v61, 5  ;;  %v4396_v47 = vld [vmem:[%s4878_s19 + $0x28] sm:$0xf] }
  0x2e   : > { %v1489_v6 = vrot.slane %v1488_v58, 4  ;;  %v2535_v8 = vshll.u32 %v4330_v56, 16  ;;  %v1484_v9 = vsel %vm4921_vm5, %v1479_v1, %v1483_v48  ;;  %v2540_v13 = vshrl.u32 %v4331_v62, 16  ;;  %v4397_v48 = vld [vmem:[%s4878_s19 + $0x2c] sm:$0x1] }
  0x2f   : > { %v2522_v10 = vor.u32 %v2521_v2, %v2518_v60  ;;  %v2531_v11 = vrot.slane %v2529_v3, 4  ;;  %1905 = vrot.lane.b32.xlu1 %v4185_v5, %s4830_s24  ;;  %v2543_v18 = vshll.u32 %v4331_v62, 16  ;;  %v2549_v19 = vshll.u32 %v4332_v4, 16 }
  0x30   : > { %v1494_v15 = vsel %vm4921_vm5, %v1489_v6, %v1493_v59  ;;  %v2537_v17 = vrot.slane %v2535_v8, 5  ;;  %v2542_v24 = vrot.slane %v2540_v13, 4  ;;  %v2553_v28 = vshrl.u32 %v4332_v4, 16  ;;  %v383_v8 = vld [vmem:[%s4878_s19 + $0x28] sm:$0xf] }
  0x31   : > { %v4184_v21 = vcombine.low %v1484_v9, %v1494_v15  ;;  %v2523_v22 = vrot.slane %v2522_v10, 4  ;;  %v2532_v23 = vor.u32 %v2531_v11, %v2527_v7  ;;  %v2545_v26 = vrot.slane %v2543_v18, 5 }
  0x32   : > { %v2551_v27 = vrot.slane %v2549_v19, 5  ;;  %v2559_v29 = vshll.u32 %v4333_v12, 16  ;;  %v4440_v34 = vrot.slane %v4392_v14, 9  ;;  %v3110_v35 = vrot.slane %v4393_v20, 5  ;;  %v384_v12 = vld [vmem:[%s4878_s19 + $0x2c] sm:$0x1] }
  0x33   : > { %1903 = vrot.lane.b32.xlu0 %v4184_v21, %s4830_s24  ;;  %v2528_v32 = vsel %vm4921_vm5, %v2523_v22, %v2527_v7  ;;  %v2533_v33 = vrot.slane %v2532_v23, 4  ;;  %2404 = vrot.lane.b32.xlu1 %v4754_v16, %s4831_s25  ;;  %v2546_v37 = vor.u32 %v2545_v26, %v2542_v24  ;;  %v2555_v38 = vrot.slane %v2553_v28, 4  ;;  %v927_v14 = vld [vmem:[%s4878_s19 + $0x18] sm:$0xe]  ;;  %v928_v19 = vld [vmem:[%s4878_s19 + $0x1c] sm:$0xf] }
  0x34   : > { %v2561_v39 = vrot.slane %v2559_v29, 5  ;;  %v3113_v40 = vrot.slane %v4394_v25, 5  ;;  %v3111_v44 = vsel %vm4880_vm2, %v4440_v34, %v3110_v35  ;;  %v3112_v45 = vrot.slane %v3110_v35, 4  ;;  %v929_v24 = vld [vmem:[%s4878_s19 + $0x20] sm:$0x1] }
  0x35   : > { %v2538_v43 = vsel %vm4921_vm5, %v2533_v33, %v2537_v17  ;;  %v473_v46 = vshrl.u32 %v379_v30, 16  ;;  %v2547_v50 = vrot.slane %v2546_v37, 4  ;;  %v2556_v51 = vor.u32 %v2555_v38, %v2551_v27  ;;  %v930_v29 = vld [vmem:[%s4878_s19 + $0x24] sm:$0xe]  ;;  %v932_v35 = vld [vmem:[%s4878_s19 + $0x2c] sm:$0x1] }
  0x36   : > { %v4376_v49 = vcombine.low %v2528_v32, %v2538_v43  ;;  %v476_v52 = vshll.u32 %v379_v30, 16  ;;  %v3114_v55 = vsel %vm4880_vm2, %v3112_v45, %v3113_v40  ;;  %v482_v57 = vshll.u32 %v380_v36, 16  ;;  %v931_v30 = vld [vmem:[%s4878_s19 + $0x28] sm:$0xf] }
  0x37   : > { %2402 = vrot.lane.b32.xlu0 %v4753_v31, %s4831_s25  ;;  %v475_v56 = vrot.slane %v473_v46, 4  ;;  %v486_v58 = vshrl.u32 %v380_v36, 16  ;;  %v2552_v59 = vsel %vm4921_vm5, %v2547_v50, %v2551_v27  ;;  %v2557_v60 = vrot.slane %v2556_v51, 4  ;;  %v4142_v36 = vld [vmem:[%s4878_s19 + $0x24] sm:$0xf] }
  0x38   : > { %v4456_v61 = vcombine.low %v3111_v44, %v3114_v55  ;;  %v478_v62 = vrot.slane %v476_v52, 5  ;;  %v484_v63 = vrot.slane %v482_v57, 5  ;;  %v492_v2 = vshll.u32 %v381_v41, 16  ;;  %v4143_v41 = vld [vmem:[%s4878_s19 + $0x28] sm:$0xf]  ;;  %v4771_v55 = vld [vmem:[%s5986_s1] sm:$0xff]  }
  0x39   : > { %v488_v1 = vrot.slane %v486_v58, 4  ;;  %v4441_v3 = vrot.slane %v4395_v42, 9  ;;  %v2562_v4 = vsel %vm4921_vm5, %v2557_v60, %v2561_v39  ;;  %v3117_v6 = vrot.slane %v4396_v47, 5  ;;  %4672 = vmatprep.subr.bf16.mxu0 %v4771_v55  ;;  %4710 = vmatprep.subr.bf16.mxu1 %v4771_v55 }
  0x3a   : > { %v479_v5 = vor.u32 %v478_v62, %v475_v56  ;;  %v3120_v7 = vrot.slane %v4397_v48, 5  ;;  %v4377_v9 = vcombine.low %v2552_v59, %v2562_v4  ;;  %v494_v11 = vrot.slane %v492_v2, 5  ;;  %v4144_v59 = vld [vmem:[%s4878_s19 + $0x2c] sm:$0x1]  ;;  %v4145_v2 = vld [vmem:[%s4878_s19 + $0x30] sm:$0xf]  ;;  %4673 = vmatpush3.bf16.msra.mxu0 %v4771_v55  ;;  %4713 = vmatpush3.bf16.msra.mxu1 %v4771_v55 }
  0x3b   : > { %2947 = vrot.lane.b32.xlu0 %v4376_v49, %s4832_s26  ;;  %v489_v10 = vor.u32 %v488_v1, %v484_v63  ;;  %v497_v13 = vshrl.u32 %v382_v54, 16  ;;  %v3118_v16 = vsel %vm4880_vm2, %v4441_v3, %v3117_v6  ;;  %v3119_v17 = vrot.slane %v3117_v6, 4  ;;  %v4146_v3 = vld [vmem:[%s4878_s19 + $0x34] sm:$0xf] }
  0x3c   : > { %v480_v15 = vrot.slane %v479_v5, 4  ;;  %v500_v18 = vshll.u32 %v382_v54, 16  ;;  %2949 = vrot.lane.b32.xlu1 %v4377_v9, %s4832_s26  ;;  %v506_v22 = vshll.u32 %v383_v8, 16  ;;  %v510_v23 = vshrl.u32 %v383_v8, 16  ;;  %v4147_v9 = vld [vmem:[%s4878_s19 + $0x38] sm:$0x1] }
  0x3d   : > { %v490_v20 = vrot.slane %v489_v10, 4  ;;  %v499_v21 = vrot.slane %v497_v13, 4  ;;  %v3121_v26 = vsel %vm4880_vm2, %v3119_v17, %v3120_v7  ;;  %v516_v28 = vshll.u32 %v384_v12, 16  ;;  %v4755_v7 = vld [vmem:[%s4878_s19 + $0x24] sm:$0xff]  }
  0x3e   : > { %v485_v25 = vsel %vm4921_vm5, %v480_v15, %v484_v63  ;;  %v502_v27 = vrot.slane %v500_v18, 5  ;;  %v4457_v32 = vcombine.low %v3118_v16, %v3121_v26  ;;  %v508_v33 = vrot.slane %v506_v22, 5  ;;  %v4206_v10 = vld [vmem:[%s4878_s19 + $0x24] sm:$0xe]  ;;  %v4207_v15 = vld [vmem:[%s4878_s19 + $0x28] sm:$0xf] }
  0x3f   : > { %3268 = vrot.lane.b32.xlu0 %v4456_v61, %s4833_s27  ;;  %v495_v31 = vsel %vm4921_vm5, %v490_v20, %v494_v11  ;;  %v512_v34 = vrot.slane %v510_v23, 4  ;;  %v518_v39 = vrot.slane %v516_v28, 5  ;;  %v4058_v40 = vrot.slane %v927_v14, 9  ;;  %v4208_v16 = vld [vmem:[%s4878_s19 + $0x2c] sm:$0x1] }
  0x40   : > { %v4042_v37 = vcombine.low %v485_v25, %v495_v31  ;;  %v503_v38 = vor.u32 %v502_v27, %v499_v21  ;;  %v1036_v43 = vrot.slane %v928_v19, 5  ;;  %v1039_v44 = vrot.slane %v929_v24, 5  ;;  %v4209_v21 = vld [vmem:[%s4878_s19 + $0x30] sm:$0xe]  ;;  %v4210_v26 = vld [vmem:[%s4878_s19 + $0x34] sm:$0xf] }
  0x41   : > { %v513_v42 = vor.u32 %v512_v34, %v508_v33  ;;  %v4059_v45 = vrot.slane %v930_v29, 9  ;;  %v1043_v47 = vrot.slane %v931_v30, 5  ;;  %v1046_v48 = vrot.slane %v932_v35, 5  ;;  %v4211_v31 = vld [vmem:[%s4878_s19 + $0x38] sm:$0x1] }
  0x42   : > { %860 = vrot.lane.b32.xlu1 %v4042_v37, %s4829_s23  ;;  %v504_v46 = vrot.slane %v503_v38, 4  ;;  %v1520_v49 = vshrl.u32 %v4142_v36, 16  ;;  %v1037_v51 = vsel %vm4880_vm2, %v4058_v40, %v1036_v43  ;;  %v1038_v52 = vrot.slane %v1036_v43, 4  ;;  %v4756_v37 = vld [vmem:[%s4878_s19 + $0x30] sm:$0xff]  }
  0x43   : > { %3270 = vrot.lane.b32.xlu0 %v4457_v32, %s4833_s27  ;;  %v514_v50 = vrot.slane %v513_v42, 4  ;;  %v1523_v54 = vshll.u32 %v4142_v36, 16  ;;  %v1044_v57 = vsel %vm4880_vm2, %v4059_v45, %v1043_v47  ;;  %v1045_v58 = vrot.slane %v1043_v47, 4  ;;  %v4773_v32 = vld [vmem:[%s5986_s1 + $0x8] sm:$0xff]  }
  0x44   : > { %v509_v56 = vsel %vm4921_vm5, %v504_v46, %v508_v33  ;;  %v1522_v60 = vrot.slane %v1520_v49, 4  ;;  %v1040_v62 = vsel %vm4880_vm2, %v1038_v52, %v1039_v44  ;;  %v1529_v1 = vshll.u32 %v4143_v41, 16  ;;  %v4334_v46 = vld [vmem:[%s4878_s19 + $0x30] sm:$0xf]  ;;  %4674 = vmatprep.subr.bf16.mxu0 %v4773_v32  ;;  %4711 = vmatprep.subr.bf16.mxu1 %v4773_v32 }
  0x45   : > { %v519_v61 = vsel %vm4921_vm5, %v514_v50, %v518_v39  ;;  %v1525_v63 = vrot.slane %v1523_v54, 5  ;;  %v4074_v5 = vcombine.low %v1037_v51, %v1040_v62  ;;  %v1047_v6 = vsel %vm4880_vm2, %v1045_v58, %v1046_v48  ;;  %v4335_v51 = vld [vmem:[%s4878_s19 + $0x34] sm:$0xf]  ;;  %4675 = vmatpush3.bf16.msra.mxu0 %v4773_v32  ;;  %4714 = vmatpush3.bf16.msra.mxu1 %v4773_v32  ;;  %v4337_v62 = vld [vmem:[%s4878_s19 + $0x3c] sm:$0xf] }
  0x46   : > { %v4043_v4 = vcombine.low %v509_v56, %v519_v61  ;;  %v1533_v8 = vshrl.u32 %v4143_v41, 16  ;;  %v4075_v11 = vcombine.low %v1044_v57, %v1047_v6  ;;  %v1531_v13 = vrot.slane %v1529_v1, 5 }
  0x47   : > { %v1526_v12 = vor.u32 %v1525_v63, %v1522_v60  ;;  %v1539_v14 = vshll.u32 %v4144_v59, 16  ;;  %1184 = vrot.lane.b32.xlu0 %v4074_v5, %s4828_s22  ;;  %v1544_v18 = vshrl.u32 %v4145_v2, 16  ;;  %v1547_v19 = vshll.u32 %v4145_v2, 16  ;;  %v4336_v59 = vld [vmem:[%s4878_s19 + $0x38] sm:$0x1] }
  0x48   : > { %862 = vrot.lane.b32.xlu1 %v4043_v4, %s4829_s23  ;;  %v1535_v17 = vrot.slane %v1533_v8, 4  ;;  %v1553_v20 = vshll.u32 %v4146_v3, 16  ;;  %v1557_v24 = vshrl.u32 %v4146_v3, 16  ;;  %v1563_v25 = vshll.u32 %v4147_v9, 16  ;;  %v4338_v4 = vld [vmem:[%s4878_s19 + $0x40] sm:$0xf] }
  0x49   : > { %v1527_v22 = vrot.slane %v1526_v12, 4  ;;  %v1541_v23 = vrot.slane %v1539_v14, 5  ;;  %v1546_v28 = vrot.slane %v1544_v18, 4  ;;  %v1549_v29 = vrot.slane %v1547_v19, 5  ;;  %v4339_v5 = vld [vmem:[%s4878_s19 + $0x44] sm:$0x1] }
  0x4a   : > { %v1536_v27 = vor.u32 %v1535_v17, %v1531_v13  ;;  %v1555_v30 = vrot.slane %v1553_v20, 5  ;;  %v1559_v34 = vrot.slane %v1557_v24, 4  ;;  %v1565_v35 = vrot.slane %v1563_v25, 5  ;;  %v4757_v17 = vld [vmem:[%s4878_s19 + $0x30] sm:$0xff]  }
  0x4b   : > { %v1532_v33 = vsel %vm4921_vm5, %v1527_v22, %v1531_v13  ;;  %v4250_v36 = vrot.slane %v4206_v10, 9  ;;  %1362 = vrot.lane.b32.xlu0 %v4755_v7, %s4826_s20  ;;  %v1550_v39 = vor.u32 %v1549_v29, %v1546_v28  ;;  %v2080_v40 = vrot.slane %v4207_v15, 5  ;;  %v4398_v10 = vld [vmem:[%s4878_s19 + $0x30] sm:$0xe] }
  0x4c   : > { %1186 = vrot.lane.b32.xlu1 %v4075_v11, %s4828_s22  ;;  %v1537_v38 = vrot.slane %v1536_v27, 4  ;;  %v2083_v41 = vrot.slane %v4208_v16, 5  ;;  %v1560_v42 = vor.u32 %v1559_v34, %v1555_v30  ;;  %v4251_v43 = vrot.slane %v4209_v21, 9  ;;  %v4399_v11 = vld [vmem:[%s4878_s19 + $0x34] sm:$0xf] }
  0x4d   : > { %v2087_v44 = vrot.slane %v4210_v26, 5  ;;  %v2090_v45 = vrot.slane %v4211_v31, 5  ;;  %v1551_v48 = vrot.slane %v1550_v39, 4  ;;  %v2081_v49 = vsel %vm4880_vm2, %v4250_v36, %v2080_v40  ;;  %v4400_v16 = vld [vmem:[%s4878_s19 + $0x38] sm:$0x1]  ;;  %v4758_v36 = vld [vmem:[%s4878_s19 + $0x3c] sm:$0xff]  }
  0x4e   : > { %v1542_v47 = vsel %vm4921_vm5, %v1537_v38, %v1541_v23  ;;  %v2082_v50 = vrot.slane %v2080_v40, 4  ;;  %v1561_v54 = vrot.slane %v1560_v42, 4  ;;  %v2564_v60 = vshrl.u32 %v4334_v46, 16  ;;  %v385_v22 = vld [vmem:[%s4878_s19 + $0x30] sm:$0xf] }
  0x4f   : > { %v4186_v52 = vcombine.low %v1532_v33, %v1542_v47  ;;  %v2088_v55 = vsel %vm4880_vm2, %v4251_v43, %v2087_v44  ;;  %v2089_v56 = vrot.slane %v2087_v44, 4  ;;  %v1556_v57 = vsel %vm4921_vm5, %v1551_v48, %v1555_v30  ;;  %v387_v44 = vld [vmem:[%s4878_s19 + $0x38] sm:$0x1] }
  0x50   : > { %1364 = vrot.lane.b32.xlu1 %v4756_v37, %s4826_s20  ;;  %v2084_v58 = vsel %vm4880_vm2, %v2082_v50, %v2083_v41  ;;  %v2567_v61 = vshll.u32 %v4334_v46, 16  ;;  %v1566_v63 = vsel %vm4921_vm5, %v1561_v54, %v1565_v35  ;;  %v2573_v3 = vshll.u32 %v4335_v51, 16  ;;  %v386_v35 = vld [vmem:[%s4878_s19 + $0x34] sm:$0xf]  ;;  %v4401_v50 = vld [vmem:[%s4878_s19 + $0x3c] sm:$0xe] }
  0x51   : > { %1907 = vrot.lane.b32.xlu0 %v4186_v52, %s4830_s24  ;;  %v4266_v1 = vcombine.low %v2081_v49, %v2084_v58  ;;  %v2091_v2 = vsel %vm4880_vm2, %v2089_v56, %v2090_v45  ;;  %v4187_v6 = vcombine.low %v1556_v57, %v1566_v63  ;;  %v2566_v8 = vrot.slane %v2564_v60, 4  ;;  %v4402_v56 = vld [vmem:[%s4878_s19 + $0x40] sm:$0xf]  ;;  %v4403_v57 = vld [vmem:[%s4878_s19 + $0x44] sm:$0x1] }
  0x52   : > { %v4267_v7 = vcombine.low %v2088_v55, %v2091_v2  ;;  %v2569_v9 = vrot.slane %v2567_v61, 5  ;;  %v2575_v12 = vrot.slane %v2573_v3, 5  ;;  %v2577_v13 = vshrl.u32 %v4335_v51, 16 }
  0x53   : > { %v2583_v14 = vshll.u32 %v4336_v59, 16  ;;  %v2588_v15 = vshrl.u32 %v4337_v62, 16  ;;  %v2591_v19 = vshll.u32 %v4337_v62, 16  ;;  %v2597_v20 = vshll.u32 %v4338_v4, 16  ;;  %v388_v62 = vld [vmem:[%s4878_s19 + $0x3c] sm:$0xf] }
  0x54   : > { %1909 = vrot.lane.b32.xlu1 %v4187_v6, %s4830_s24  ;;  %v2570_v18 = vor.u32 %v2569_v9, %v2566_v8  ;;  %v2601_v21 = vshrl.u32 %v4338_v4, 16  ;;  %v2579_v23 = vrot.slane %v2577_v13, 4  ;;  %v2607_v26 = vshll.u32 %v4339_v5, 16  ;;  %v389_v4 = vld [vmem:[%s4878_s19 + $0x40] sm:$0xf] }
  0x55   : > { %2228 = vrot.lane.b32.xlu0 %v4266_v1, %s4827_s21  ;;  %v2585_v24 = vrot.slane %v2583_v14, 5  ;;  %v2590_v25 = vrot.slane %v2588_v15, 4  ;;  %v2593_v28 = vrot.slane %v2591_v19, 5  ;;  %v2599_v29 = vrot.slane %v2597_v20, 5  ;;  %v390_v9 = vld [vmem:[%s4878_s19 + $0x44] sm:$0x1] }
  0x56   : > { %v2571_v27 = vrot.slane %v2570_v18, 4  ;;  %v2603_v30 = vrot.slane %v2601_v21, 4  ;;  %v2580_v31 = vor.u32 %v2579_v23, %v2575_v12  ;;  %v2609_v32 = vrot.slane %v2607_v26, 5  ;;  %v933_v14 = vld [vmem:[%s4878_s19 + $0x30] sm:$0xe] }
  0x57   : > { %v4442_v33 = vrot.slane %v4398_v10, 9  ;;  %v3124_v34 = vrot.slane %v4399_v11, 5  ;;  %v2594_v38 = vor.u32 %v2593_v28, %v2590_v25  ;;  %v3127_v40 = vrot.slane %v4400_v16, 5  ;;  %v934_v19 = vld [vmem:[%s4878_s19 + $0x34] sm:$0xf] }
  0x58   : > { %2230 = vrot.lane.b32.xlu1 %v4267_v7, %s4827_s21  ;;  %v2576_v37 = vsel %vm4921_vm5, %v2571_v27, %v2575_v12  ;;  %v2604_v39 = vor.u32 %v2603_v30, %v2599_v29  ;;  %v2581_v41 = vrot.slane %v2580_v31, 4  ;;  %v521_v45 = vshrl.u32 %v385_v22, 16  ;;  %v935_v20 = vld [vmem:[%s4878_s19 + $0x38] sm:$0x1] }
  0x59   : > { %2406 = vrot.lane.b32.xlu0 %v4757_v17, %s4831_s25  ;;  %v3125_v42 = vsel %vm4880_vm2, %v4442_v33, %v3124_v34  ;;  %v3126_v43 = vrot.slane %v3124_v34, 4  ;;  %v2595_v46 = vrot.slane %v2594_v38, 4  ;;  %v524_v48 = vshll.u32 %v385_v22, 16  ;;  %v937_v34 = vld [vmem:[%s4878_s19 + $0x40] sm:$0xf] }
  0x5a   : > { %v2605_v47 = vrot.slane %v2604_v39, 4  ;;  %v530_v49 = vshll.u32 %v386_v35, 16  ;;  %v2586_v51 = vsel %vm4921_vm5, %v2581_v41, %v2585_v24  ;;  %v523_v54 = vrot.slane %v521_v45, 4 }
  0x5b   : > { %v3128_v52 = vsel %vm4880_vm2, %v3126_v43, %v3127_v40  ;;  %v534_v55 = vshrl.u32 %v386_v35, 16  ;;  %v4378_v58 = vcombine.low %v2576_v37, %v2586_v51  ;;  %v2600_v59 = vsel %vm4921_vm5, %v2595_v46, %v2599_v29  ;;  %v936_v29 = vld [vmem:[%s4878_s19 + $0x3c] sm:$0xe]  ;;  %v938_v35 = vld [vmem:[%s4878_s19 + $0x44] sm:$0x1] }
  0x5c   : > { %2408 = vrot.lane.b32.xlu1 %v4758_v36, %s4831_s25  ;;  %v2610_v60 = vsel %vm4921_vm5, %v2605_v47, %v2609_v32  ;;  %v4458_v61 = vcombine.low %v3125_v42, %v3128_v52  ;;  %v526_v1 = vrot.slane %v524_v48, 5  ;;  %v532_v2 = vrot.slane %v530_v49, 5  ;;  %v4148_v36 = vld [vmem:[%s4878_s19 + $0x3c] sm:$0xf]  ;;  %v4149_v48 = vld [vmem:[%s4878_s19 + $0x40] sm:$0xf] }
  0x5d   : > { %v4379_v63 = vcombine.low %v2600_v59, %v2610_v60  ;;  %v536_v3 = vrot.slane %v534_v55, 4  ;;  %2951 = vrot.lane.b32.xlu0 %v4378_v58, %s4832_s26  ;;  %v540_v5 = vshll.u32 %v387_v44, 16  ;;  %v4443_v6 = vrot.slane %v4401_v50, 9  ;;  %v4151_v60 = vld [vmem:[%s4878_s19 + $0x48] sm:$0xf] }
  0x5e   : > { %v3131_v7 = vrot.slane %v4402_v56, 5  ;;  %v3134_v8 = vrot.slane %v4403_v57, 5  ;;  %v527_v10 = vor.u32 %v526_v1, %v523_v54  ;;  %v545_v12 = vshrl.u32 %v388_v62, 16  ;;  %v4150_v54 = vld [vmem:[%s4878_s19 + $0x44] sm:$0x1] }
  0x5f   : > { %v537_v11 = vor.u32 %v536_v3, %v532_v2  ;;  %v548_v13 = vshll.u32 %v388_v62, 16  ;;  %v542_v15 = vrot.slane %v540_v5, 5  ;;  %v554_v18 = vshll.u32 %v389_v4, 16 }
  0x60   : > { %2953 = vrot.lane.b32.xlu1 %v4379_v63, %s4832_s26  ;;  %v3132_v16 = vsel %vm4880_vm2, %v4443_v6, %v3131_v7  ;;  %v3133_v17 = vrot.slane %v3131_v7, 4  ;;  %v528_v21 = vrot.slane %v527_v10, 4  ;;  %v547_v23 = vrot.slane %v545_v12, 4  ;;  %v4153_v7 = vld [vmem:[%s4878_s19 + $0x50] sm:$0x1] }
  0x61   : > { %v538_v22 = vrot.slane %v537_v11, 4  ;;  %v550_v24 = vrot.slane %v548_v13, 5  ;;  %3272 = vrot.lane.b32.xlu0 %v4458_v61, %s4833_s27  ;;  %v556_v26 = vrot.slane %v554_v18, 5  ;;  %v558_v27 = vshrl.u32 %v389_v4, 16  ;;  %v4759_v11 = vld [vmem:[%s4878_s19 + $0x3c] sm:$0xff]  }
  0x62   : > { %v3135_v25 = vsel %vm4880_vm2, %v3133_v17, %v3134_v8  ;;  %v564_v28 = vshll.u32 %v390_v9, 16  ;;  %v533_v30 = vsel %vm4921_vm5, %v528_v21, %v532_v2  ;;  %v4060_v40 = vrot.slane %v933_v14, 9  ;;  %v4152_v2 = vld [vmem:[%s4878_s19 + $0x4c] sm:$0xf]  ;;  %v4212_v8 = vld [vmem:[%s4878_s19 + $0x3c] sm:$0xe] }
  0x63   : > { %v543_v31 = vsel %vm4921_vm5, %v538_v22, %v542_v15  ;;  %v4459_v32 = vcombine.low %v3132_v16, %v3135_v25  ;;  %v551_v33 = vor.u32 %v550_v24, %v547_v23  ;;  %v560_v38 = vrot.slane %v558_v27, 4  ;;  %v4213_v14 = vld [vmem:[%s4878_s19 + $0x40] sm:$0xf]  ;;  %v4214_v15 = vld [vmem:[%s4878_s19 + $0x44] sm:$0x1] }
  0x64   : > { %v4044_v37 = vcombine.low %v533_v30, %v543_v31  ;;  %v566_v39 = vrot.slane %v564_v28, 5  ;;  %v1050_v42 = vrot.slane %v934_v19, 5  ;;  %v1053_v43 = vrot.slane %v935_v20, 5  ;;  %v4215_v20 = vld [vmem:[%s4878_s19 + $0x48] sm:$0xe] }
  0x65   : > { %v552_v41 = vrot.slane %v551_v33, 4  ;;  %v4061_v44 = vrot.slane %v936_v29, 9  ;;  %3274 = vrot.lane.b32.xlu0 %v4459_v32, %s4833_s27  ;;  %v561_v45 = vor.u32 %v560_v38, %v556_v26  ;;  %v1057_v46 = vrot.slane %v937_v34, 5  ;;  %v4216_v25 = vld [vmem:[%s4878_s19 + $0x4c] sm:$0xf] }
  0x66   : > { %864 = vrot.lane.b32.xlu1 %v4044_v37, %s4829_s23  ;;  %v1060_v47 = vrot.slane %v938_v35, 5  ;;  %v1568_v49 = vshrl.u32 %v4148_v36, 16  ;;  %v1051_v51 = vsel %vm4880_vm2, %v4060_v40, %v1050_v42  ;;  %v1052_v52 = vrot.slane %v1050_v42, 4  ;;  %v4217_v30 = vld [vmem:[%s4878_s19 + $0x50] sm:$0x1] }
  0x67   : > { %v557_v50 = vsel %vm4921_vm5, %v552_v41, %v556_v26  ;;  %v1571_v55 = vshll.u32 %v4148_v36, 16  ;;  %v562_v56 = vrot.slane %v561_v45, 4  ;;  %v1058_v57 = vsel %vm4880_vm2, %v4061_v44, %v1057_v46  ;;  %v4340_v44 = vld [vmem:[%s4878_s19 + $0x48] sm:$0xf] }
  0x68   : > { %v1059_v58 = vrot.slane %v1057_v46, 4  ;;  %v1570_v59 = vrot.slane %v1568_v49, 4  ;;  %v1054_v61 = vsel %vm4880_vm2, %v1052_v52, %v1053_v43  ;;  %v1577_v63 = vshll.u32 %v4149_v48, 16  ;;  %v4341_v49 = vld [vmem:[%s4878_s19 + $0x4c] sm:$0xf] }
  0x69   : > { %v1573_v62 = vrot.slane %v1571_v55, 5  ;;  %v1581_v1 = vshrl.u32 %v4149_v48, 16  ;;  %v567_v3 = vsel %vm4921_vm5, %v562_v56, %v566_v39  ;;  %v4076_v4 = vcombine.low %v1051_v51, %v1054_v61  ;;  %v4760_v39 = vld [vmem:[%s4878_s19 + $0x48] sm:$0xff]   ;;  %v4343_v56 = vld [vmem:[%s4878_s19 + $0x54] sm:$0xf] }
  0x6a   : > { %v1061_v5 = vsel %vm4880_vm2, %v1059_v58, %v1060_v47  ;;  %v1587_v6 = vshll.u32 %v4150_v54, 16  ;;  %v4045_v9 = vcombine.low %v557_v50, %v567_v3  ;;  %v1579_v13 = vrot.slane %v1577_v63, 5  ;;  %v4342_v50 = vld [vmem:[%s4878_s19 + $0x50] sm:$0x1] }
  0x6b   : > { %v4077_v10 = vcombine.low %v1058_v57, %v1061_v5  ;;  %v1574_v12 = vor.u32 %v1573_v62, %v1570_v59  ;;  %1188 = vrot.lane.b32.xlu0 %v4076_v4, %s4828_s22  ;;  %v1583_v16 = vrot.slane %v1581_v1, 4  ;;  %v1592_v18 = vshrl.u32 %v4151_v60, 16 }
  0x6c   : > { %v1589_v17 = vrot.slane %v1587_v6, 5  ;;  %v1595_v19 = vshll.u32 %v4151_v60, 16  ;;  %866 = vrot.lane.b32.xlu1 %v4045_v9, %s4829_s23  ;;  %v1601_v22 = vshll.u32 %v4152_v2, 16  ;;  %v1605_v23 = vshrl.u32 %v4152_v2, 16  ;;  %v4344_v2 = vld [vmem:[%s4878_s19 + $0x58] sm:$0xf] }
  0x6d   : > { %v1575_v21 = vrot.slane %v1574_v12, 4  ;;  %v1611_v24 = vshll.u32 %v4153_v7, 16  ;;  %v1584_v26 = vor.u32 %v1583_v16, %v1579_v13  ;;  %v1594_v27 = vrot.slane %v1592_v18, 4  ;;  %v4345_v7 = vld [vmem:[%s4878_s19 + $0x5c] sm:$0x1] }
  0x6e   : > { %v1597_v28 = vrot.slane %v1595_v19, 5  ;;  %v4252_v29 = vrot.slane %v4212_v8, 9  ;;  %v1603_v32 = vrot.slane %v1601_v22, 5  ;;  %v1607_v33 = vrot.slane %v1605_v23, 4  ;;  %v4404_v12 = vld [vmem:[%s4878_s19 + $0x48] sm:$0xe] }
  0x6f   : > { %v1580_v31 = vsel %vm4921_vm5, %v1575_v21, %v1579_v13  ;;  %v1613_v34 = vrot.slane %v1611_v24, 5  ;;  %1366 = vrot.lane.b32.xlu0 %v4759_v11, %s4826_s20  ;;  %v1585_v35 = vrot.slane %v1584_v26, 4  ;;  %v2094_v37 = vrot.slane %v4213_v14, 5  ;;  %v4761_v13 = vld [vmem:[%s4878_s19 + $0x48] sm:$0xff]   ;;  %v4406_v23 = vld [vmem:[%s4878_s19 + $0x50] sm:$0x1] }
  0x70   : > { %v1598_v36 = vor.u32 %v1597_v28, %v1594_v27  ;;  %v2097_v38 = vrot.slane %v4214_v15, 5  ;;  %1190 = vrot.lane.b32.xlu1 %v4077_v10, %s4828_s22  ;;  %v1608_v40 = vor.u32 %v1607_v33, %v1603_v32  ;;  %v4253_v41 = vrot.slane %v4215_v20, 9  ;;  %v4405_v18 = vld [vmem:[%s4878_s19 + $0x4c] sm:$0xf]  ;;  %v391_v28 = vld [vmem:[%s4878_s19 + $0x48] sm:$0xf] }
  0x71   : > { %v2101_v42 = vrot.slane %v4216_v25, 5  ;;  %v2104_v43 = vrot.slane %v4217_v30, 5  ;;  %v1590_v45 = vsel %vm4921_vm5, %v1585_v35, %v1589_v17  ;;  %v2095_v47 = vsel %vm4880_vm2, %v4252_v29, %v2094_v37  ;;  %v392_v33 = vld [vmem:[%s4878_s19 + $0x4c] sm:$0xf] }
  0x72   : > { %v1599_v46 = vrot.slane %v1598_v36, 4  ;;  %v2096_v48 = vrot.slane %v2094_v37, 4  ;;  %v4188_v51 = vcombine.low %v1580_v31, %v1590_v45  ;;  %v1609_v52 = vrot.slane %v1608_v40, 4  ;;  %v4408_v45 = vld [vmem:[%s4878_s19 + $0x58] sm:$0xf] }
  0x73   : > { %v2102_v54 = vsel %vm4880_vm2, %v4253_v41, %v2101_v42  ;;  %v2103_v55 = vrot.slane %v2101_v42, 4  ;;  %v2612_v59 = vshrl.u32 %v4340_v44, 16  ;;  %v2615_v60 = vshll.u32 %v4340_v44, 16  ;;  %v393_v42 = vld [vmem:[%s4878_s19 + $0x50] sm:$0x1] }
  0x74   : > { %v1604_v57 = vsel %vm4921_vm5, %v1599_v46, %v1603_v32  ;;  %v2098_v58 = vsel %vm4880_vm2, %v2096_v48, %v2097_v38  ;;  %1368 = vrot.lane.b32.xlu1 %v4760_v39, %s4826_s20  ;;  %1911 = vrot.lane.b32.xlu0 %v4188_v51, %s4830_s24  ;;  %v1614_v61 = vsel %vm4921_vm5, %v1609_v52, %v1613_v34  ;;  %v2621_v1 = vshll.u32 %v4341_v49, 16  ;;  %v4762_v38 = vld [vmem:[%s4878_s19 + $0x54] sm:$0xff]  }
  0x75   : > { %v4268_v62 = vcombine.low %v2095_v47, %v2098_v58  ;;  %v2105_v63 = vsel %vm4880_vm2, %v2103_v55, %v2104_v43  ;;  %v4189_v3 = vcombine.low %v1604_v57, %v1614_v61  ;;  %v2614_v5 = vrot.slane %v2612_v59, 4  ;;  %v4407_v44 = vld [vmem:[%s4878_s19 + $0x54] sm:$0xe] }
  0x76   : > { %v4269_v4 = vcombine.low %v2102_v54, %v2105_v63  ;;  %v2617_v6 = vrot.slane %v2615_v60, 5  ;;  %v2623_v8 = vrot.slane %v2621_v1, 5  ;;  %v2625_v9 = vshrl.u32 %v4341_v49, 16  ;;  %v394_v60 = vld [vmem:[%s4878_s19 + $0x54] sm:$0xf] }
  0x77   : > { %v2631_v10 = vshll.u32 %v4342_v50, 16  ;;  %v2636_v11 = vshrl.u32 %v4343_v56, 16  ;;  %v2639_v15 = vshll.u32 %v4343_v56, 16  ;;  %v2645_v16 = vshll.u32 %v4344_v2, 16  ;;  %v4409_v50 = vld [vmem:[%s4878_s19 + $0x5c] sm:$0x1] }
  0x78   : > { %v2618_v14 = vor.u32 %v2617_v6, %v2614_v5  ;;  %v2649_v17 = vshrl.u32 %v4344_v2, 16  ;;  %1913 = vrot.lane.b32.xlu1 %v4189_v3, %s4830_s24  ;;  %2232 = vrot.lane.b32.xlu0 %v4268_v62, %s4827_s21  ;;  %v2627_v19 = vrot.slane %v2625_v9, 4  ;;  %v2655_v22 = vshll.u32 %v4345_v7, 16  ;;  %v395_v2 = vld [vmem:[%s4878_s19 + $0x58] sm:$0xf] }
  0x79   : > { %v2633_v20 = vrot.slane %v2631_v10, 5  ;;  %v2638_v21 = vrot.slane %v2636_v11, 4  ;;  %v2641_v25 = vrot.slane %v2639_v15, 5  ;;  %v2647_v26 = vrot.slane %v2645_v16, 5  ;;  %v396_v9 = vld [vmem:[%s4878_s19 + $0x5c] sm:$0x1] }
  0x7a   : > { %v2619_v24 = vrot.slane %v2618_v14, 4  ;;  %v2651_v27 = vrot.slane %v2649_v17, 4  ;;  %v2628_v29 = vor.u32 %v2627_v19, %v2623_v8  ;;  %v2657_v30 = vrot.slane %v2655_v22, 5  ;;  %v940_v17 = vld [vmem:[%s4878_s19 + $0x4c] sm:$0xf] }
  0x7b   : > { %v4444_v31 = vrot.slane %v4404_v12, 9  ;;  %v3138_v32 = vrot.slane %v4405_v18, 5  ;;  %v2642_v35 = vor.u32 %v2641_v25, %v2638_v21  ;;  %v3141_v37 = vrot.slane %v4406_v23, 5  ;;  %v939_v12 = vld [vmem:[%s4878_s19 + $0x48] sm:$0xe] }
  0x7c   : > { %v2624_v34 = vsel %vm4921_vm5, %v2619_v24, %v2623_v8  ;;  %v2652_v36 = vor.u32 %v2651_v27, %v2647_v26  ;;  %2234 = vrot.lane.b32.xlu1 %v4269_v4, %s4827_s21  ;;  %2410 = vrot.lane.b32.xlu0 %v4761_v13, %s4831_s25  ;;  %v2629_v39 = vrot.slane %v2628_v29, 4  ;;  %v569_v43 = vshrl.u32 %v391_v28, 16  ;;  %v941_v18 = vld [vmem:[%s4878_s19 + $0x50] sm:$0x1]  ;;  %v942_v19 = vld [vmem:[%s4878_s19 + $0x54] sm:$0xe] }
  0x7d   : > { %v3139_v40 = vsel %vm4880_vm2, %v4444_v31, %v3138_v32  ;;  %v3140_v41 = vrot.slane %v3138_v32, 4  ;;  %v2643_v46 = vrot.slane %v2642_v35, 4  ;;  %v572_v48 = vshll.u32 %v391_v28, 16  ;;  %v943_v32 = vld [vmem:[%s4878_s19 + $0x58] sm:$0xf] }
  0x7e   : > { %v2653_v47 = vrot.slane %v2652_v36, 4  ;;  %v578_v49 = vshll.u32 %v392_v33, 16  ;;  %v2634_v51 = vsel %vm4921_vm5, %v2629_v39, %v2633_v20  ;;  %v571_v54 = vrot.slane %v569_v43, 4  ;;  %v4155_v43 = vld [vmem:[%s4878_s19 + $0x58] sm:$0xf] }
  0x7f   : > { %v3142_v52 = vsel %vm4880_vm2, %v3140_v41, %v3141_v37  ;;  %v582_v55 = vshrl.u32 %v392_v33, 16  ;;  %v4380_v56 = vcombine.low %v2624_v34, %v2634_v51  ;;  %v2648_v57 = vsel %vm4921_vm5, %v2643_v46, %v2647_v26  ;;  %v944_v33 = vld [vmem:[%s4878_s19 + $0x5c] sm:$0x1]  ;;  %v4154_v34 = vld [vmem:[%s4878_s19 + $0x54] sm:$0xf] }
  0x80   : > { %v2658_v58 = vsel %vm4921_vm5, %v2653_v47, %v2657_v30  ;;  %v4460_v59 = vcombine.low %v3139_v40, %v3142_v52  ;;  %2412 = vrot.lane.b32.xlu1 %v4762_v38, %s4831_s25  ;;  %v574_v62 = vrot.slane %v572_v48, 5  ;;  %v580_v63 = vrot.slane %v578_v49, 5  ;;  %v4156_v47 = vld [vmem:[%s4878_s19 + $0x5c] sm:$0x1] }
  0x81   : > { %v4381_v61 = vcombine.low %v2648_v57, %v2658_v58  ;;  %v584_v1 = vrot.slane %v582_v55, 4  ;;  %2955 = vrot.lane.b32.xlu0 %v4380_v56, %s4832_s26  ;;  %v588_v3 = vshll.u32 %v393_v42, 16  ;;  %v4445_v4 = vrot.slane %v4407_v44, 9 }
  0x82   : > { %v3145_v5 = vrot.slane %v4408_v45, 5  ;;  %v3148_v6 = vrot.slane %v4409_v50, 5  ;;  %v575_v7 = vor.u32 %v574_v62, %v571_v54  ;;  %v593_v10 = vshrl.u32 %v394_v60, 16 }
  0x83   : > { %v585_v8 = vor.u32 %v584_v1, %v580_v63  ;;  %v596_v11 = vshll.u32 %v394_v60, 16  ;;  %v590_v13 = vrot.slane %v588_v3, 5  ;;  %v602_v16 = vshll.u32 %v395_v2, 16 }
  0x84   : > { %v3146_v14 = vsel %vm4880_vm2, %v4445_v4, %v3145_v5  ;;  %v3147_v15 = vrot.slane %v3145_v5, 4  ;;  %2957 = vrot.lane.b32.xlu1 %v4381_v61, %s4832_s26  ;;  %v576_v20 = vrot.slane %v575_v7, 4  ;;  %v595_v22 = vrot.slane %v593_v10, 4  ;;  %v4159_v7 = vld [vmem:[%s4878_s19 + $0x68] sm:$0x1] }
  0x85   : > { %v586_v21 = vrot.slane %v585_v8, 4  ;;  %v598_v23 = vrot.slane %v596_v11, 5  ;;  %3276 = vrot.lane.b32.xlu0 %v4460_v59, %s4833_s27  ;;  %v604_v25 = vrot.slane %v602_v16, 5  ;;  %v606_v26 = vshrl.u32 %v395_v2, 16  ;;  %v5232_v54 = vpop.permute.xlu1 %1360  ;;  %v4157_v59 = vld [vmem:[%s4878_s19 + $0x60] sm:$0xf]  ;;  %v5237_v60 = vpop.permute.xlu0 %1358 }
  0x86   : > { %v3149_v24 = vsel %vm4880_vm2, %v3147_v15, %v3148_v6  ;;  %v612_v27 = vshll.u32 %v396_v9, 16  ;;  %v581_v28 = vsel %vm4921_vm5, %v576_v20, %v580_v63  ;;  %v4062_v38 = vrot.slane %v939_v12, 9  ;;  %v4158_v2 = vld [vmem:[%s4878_s19 + $0x64] sm:$0xf]  ;;  %v4218_v8 = vld [vmem:[%s4878_s19 + $0x54] sm:$0xe] }
  0x87   : > { %v591_v29 = vsel %vm4921_vm5, %v586_v21, %v590_v13  ;;  %v4461_v30 = vcombine.low %v3146_v14, %v3149_v24  ;;  %v599_v31 = vor.u32 %v598_v23, %v595_v22  ;;  %v608_v36 = vrot.slane %v606_v26, 4  ;;  %v4763_v11 = vld [vmem:[%s4878_s19 + $0x54] sm:$0xff]   ;;  %v4220_v15 = vld [vmem:[%s4878_s19 + $0x5c] sm:$0x1]  ;;  %v4221_v20 = vld [vmem:[%s4878_s19 + $0x60] sm:$0xe] }
  0x88   : > { %v4046_v35 = vcombine.low %v581_v28, %v591_v29  ;;  %v614_v37 = vrot.slane %v612_v27, 5  ;;  %v1064_v40 = vrot.slane %v940_v17, 5  ;;  %v1067_v41 = vrot.slane %v941_v18, 5  ;;  %v4219_v14 = vld [vmem:[%s4878_s19 + $0x58] sm:$0xf] }
  0x89   : > { %v600_v39 = vrot.slane %v599_v31, 4  ;;  %v4063_v42 = vrot.slane %v942_v19, 9  ;;  %3278 = vrot.lane.b32.xlu0 %v4461_v30, %s4833_s27  ;;  %v609_v44 = vor.u32 %v608_v36, %v604_v25  ;;  %v1071_v45 = vrot.slane %v943_v32, 5  ;;  %v4223_v31 = vld [vmem:[%s4878_s19 + $0x68] sm:$0x1] }
  0x8a   : > { %868 = vrot.lane.b32.xlu1 %v4046_v35, %s4829_s23  ;;  %v1074_v46 = vrot.slane %v944_v33, 5  ;;  %v1616_v48 = vshrl.u32 %v4154_v34, 16  ;;  %v1065_v50 = vsel %vm4880_vm2, %v4062_v38, %v1064_v40  ;;  %v1066_v51 = vrot.slane %v1064_v40, 4 }
  0x8b   : > { %v605_v49 = vsel %vm4921_vm5, %v600_v39, %v604_v25  ;;  %v1619_v52 = vshll.u32 %v4154_v34, 16  ;;  %v610_v55 = vrot.slane %v609_v44, 4  ;;  %v1072_v56 = vsel %vm4880_vm2, %v4063_v42, %v1071_v45  ;;  %v4222_v25 = vld [vmem:[%s4878_s19 + $0x64] sm:$0xf] }
  0x8c   : > { %v1073_v57 = vrot.slane %v1071_v45, 4  ;;  %v1618_v58 = vrot.slane %v1616_v48, 4  ;;  %v1068_v61 = vsel %vm4880_vm2, %v1066_v51, %v1067_v41  ;;  %v1625_v63 = vshll.u32 %v4155_v43, 16  ;;  %v4346_v41 = vld [vmem:[%s4878_s19 + $0x60] sm:$0xf] }
  0x8d   : > { %v1621_v62 = vrot.slane %v1619_v52, 5  ;;  %v1629_v1 = vshrl.u32 %v4155_v43, 16  ;;  %v615_v3 = vsel %vm4921_vm5, %v610_v55, %v614_v37  ;;  %v4078_v4 = vcombine.low %v1065_v50, %v1068_v61  ;;  %v5258_v32 = vpop.permute.xlu0 %2224  ;;  %v4764_v42 = vld [vmem:[%s4878_s19 + $0x60] sm:$0xff]  }
  0x8e   : > { %v1075_v5 = vsel %vm4880_vm2, %v1073_v57, %v1074_v46  ;;  %v1635_v6 = vshll.u32 %v4156_v47, 16  ;;  %v4047_v9 = vcombine.low %v605_v49, %v615_v3  ;;  %v1627_v13 = vrot.slane %v1625_v63, 5  ;;  %v5255_v26 = vpop.permute.xlu1 %1180  ;;  %v4347_v47 = vld [vmem:[%s4878_s19 + $0x64] sm:$0xf] }
  0x8f   : > { %v4079_v10 = vcombine.low %v1072_v56, %v1075_v5  ;;  %v1622_v12 = vor.u32 %v1621_v62, %v1618_v58  ;;  %1192 = vrot.lane.b32.xlu0 %v4078_v4, %s4828_s22  ;;  %v1631_v16 = vrot.slane %v1629_v1, 4  ;;  %v1640_v18 = vshrl.u32 %v4157_v59, 16  ;;  %v4348_v62 = vld [vmem:[%s4878_s19 + $0x68] sm:$0x1] }
  0x90   : > { %v1637_v17 = vrot.slane %v1635_v6, 5  ;;  %v1643_v19 = vshll.u32 %v4157_v59, 16  ;;  %870 = vrot.lane.b32.xlu1 %v4047_v9, %s4829_s23  ;;  %v1649_v22 = vshll.u32 %v4158_v2, 16  ;;  %v1653_v23 = vshrl.u32 %v4158_v2, 16  ;;  %v4349_v2 = vld [vmem:[%s4878_s19 + $0x6c] sm:$0xf] }
  0x91   : > { %v1623_v21 = vrot.slane %v1622_v12, 4  ;;  %v1659_v24 = vshll.u32 %v4159_v7, 16  ;;  %v1632_v27 = vor.u32 %v1631_v16, %v1627_v13  ;;  %v1642_v28 = vrot.slane %v1640_v18, 4  ;;  %v4772_v16 = vld [vmem:[%s4878_s19 + $0x18] sm:$0xff]   ;;  %v4780_v18 = vld [vmem:[%s4878_s19 + $0x30] sm:$0xff]  }
  0x92   : > { %v1645_v29 = vrot.slane %v1643_v19, 5  ;;  %v4254_v30 = vrot.slane %v4218_v8, 9  ;;  %v1651_v34 = vrot.slane %v1649_v22, 5  ;;  %v1655_v35 = vrot.slane %v1653_v23, 4  ;;  %v5275_v58 = vpop.permute.xlu1 %1182  ;;  %v4350_v8 = vld [vmem:[%s4878_s19 + $0x70] sm:$0xf] }
  0x93   : > { %v1628_v33 = vsel %vm4921_vm5, %v1623_v21, %v1627_v13  ;;  %v1661_v36 = vrot.slane %v1659_v24, 5  ;;  %1370 = vrot.lane.b32.xlu0 %v4763_v11, %s4826_s20  ;;  %v1633_v37 = vrot.slane %v1632_v27, 4  ;;  %v2108_v39 = vrot.slane %v4219_v14, 5  ;;  %v4351_v13 = vld [vmem:[%s4878_s19 + $0x74] sm:$0x1]  ;;  %v4767_v14 = vld [vmem:[%s4878_s19] sm:$0xff]  }
  0x94   : > { %v1646_v38 = vor.u32 %v1645_v29, %v1642_v28  ;;  %v2111_v40 = vrot.slane %v4220_v15, 5  ;;  %1194 = vrot.lane.b32.xlu1 %v4079_v10, %s4828_s22  ;;  %v1656_v43 = vor.u32 %v1655_v35, %v1651_v34  ;;  %v4255_v44 = vrot.slane %v4221_v20, 9  ;;  %v4768_v15 = vld [vmem:[%s4878_s19 + $0xc] sm:$0xff]   ;;  %v4781_v19 = vld [vmem:[%s4878_s19 + $0x3c] sm:$0xff]   ;;  %357 = vst.msk [vmem:[#allocation2] sm:$0xff] %vm356_vm6, %v4767_v14  ;;  %359 = vst.msk [vmem:[#allocation2 + $0x10] sm:$0xff] %vm356_vm6, %v4772_v16 }
  0x95   : > { %v2115_v45 = vrot.slane %v4222_v25, 5  ;;  %v2118_v46 = vrot.slane %v4223_v31, 5  ;;  %v1638_v48 = vsel %vm4921_vm5, %v1633_v37, %v1637_v17  ;;  %v2109_v50 = vsel %vm4880_vm2, %v4254_v30, %v2108_v39  ;;  %v4774_v17 = vld [vmem:[%s4878_s19 + $0x24] sm:$0xff]   ;;  %v4410_v31 = vld [vmem:[%s4878_s19 + $0x60] sm:$0xe]  ;;  %358 = vst.msk [vmem:[#allocation2 + $0x8] sm:$0xff] %vm356_vm6, %v4768_v15 }
  0x96   : > { %v1647_v49 = vrot.slane %v1646_v38, 4  ;;  %v2110_v51 = vrot.slane %v2108_v39, 4  ;;  %v4190_v52 = vcombine.low %v1628_v33, %v1638_v48  ;;  %v1657_v55 = vrot.slane %v1656_v43, 4  ;;  %v4786_v20 = vld [vmem:[%s4878_s19 + $0x48] sm:$0xff]   ;;  %v4765_v21 = vld [vmem:[%s4878_s19 + $0x60] sm:$0xff]   ;;  %v4787_v33 = vld [vmem:[%s4878_s19 + $0x54] sm:$0xff]   ;;  %v5309_v39 = vpop.permute.xlu1 %2226 }
  0x97   : > { %v5273_v56 = vsel %vm4880_vm2, %v4255_v44, %v2115_v45  ;;  %v2117_v57 = vrot.slane %v2115_v45, 4  ;;  %v2660_v63 = vshrl.u32 %v4346_v41, 16  ;;  %v2663_v1 = vshll.u32 %v4346_v41, 16  ;;  %v4411_v38 = vld [vmem:[%s4878_s19 + $0x64] sm:$0xf]  ;;  %360 = vst.msk [vmem:[#allocation2 + $0x18] sm:$0xff] %vm356_vm6, %v4774_v17 }
  0x98   : > { %v1652_v59 = vsel %vm4921_vm5, %v1647_v49, %v1651_v34  ;;  %v2112_v61 = vsel %vm4880_vm2, %v2110_v51, %v2111_v40  ;;  %v5283_v3 = vpop.permute.xlu0 %856  ;;  %1372 = vrot.lane.b32.xlu1 %v4764_v42, %s4826_s20  ;;  %1915 = vrot.lane.b32.xlu0 %v4190_v52, %s4830_s24  ;;  %v1662_v4 = vsel %vm4921_vm5, %v1657_v55, %v1661_v36  ;;  %v2669_v7 = vshll.u32 %v4347_v47, 16  ;;  %v4412_v44 = vld [vmem:[%s4878_s19 + $0x68] sm:$0x1]  ;;  %v397_v48 = vld [vmem:[%s4878_s19 + $0x60] sm:$0xf] }
  0x99   : > { %v4270_v5 = vcombine.low %v2109_v50, %v2112_v61  ;;  %v2119_v6 = vsel %vm4880_vm2, %v2117_v57, %v2118_v46  ;;  %v4191_v9 = vcombine.low %v1652_v59, %v1662_v4  ;;  %v2662_v11 = vrot.slane %v2660_v63, 4  ;;  %v4766_v49 = vld [vmem:[%s4878_s19 + $0x6c] sm:$0xff]   ;;  %v398_v55 = vld [vmem:[%s4878_s19 + $0x64] sm:$0xf]  ;;  %361 = vst.msk [vmem:[#allocation2 + $0x20] sm:$0xff] %vm356_vm6, %v4780_v18  ;;  %362 = vst.msk [vmem:[#allocation2 + $0x28] sm:$0xff] %vm356_vm6, %v4781_v19 }
  0x9a   : > { %v4271_v10 = vcombine.low %v5273_v56, %v2119_v6  ;;  %v2665_v12 = vrot.slane %v2663_v1, 5  ;;  %v5302_v22 = vrot.slane %v2669_v7, 5  ;;  %v2673_v23 = vshrl.u32 %v4347_v47, 16  ;;  %363 = vst.msk [vmem:[#allocation2 + $0x30] sm:$0xff] %vm356_vm6, %v4786_v20  ;;  %364 = vst.msk [vmem:[#allocation2 + $0x38] sm:$0xff] %vm356_vm6, %v4787_v33 }
  0x9b   : > { %v2679_v24 = vshll.u32 %v4348_v62, 16  ;;  %v2684_v25 = vshrl.u32 %v4349_v2, 16  ;;  %v2687_v28 = vshll.u32 %v4349_v2, 16  ;;  %v2693_v29 = vshll.u32 %v4350_v8, 16  ;;  %905 = vst.msk [vmem:[#allocation2] sm:$0xff] %vm904_vm7, %v5283_v3 }
  0x9c   : > { %v2666_v27 = vor.u32 %v2665_v12, %v2662_v11  ;;  %v2697_v30 = vshrl.u32 %v4350_v8, 16  ;;  %1917 = vrot.lane.b32.xlu1 %v4191_v9, %s4830_s24  ;;  %2236 = vrot.lane.b32.xlu0 %v4270_v5, %s4827_s21  ;;  %v2675_v34 = vrot.slane %v2673_v23, 4  ;;  %v2703_v37 = vshll.u32 %v4351_v13, 16  ;;  %v399_v62 = vld [vmem:[%s4878_s19 + $0x68] sm:$0x1]  ;;  %1229 = vst.msk [vmem:[#allocation2] sm:$0xff] %vm1228_vm8, %v5255_v26 }
  0x9d   : > { %v2681_v35 = vrot.slane %v2679_v24, 5  ;;  %v2686_v36 = vrot.slane %v2684_v25, 4  ;;  %v2689_v41 = vrot.slane %v2687_v28, 5  ;;  %v2695_v42 = vrot.slane %v2693_v29, 5  ;;  %v859_v45 = vpop.permute.xlu0 %858  ;;  %v4413_v63 = vld [vmem:[%s4878_s19 + $0x6c] sm:$0xe] }
  0x9e   : > { %v2667_v40 = vrot.slane %v2666_v27, 4  ;;  %v2699_v43 = vrot.slane %v2697_v30, 4  ;;  %v2676_v46 = vor.u32 %v2675_v34, %v5302_v22  ;;  %v2705_v47 = vrot.slane %v2703_v37, 5  ;;  %906 = vst.msk [vmem:[#allocation2 + $0x8] sm:$0xff] %vm904_vm7, %v859_v45  ;;  %v4414_v6 = vld [vmem:[%s4878_s19 + $0x70] sm:$0xf] }
  0x9f   : > { %v2690_v51 = vor.u32 %v2689_v41, %v2686_v36  ;;  %v4446_v57 = vrot.slane %v4410_v31, 9  ;;  %v3152_v59 = vrot.slane %v4411_v38, 5  ;;  %v3155_v61 = vrot.slane %v4412_v44, 5  ;;  %1230 = vst.msk [vmem:[#allocation2 + $0x8] sm:$0xff] %vm1228_vm8, %v5275_v58  ;;  %v4415_v7 = vld [vmem:[%s4878_s19 + $0x74] sm:$0x1] }
  0xa0   : > { %v2672_v50 = vsel %vm4921_vm5, %v2667_v40, %v5302_v22  ;;  %v2700_v52 = vor.u32 %v2699_v43, %v2695_v42  ;;  %2238 = vrot.lane.b32.xlu1 %v4271_v10, %s4827_s21  ;;  %2414 = vrot.lane.b32.xlu0 %v4765_v21, %s4831_s25  ;;  %v2677_v56 = vrot.slane %v2676_v46, 4  ;;  %v617_v4 = vshrl.u32 %v397_v48, 16  ;;  %v400_v3 = vld [vmem:[%s4878_s19 + $0x6c] sm:$0xf]  ;;  %v401_v19 = vld [vmem:[%s4878_s19 + $0x70] sm:$0xf] }
  0xa1   : > { %v2691_v1 = vrot.slane %v2690_v51, 4  ;;  %v620_v5 = vshll.u32 %v397_v48, 16  ;;  %v3153_v9 = vsel %vm4880_vm2, %v4446_v57, %v3152_v59  ;;  %v3154_v10 = vrot.slane %v3152_v59, 4  ;;  %v5345_v12 = vpop.permute.xlu1 %1905  ;;  %v402_v33 = vld [vmem:[%s4878_s19 + $0x74] sm:$0x1]  ;;  %1408 = vst.msk [vmem:[#allocation2 + $0x8] sm:$0xff] %vm1406_vm9, %v5232_v54 }
  0xa2   : > { %v2701_v2 = vrot.slane %v2700_v52, 4  ;;  %v2682_v8 = vsel %vm4921_vm5, %v2677_v56, %v2681_v35  ;;  %v626_v11 = vshll.u32 %v398_v55, 16  ;;  %v619_v14 = vrot.slane %v617_v4, 4  ;;  %v945_v41 = vld [vmem:[%s4878_s19 + $0x60] sm:$0xe]  ;;  %1407 = vst.msk [vmem:[#allocation2] sm:$0xff] %vm1406_vm9, %v5237_v60 }
  0xa3   : > { %v4382_v26 = vcombine.low %v2672_v50, %v2682_v8  ;;  %v2696_v13 = vsel %vm4921_vm5, %v2691_v1, %v2695_v42  ;;  %v3156_v16 = vsel %vm4880_vm2, %v3154_v10, %v3155_v61  ;;  %v622_v17 = vrot.slane %v620_v5, 5  ;;  %v946_v48 = vld [vmem:[%s4878_s19 + $0x64] sm:$0xf]  ;;  %v947_v52 = vld [vmem:[%s4878_s19 + $0x68] sm:$0x1]  ;;  %1953 = vst.msk [vmem:[#allocation2 + $0x8] sm:$0xff] %vm1951_vm10, %v5345_v12 }
  0xa4   : > { %v2706_v58 = vsel %vm4921_vm5, %v2701_v2, %v2705_v47  ;;  %2416 = vrot.lane.b32.xlu1 %v4766_v49, %s4831_s25  ;;  %v628_v18 = vrot.slane %v626_v11, 5  ;;  %v4462_v21 = vcombine.low %v3153_v9, %v3156_v16  ;;  %v630_v22 = vshrl.u32 %v398_v55, 16  ;;  %v948_v61 = vld [vmem:[%s4878_s19 + $0x6c] sm:$0xe]  ;;  %v950_v4 = vld [vmem:[%s4878_s19 + $0x74] sm:$0x1] }
  0xa5   : > { %v4383_v15 = vcombine.low %v2696_v13, %v2706_v58  ;;  %v1904_v20 = vpop.permute.xlu0 %1903  ;;  %2959 = vrot.lane.b32.xlu0 %v4382_v26, %s4832_s26  ;;  %v636_v23 = vshll.u32 %v399_v62, 16  ;;  %v4447_v24 = vrot.slane %v4413_v63, 9  ;;  %v623_v25 = vor.u32 %v622_v17, %v619_v14  ;;  %v5363_v43 = vpop.permute.xlu1 %2404  ;;  %v949_v62 = vld [vmem:[%s4878_s19 + $0x70] sm:$0xf]  ;;  %v4160_v26 = vld [vmem:[%s4878_s19 + $0x6c] sm:$0xf] }
  0xa6   : > { %v3159_v27 = vrot.slane %v4414_v6, 5  ;;  %v3162_v28 = vrot.slane %v4415_v7, 5  ;;  %v641_v29 = vshrl.u32 %v400_v3, 16  ;;  %v632_v30 = vrot.slane %v630_v22, 4  ;;  %1952 = vst.msk [vmem:[#allocation2] sm:$0xff] %vm1951_vm10, %v1904_v20  ;;  %v4792_v17 = vld [vmem:[%s4878_s19 + $0x60] sm:$0xff]  }
  0xa7   : > { %v638_v31 = vrot.slane %v636_v23, 5  ;;  %v644_v34 = vshll.u32 %v400_v3, 16  ;;  %v650_v35 = vshll.u32 %v401_v19, 16  ;;  %v624_v36 = vrot.slane %v623_v25, 4  ;;  %v4161_v13 = vld [vmem:[%s4878_s19 + $0x70] sm:$0xf] }
  0xa8   : > { %2961 = vrot.lane.b32.xlu1 %v4383_v15, %s4832_s26  ;;  %v3160_v37 = vsel %vm4880_vm2, %v4447_v24, %v3159_v27  ;;  %v3161_v38 = vrot.slane %v3159_v27, 4  ;;  %v643_v40 = vrot.slane %v641_v29, 4  ;;  %v633_v44 = vor.u32 %v632_v30, %v628_v18  ;;  %v4162_v12 = vld [vmem:[%s4878_s19 + $0x74] sm:$0x1]  ;;  %2273 = vst.msk [vmem:[#allocation2] sm:$0xff] %vm2272_vm11, %v5258_v32  ;;  %2274 = vst.msk [vmem:[#allocation2 + $0x8] sm:$0xff] %vm2272_vm11, %v5309_v39 }
  0xa9   : > { %v5361_v42 = vpop.permute.xlu0 %2402  ;;  %3280 = vrot.lane.b32.xlu0 %v4462_v21, %s4833_s27  ;;  %v646_v45 = vrot.slane %v644_v34, 5  ;;  %v652_v46 = vrot.slane %v650_v35, 5  ;;  %v654_v47 = vshrl.u32 %v401_v19, 16  ;;  %v629_v49 = vsel %vm4921_vm5, %v624_v36, %v628_v18  ;;  %v4163_v19 = vld [vmem:[%s4878_s19 + $0x78] sm:$0xf]  ;;  %365 = vst.msk [vmem:[#allocation2 + $0x40] sm:$0xff] %vm356_vm6, %v4792_v17 }
  0xaa   : > { %v3163_v50 = vsel %vm4880_vm2, %v3161_v38, %v3162_v28  ;;  %v660_v51 = vshll.u32 %v402_v33, 16  ;;  %v634_v55 = vrot.slane %v633_v44, 4  ;;  %v4064_v1 = vrot.slane %v945_v41, 9  ;;  %v4164_v25 = vld [vmem:[%s4878_s19 + $0x7c] sm:$0xf]  ;;  %2451 = vst.msk [vmem:[#allocation2] sm:$0xff] %vm2450_vm12, %v5361_v42 }
  0xab   : > { %v4463_v56 = vcombine.low %v3160_v37, %v3163_v50  ;;  %v647_v57 = vor.u32 %v646_v45, %v643_v40  ;;  %v656_v59 = vrot.slane %v654_v47, 4  ;;  %v1078_v2 = vrot.slane %v946_v48, 5  ;;  %2452 = vst.msk [vmem:[#allocation2 + $0x8] sm:$0xff] %vm2450_vm12, %v5363_v43  ;;  %v4793_v33 = vld [vmem:[%s4878_s19 + $0x6c] sm:$0xff]   ;;  %v4226_v50 = vld [vmem:[%s4878_s19 + $0x74] sm:$0x1] }
  0xac   : > { %v662_v63 = vrot.slane %v660_v51, 5  ;;  %v639_v6 = vsel %vm4921_vm5, %v634_v55, %v638_v31  ;;  %v1081_v60 = vrot.slane %v947_v52, 5  ;;  %v4065_v10 = vrot.slane %v948_v61, 9  ;;  %v4165_v31 = vld [vmem:[%s4878_s19 + $0x80] sm:$0x1]  ;;  %v4769_v39 = vld [vmem:[%s4878_s19 + $0x6c] sm:$0xff]  }
  0xad   : > { %v2948_v5 = vpop.permute.xlu0 %2947  ;;  %3282 = vrot.lane.b32.xlu0 %v4463_v56, %s4833_s27  ;;  %v648_v7 = vrot.slane %v647_v57, 4  ;;  %v657_v54 = vor.u32 %v656_v59, %v652_v46  ;;  %v4048_v3 = vcombine.low %v629_v49, %v639_v6  ;;  %v1079_v8 = vsel %vm4880_vm2, %v4064_v1, %v1078_v2  ;;  %v4224_v38 = vld [vmem:[%s4878_s19 + $0x6c] sm:$0xe]  ;;  %v4225_v44 = vld [vmem:[%s4878_s19 + $0x70] sm:$0xf]  ;;  %366 = vst.msk [vmem:[#allocation2 + $0x48] sm:$0xff] %vm356_vm6, %v4793_v33 }
  0xae   : > { %v1080_v9 = vrot.slane %v1078_v2, 4  ;;  %v2950_v11 = vpop.permute.xlu1 %2949  ;;  %v1085_v15 = vrot.slane %v949_v62, 5  ;;  %v1088_v16 = vrot.slane %v950_v4, 5  ;;  %v1664_v28 = vshrl.u32 %v4160_v26, 16  ;;  %2996 = vst.msk [vmem:[#allocation2] sm:$0xff] %vm2995_vm13, %v2948_v5  ;;  %v4770_v59 = vld [vmem:[%s4878_s19 + $0x78] sm:$0xff]  }
  0xaf   : > { %v653_v58 = vsel %vm4921_vm5, %v648_v7, %v652_v46  ;;  %v658_v14 = vrot.slane %v657_v54, 4  ;;  %872 = vrot.lane.b32.xlu1 %v4048_v3, %s4829_s23  ;;  %v1667_v29 = vshll.u32 %v4160_v26, 16  ;;  %v1673_v30 = vshll.u32 %v4161_v13, 16  ;;  %2997 = vst.msk [vmem:[#allocation2 + $0x8] sm:$0xff] %vm2995_vm13, %v2950_v11  ;;  %v4227_v57 = vld [vmem:[%s4878_s19 + $0x78] sm:$0xe] }
  0xb0   : > { %v1082_v18 = vsel %vm4880_vm2, %v1080_v9, %v1081_v60  ;;  %v1086_v23 = vsel %vm4880_vm2, %v4065_v10, %v1085_v15  ;;  %v1087_v24 = vrot.slane %v1085_v15, 4  ;;  %v1677_v34 = vshrl.u32 %v4161_v13, 16  ;;  %v4228_v1 = vld [vmem:[%s4878_s19 + $0x7c] sm:$0xf]  ;;  %v4229_v7 = vld [vmem:[%s4878_s19 + $0x80] sm:$0x1] }
  0xb1   : > { %v3269_v20 = vpop.permute.xlu0 %3268  ;;  %v663_v21 = vsel %vm4921_vm5, %v658_v14, %v662_v63  ;;  %v4080_v22 = vcombine.low %v1079_v8, %v1082_v18  ;;  %v1683_v35 = vshll.u32 %v4162_v12, 16  ;;  %v1688_v36 = vshrl.u32 %v4163_v19, 16  ;;  %v4777_v54 = vld [vmem:[%s5986_s1 + $0x10] ss:$0 sps:$4 sm:$0x33]  }
  0xb2   : > { %v4049_v27 = vcombine.low %v653_v58, %v663_v21  ;;  %v1089_v32 = vsel %vm4880_vm2, %v1087_v24, %v1088_v16  ;;  %v1666_v41 = vrot.slane %v1664_v28, 4  ;;  %v1669_v42 = vrot.slane %v1667_v29, 5  ;;  %3317 = vst.msk [vmem:[#allocation2] sm:$0xff] %vm3316_vm14, %v3269_v20  ;;  %v4352_v18 = vld [vmem:[%s4878_s19 + $0x78] sm:$0xf]  ;;  %4716 = vmatprep.subr.msk.bf16.mxu0 %vm3418_vm15, %v4777_v54  ;;  %4717 = vmatprep.subr.msk.bf16.mxu1 %vm3418_vm15, %v4777_v54 }
  0xb3   : > { %1196 = vrot.lane.b32.xlu0 %v4080_v22, %s4828_s22  ;;  %v4081_v40 = vcombine.low %v1086_v23, %v1089_v32  ;;  %v1675_v43 = vrot.slane %v1673_v30, 5  ;;  %v1679_v46 = vrot.slane %v1677_v34, 4  ;;  %v1685_v47 = vrot.slane %v1683_v35, 5  ;;  %v4353_v23 = vld [vmem:[%s4878_s19 + $0x7c] sm:$0xf] }
  0xb4   : > { %v861_v37 = vpop.permute.xlu1 %860  ;;  %874 = vrot.lane.b32.xlu1 %v4049_v27, %s4829_s23  ;;  %v1690_v48 = vrot.slane %v1688_v36, 4  ;;  %v1691_v49 = vshll.u32 %v4163_v19, 16  ;;  %v1670_v51 = vor.u32 %v1669_v42, %v1666_v41  ;;  %v1697_v52 = vshll.u32 %v4164_v25, 16  ;;  %v4354_v24 = vld [vmem:[%s4878_s19 + $0x80] sm:$0x1] }
  0xb5   : > { %907 = vst.msk [vmem:[#allocation2 + $0x10] sm:$0xff] %vm904_vm7, %v861_v37  ;;  %v3271_v45 = vpop.permute.xlu0 %3270  ;;  %v1701_v55 = vshrl.u32 %v4164_v25, 16  ;;  %v1707_v56 = vshll.u32 %v4165_v31, 16  ;;  %v1680_v61 = vor.u32 %v1679_v46, %v1675_v43  ;;  %v4256_v63 = vrot.slane %v4224_v38, 9  ;;  %v4355_v30 = vld [vmem:[%s4878_s19 + $0x84] sm:$0xf] }
  0xb6   : > { %v1693_v62 = vrot.slane %v1691_v49, 5  ;;  %v1671_v2 = vrot.slane %v1670_v51, 4  ;;  %v1699_v4 = vrot.slane %v1697_v52, 5  ;;  %3318 = vst.msk [vmem:[#allocation2 + $0x8] sm:$0xff] %vm3316_vm14, %v3271_v45  ;;  %v2122_v8 = vrot.slane %v4225_v44, 5  ;;  %v4775_v44 = vld [vmem:[%s4878_s19 + $0x78] sm:$0xff]  }
  0xb7   : > { %1374 = vrot.lane.b32.xlu0 %v4769_v39, %s4826_s20  ;;  %v1703_v5 = vrot.slane %v1701_v55, 4  ;;  %v1709_v6 = vrot.slane %v1707_v56, 5  ;;  %v1681_v60 = vrot.slane %v1680_v61, 4  ;;  %v2125_v9 = vrot.slane %v4226_v50, 5  ;;  %v4356_v31 = vld [vmem:[%s4878_s19 + $0x88] sm:$0xf] }
  0xb8   : > { %1198 = vrot.lane.b32.xlu1 %v4081_v40, %s4828_s22  ;;  %v1694_v3 = vor.u32 %v1693_v62, %v1690_v48  ;;  %v1676_v26 = vsel %vm4921_vm5, %v1671_v2, %v1675_v43  ;;  %v4257_v58 = vrot.slane %v4227_v57, 9  ;;  %v2129_v14 = vrot.slane %v4228_v1, 5  ;;  %v4357_v41 = vld [vmem:[%s4878_s19 + $0x8c] sm:$0x1]  ;;  %v4416_v48 = vld [vmem:[%s4878_s19 + $0x78] sm:$0xe] }
  0xb9   : > { %v1185_v11 = vpop.permute.xlu0 %1184  ;;  %v1704_v13 = vor.u32 %v1703_v5, %v1699_v4  ;;  %v1686_v15 = vsel %vm4921_vm5, %v1681_v60, %v1685_v47  ;;  %v2123_v12 = vsel %vm4880_vm2, %v4256_v63, %v2122_v8  ;;  %v2124_v17 = vrot.slane %v2122_v8, 4  ;;  %v3333_v37 = vld [vmem:[#allocation2] sm:$0xff]  ;;  %v4417_v56 = vld [vmem:[%s4878_s19 + $0x7c] sm:$0xf] }
  0xba   : > { %v863_v10 = vpop.permute.xlu1 %862  ;;  %1231 = vst.msk [vmem:[#allocation2 + $0x10] sm:$0xff] %vm1228_vm8, %v1185_v11  ;;  %v1695_v16 = vrot.slane %v1694_v3, 4  ;;  %v4192_v19 = vcombine.low %v1676_v26, %v1686_v15  ;;  %v5448_v21 = vsel %vm4880_vm2, %v4257_v58, %v2129_v14  ;;  %v2131_v22 = vrot.slane %v2129_v14, 4  ;;  %4678 = vmatprep.mubr.msk.bf16.mxu0 %vm3369_vm0, %v3333_v37  ;;  %v4418_v63 = vld [vmem:[%s4878_s19 + $0x80] sm:$0x1] }
  0xbb   : > { %908 = vst.msk [vmem:[#allocation2 + $0x18] sm:$0xff] %vm904_vm7, %v863_v10  ;;  %v1705_v20 = vrot.slane %v1704_v13, 4  ;;  %v2126_v27 = vsel %vm4880_vm2, %v2124_v17, %v2125_v9  ;;  %v2132_v28 = vrot.slane %v4229_v7, 5  ;;  %v3420_v34 = vsel %vm3418_vm15, %v4777_v54, 0  ;;  %v403_v7 = vld [vmem:[%s4878_s19 + $0x78] sm:$0xf] }
  0xbc   : > { %1376 = vrot.lane.b32.xlu1 %v4770_v59, %s4826_s20  ;;  %v1700_v25 = vsel %vm4921_vm5, %v1695_v16, %v1699_v4  ;;  %1919 = vrot.lane.b32.xlu0 %v4192_v19, %s4830_s24  ;;  %v4272_v39 = vcombine.low %v2123_v12, %v2126_v27  ;;  %v2708_v38 = vshrl.u32 %v4352_v18, 16  ;;  %v2711_v40 = vshll.u32 %v4352_v18, 16  ;;  %v404_v9 = vld [vmem:[%s4878_s19 + $0x7c] sm:$0xf]  ;;  %v4776_v10 = vld [vmem:[%s4878_s19 + $0x84] sm:$0xff]  }
  0xbd   : > { %v1363_v33 = vpop.permute.xlu0 %1362  ;;  %v1710_v32 = vsel %vm4921_vm5, %v1705_v20, %v1709_v6  ;;  %v2133_v36 = vsel %vm4880_vm2, %v2131_v22, %v2132_v28  ;;  %4677 = vmatpush3.bf16.msra.mxu0 %v3420_v34  ;;  %v3334_v42 = vld [vmem:[#allocation2 + $0x8] sm:$0xff]  ;;  %v2717_v45 = vshll.u32 %v4353_v23, 16  ;;  %v2721_v46 = vshrl.u32 %v4353_v23, 16  ;;  %4715 = vmatpush3.bf16.msra.mxu1 %v3420_v34  ;;  %v405_v14 = vld [vmem:[%s4878_s19 + $0x80] sm:$0x1] }
  0xbe   : > { %v1187_v29 = vpop.permute.xlu1 %1186  ;;  %1409 = vst.msk [vmem:[#allocation2 + $0x10] sm:$0xff] %vm1406_vm9, %v1363_v33  ;;  %v4193_v35 = vcombine.low %v1700_v25, %v1710_v32  ;;  %v4273_v43 = vcombine.low %v5448_v21, %v2133_v36  ;;  %v2727_v47 = vshll.u32 %v4354_v24, 16  ;;  %v2710_v49 = vrot.slane %v2708_v38, 4  ;;  %v4419_v19 = vld [vmem:[%s4878_s19 + $0x84] sm:$0xe]  ;;  %v4796_v25 = vld [vmem:[%s4878_s19 + $0x78] sm:$0xff]  }
  0xbf   : > { %1232 = vst.msk [vmem:[#allocation2 + $0x18] sm:$0xff] %vm1228_vm8, %v1187_v29  ;;  %v2713_v50 = vrot.slane %v2711_v40, 5  ;;  %v2732_v51 = vshrl.u32 %v4355_v30, 16  ;;  %v2735_v52 = vshll.u32 %v4355_v30, 16  ;;  %v2719_v57 = vrot.slane %v2717_v45, 5 }
  0xc0   : > { %1921 = vrot.lane.b32.xlu1 %v4193_v35, %s4830_s24  ;;  %2240 = vrot.lane.b32.xlu0 %v4272_v39, %s4827_s21  ;;  %v2723_v59 = vrot.slane %v2721_v46, 4  ;;  %v2729_v61 = vrot.slane %v2727_v47, 5  ;;  %v2741_v62 = vshll.u32 %v4356_v31, 16  ;;  %v2745_v6 = vshrl.u32 %v4356_v31, 16  ;;  %v4420_v31 = vld [vmem:[%s4878_s19 + $0x88] sm:$0xf] }
  0xc1   : > { %4679 = vmatmul.mubr.msk.bf16.vlgmr.msra.gmra.mrb[0].mxu0 %vm3369_vm0, %v3334_v42  ;;  %v2714_v2 = vor.u32 %v2713_v50, %v2710_v49  ;;  %v2734_v4 = vrot.slane %v2732_v51, 4  ;;  %v2737_v5 = vrot.slane %v2735_v52, 5  ;;  %v2751_v3 = vshll.u32 %v4357_v41, 16  ;;  %v4421_v35 = vld [vmem:[%s4878_s19 + $0x8c] sm:$0x1]  ;;  %367 = vst.msk [vmem:[#allocation2 + $0x50] sm:$0xff] %vm356_vm6, %v4796_v25 }
  0xc2   : > { %v1365_v55 = vpop.permute.xlu1 %1364  ;;  %v2724_v54 = vor.u32 %v2723_v59, %v2719_v57  ;;  %v2743_v60 = vrot.slane %v2741_v62, 5  ;;  %v4448_v8 = vrot.slane %v4416_v48, 9  ;;  %v2747_v13 = vrot.slane %v2745_v6, 4  ;;  %v406_v42 = vld [vmem:[%s4878_s19 + $0x84] sm:$0xf] }
  0xc3   : > { %1410 = vst.msk [vmem:[#allocation2 + $0x18] sm:$0xff] %vm1406_vm9, %v1365_v55  ;;  %v1908_v1 = vpop.permute.xlu0 %1907  ;;  %v2715_v11 = vrot.slane %v2714_v2, 4  ;;  %v2738_v26 = vor.u32 %v2737_v5, %v2734_v4  ;;  %v3166_v58 = vrot.slane %v4417_v56, 5  ;;  %v2753_v12 = vrot.slane %v2751_v3, 5  ;;  %v407_v48 = vld [vmem:[%s4878_s19 + $0x88] sm:$0xf] }
  0xc4   : > { %1954 = vst.msk [vmem:[#allocation2 + $0x10] sm:$0xff] %vm1951_vm10, %v1908_v1  ;;  %2242 = vrot.lane.b32.xlu1 %v4273_v43, %s4827_s21  ;;  %2418 = vrot.lane.b32.xlu0 %v4775_v44, %s4831_s25  ;;  %v2725_v16 = vrot.slane %v2724_v54, 4  ;;  %v3169_v17 = vrot.slane %v4418_v63, 5  ;;  %v665_v18 = vshrl.u32 %v403_v7, 16  ;;  %v2748_v23 = vor.u32 %v2747_v13, %v2743_v60  ;;  %v951_v5 = vld [vmem:[%s4878_s19 + $0x78] sm:$0xe] }
  0xc5   : > { %v2720_v21 = vsel %vm4921_vm5, %v2715_v11, %v2719_v57  ;;  %v2739_v22 = vrot.slane %v2738_v26, 4  ;;  %v3167_v24 = vsel %vm4880_vm2, %v4448_v8, %v3166_v58  ;;  %v3168_v28 = vrot.slane %v3166_v58, 4  ;;  %v408_v57 = vld [vmem:[%s4878_s19 + $0x8c] sm:$0x1]  ;;  %v4797_v6 = vld [vmem:[%s4878_s19 + $0x84] sm:$0xff]  }
  0xc6   : > { %v1910_v15 = vpop.permute.xlu1 %1909  ;;  %v2730_v27 = vsel %vm4921_vm5, %v2725_v16, %v2729_v61  ;;  %v667_v29 = vrot.slane %v665_v18, 4  ;;  %v668_v30 = vshll.u32 %v403_v7, 16  ;;  %v2749_v39 = vrot.slane %v2748_v23, 4  ;;  %v952_v8 = vld [vmem:[%s4878_s19 + $0x7c] sm:$0xf]  ;;  %368 = vst.msk [vmem:[#allocation2 + $0x58] sm:$0xff] %vm356_vm6, %v4797_v6 }
  0xc7   : > { %1955 = vst.msk [vmem:[#allocation2 + $0x18] sm:$0xff] %vm1951_vm10, %v1910_v15  ;;  %v2229_v20 = vpop.permute.xlu0 %2228  ;;  %v4384_v33 = vcombine.low %v2720_v21, %v2730_v27  ;;  %v2744_v32 = vsel %vm4921_vm5, %v2739_v22, %v2743_v60  ;;  %v674_v34 = vshll.u32 %v404_v9, 16  ;;  %v3170_v37 = vsel %vm4880_vm2, %v3168_v28, %v3169_v17  ;;  %v953_v58 = vld [vmem:[%s4878_s19 + $0x80] sm:$0x1]  ;;  %v954_v17 = vld [vmem:[%s4878_s19 + $0x84] sm:$0xe] }
  0xc8   : > { %2275 = vst.msk [vmem:[#allocation2 + $0x10] sm:$0xff] %vm2272_vm11, %v2229_v20  ;;  %2420 = vrot.lane.b32.xlu1 %v4776_v10, %s4831_s25  ;;  %v670_v38 = vrot.slane %v668_v30, 5  ;;  %v678_v40 = vshrl.u32 %v404_v9, 16  ;;  %v684_v41 = vshll.u32 %v405_v14, 16  ;;  %v2754_v44 = vsel %vm4921_vm5, %v2749_v39, %v2753_v12  ;;  %v955_v18 = vld [vmem:[%s4878_s19 + $0x88] sm:$0xf] }
  0xc9   : > { %2963 = vrot.lane.b32.xlu0 %v4384_v33, %s4832_s26  ;;  %v4464_v45 = vcombine.low %v3167_v24, %v3170_v37  ;;  %v676_v46 = vrot.slane %v674_v34, 5  ;;  %v4449_v47 = vrot.slane %v4419_v19, 9  ;;  %v4385_v49 = vcombine.low %v2744_v32, %v2754_v44  ;;  %v956_v24 = vld [vmem:[%s4878_s19 + $0x8c] sm:$0x1]  ;;  %v4166_v25 = vld [vmem:[%s4878_s19 + $0x84] sm:$0xf] }
  0xca   : > { %v2231_v36 = vpop.permute.xlu1 %2230  ;;  %v671_v50 = vor.u32 %v670_v38, %v667_v29  ;;  %v680_v51 = vrot.slane %v678_v40, 4  ;;  %v686_v52 = vrot.slane %v684_v41, 5  ;;  %v3173_v55 = vrot.slane %v4420_v31, 5  ;;  %v4167_v31 = vld [vmem:[%s4878_s19 + $0x88] sm:$0xf] }
  0xcb   : > { %2276 = vst.msk [vmem:[#allocation2 + $0x18] sm:$0xff] %vm2272_vm11, %v2231_v36  ;;  %v2407_v43 = vpop.permute.xlu0 %2406  ;;  %v3176_v56 = vrot.slane %v4421_v35, 5  ;;  %v689_v59 = vshrl.u32 %v406_v42, 16  ;;  %v692_v61 = vshll.u32 %v406_v42, 16  ;;  %v698_v2 = vshll.u32 %v407_v48, 16 }
  0xcc   : > { %2453 = vst.msk [vmem:[#allocation2 + $0x10] sm:$0xff] %vm2450_vm12, %v2407_v43  ;;  %2965 = vrot.lane.b32.xlu1 %v4385_v49, %s4832_s26  ;;  %v672_v63 = vrot.slane %v671_v50, 4  ;;  %v681_v1 = vor.u32 %v680_v51, %v676_v46  ;;  %v702_v4 = vshrl.u32 %v407_v48, 16  ;;  %v3174_v7 = vsel %vm4880_vm2, %v4449_v47, %v3173_v55  ;;  %v4168_v43 = vld [vmem:[%s4878_s19 + $0x8c] sm:$0x1] }
  0xcd   : > { %3284 = vrot.lane.b32.xlu0 %v4464_v45, %s4833_s27  ;;  %v3175_v54 = vrot.slane %v3173_v55, 4  ;;  %v691_v60 = vrot.slane %v689_v59, 4  ;;  %v694_v3 = vrot.slane %v692_v61, 5  ;;  %v700_v26 = vrot.slane %v698_v2, 5  ;;  %v4170_v51 = vld [vmem:[%s4878_s19 + $0x94] sm:$0xf] }
  0xce   : > { %v2409_v62 = vpop.permute.xlu1 %2408  ;;  %v677_v10 = vsel %vm4921_vm5, %v672_v63, %v676_v46  ;;  %v682_v11 = vrot.slane %v681_v1, 4  ;;  %v704_v13 = vrot.slane %v702_v4, 4  ;;  %v708_v16 = vshll.u32 %v408_v57, 16  ;;  %v4169_v46 = vld [vmem:[%s4878_s19 + $0x90] sm:$0xf]  ;;  %v4778_v2 = vld [vmem:[%s4878_s19 + $0x84] sm:$0xff]  }
  0xcf   : > { %2454 = vst.msk [vmem:[#allocation2 + $0x18] sm:$0xff] %vm2450_vm12, %v2409_v62  ;;  %v2952_v9 = vpop.permute.xlu0 %2951  ;;  %v3177_v14 = vsel %vm4880_vm2, %v3175_v54, %v3176_v56  ;;  %v695_v15 = vor.u32 %v694_v3, %v691_v60  ;;  %v4066_v12 = vrot.slane %v951_v5, 9  ;;  %v1092_v23 = vrot.slane %v952_v8, 5  ;;  %v4230_v63 = vld [vmem:[%s4878_s19 + $0x84] sm:$0xe] }
  0xd0   : > { %2998 = vst.msk [vmem:[#allocation2 + $0x10] sm:$0xff] %vm2995_vm13, %v2952_v9  ;;  %v687_v20 = vsel %vm4921_vm5, %v682_v11, %v686_v52  ;;  %v4465_v21 = vcombine.low %v3174_v7, %v3177_v14  ;;  %v705_v22 = vor.u32 %v704_v13, %v700_v26  ;;  %v710_v29 = vrot.slane %v708_v16, 5  ;;  %v4171_v52 = vld [vmem:[%s4878_s19 + $0x98] sm:$0x1]  ;;  %v4231_v7 = vld [vmem:[%s4878_s19 + $0x88] sm:$0xf] }
  0xd1   : > { %v4050_v27 = vcombine.low %v677_v10, %v687_v20  ;;  %v696_v28 = vrot.slane %v695_v15, 4  ;;  %v1095_v30 = vrot.slane %v953_v58, 5  ;;  %v1093_v39 = vsel %vm4880_vm2, %v4066_v12, %v1092_v23  ;;  %v4232_v9 = vld [vmem:[%s4878_s19 + $0x8c] sm:$0x1]  ;;  %v4233_v58 = vld [vmem:[%s4878_s19 + $0x90] sm:$0xe] }
  0xd2   : > { %v2954_v19 = vpop.permute.xlu1 %2953  ;;  %3286 = vrot.lane.b32.xlu0 %v4465_v21, %s4833_s27  ;;  %v706_v32 = vrot.slane %v705_v22, 4  ;;  %v1094_v34 = vrot.slane %v1092_v23, 4  ;;  %v4067_v35 = vrot.slane %v954_v17, 9  ;;  %v1099_v37 = vrot.slane %v955_v18, 5  ;;  %v4234_v14 = vld [vmem:[%s4878_s19 + $0x94] sm:$0xf] }
  0xd3   : > { %2999 = vst.msk [vmem:[#allocation2 + $0x18] sm:$0xff] %vm2995_vm13, %v2954_v19  ;;  %v3273_v33 = vpop.permute.xlu0 %3272  ;;  %876 = vrot.lane.b32.xlu1 %v4050_v27, %s4829_s23  ;;  %v701_v36 = vsel %vm4921_vm5, %v696_v28, %v700_v26  ;;  %v1102_v38 = vrot.slane %v956_v24, 5  ;;  %v1712_v40 = vshrl.u32 %v4166_v25, 16  ;;  %v1715_v44 = vshll.u32 %v4166_v25, 16  ;;  %v4235_v15 = vld [vmem:[%s4878_s19 + $0x98] sm:$0x1] }
  0xd4   : > { %3319 = vst.msk [vmem:[#allocation2 + $0x10] sm:$0xff] %vm3316_vm14, %v3273_v33  ;;  %v711_v41 = vsel %vm4921_vm5, %v706_v32, %v710_v29  ;;  %v1096_v42 = vsel %vm4880_vm2, %v1094_v34, %v1095_v30  ;;  %v1721_v45 = vshll.u32 %v4167_v31, 16  ;;  %v1100_v49 = vsel %vm4880_vm2, %v4067_v35, %v1099_v37  ;;  %v4779_v20 = vld [vmem:[%s4878_s19 + $0x90] sm:$0xff]  }
  0xd5   : > { %v4051_v47 = vcombine.low %v701_v36, %v711_v41  ;;  %v4082_v48 = vcombine.low %v1093_v39, %v1096_v42  ;;  %v1101_v50 = vrot.slane %v1099_v37, 4  ;;  %v1714_v57 = vrot.slane %v1712_v40, 4  ;;  %v4358_v35 = vld [vmem:[%s4878_s19 + $0x90] sm:$0xf]  ;;  %v4359_v42 = vld [vmem:[%s4878_s19 + $0x94] sm:$0xf] }
  0xd6   : > { %v1717_v59 = vrot.slane %v1715_v44, 5  ;;  %v1723_v61 = vrot.slane %v1721_v45, 5  ;;  %v1725_v62 = vshrl.u32 %v4167_v31, 16  ;;  %v1731_v4 = vshll.u32 %v4168_v43, 16 }
  0xd7   : > { %v3275_v56 = vpop.permute.xlu0 %3274  ;;  %878 = vrot.lane.b32.xlu1 %v4051_v47, %s4829_s23  ;;  %1200 = vrot.lane.b32.xlu0 %v4082_v48, %s4828_s22  ;;  %v1103_v1 = vsel %vm4880_vm2, %v1101_v50, %v1102_v38  ;;  %v1736_v5 = vshrl.u32 %v4169_v46, 16  ;;  %v1739_v6 = vshll.u32 %v4169_v46, 16  ;;  %v1745_v8 = vshll.u32 %v4170_v51, 16  ;;  %v4360_v47 = vld [vmem:[%s4878_s19 + $0x98] sm:$0x1] }
  0xd8   : > { %v865_v55 = vpop.permute.xlu1 %864  ;;  %3320 = vst.msk [vmem:[#allocation2 + $0x18] sm:$0xff] %vm3316_vm14, %v3275_v56  ;;  %v4083_v54 = vcombine.low %v1100_v49, %v1103_v1  ;;  %v1718_v60 = vor.u32 %v1717_v59, %v1714_v57  ;;  %v1727_v3 = vrot.slane %v1725_v62, 4  ;;  %v1733_v10 = vrot.slane %v1731_v4, 5  ;;  %v4361_v56 = vld [vmem:[%s4878_s19 + $0x9c] sm:$0xf] }
  0xd9   : > { %909 = vst.msk [vmem:[#allocation2 + $0x20] sm:$0xff] %vm904_vm7, %v865_v55  ;;  %v1738_v11 = vrot.slane %v1736_v5, 4  ;;  %v1741_v26 = vrot.slane %v1739_v6, 5  ;;  %v1749_v13 = vshrl.u32 %v4170_v51, 16  ;;  %v1747_v18 = vrot.slane %v1745_v8, 5 }
  0xda   : > { %v1719_v12 = vrot.slane %v1718_v60, 4  ;;  %v1728_v17 = vor.u32 %v1727_v3, %v1723_v61  ;;  %v1755_v19 = vshll.u32 %v4171_v52, 16  ;;  %v4258_v23 = vrot.slane %v4230_v63, 9  ;;  %v4362_v57 = vld [vmem:[%s4878_s19 + $0xa0] sm:$0xf] }
  0xdb   : > { %v3335_v16 = vld [vmem:[#allocation2 + $0x10] sm:$0xff]  ;;  %1202 = vrot.lane.b32.xlu1 %v4083_v54, %s4828_s22  ;;  %1378 = vrot.lane.b32.xlu0 %v4778_v2, %s4826_s20  ;;  %v1742_v21 = vor.u32 %v1741_v26, %v1738_v11  ;;  %v1751_v22 = vrot.slane %v1749_v13, 4  ;;  %v2136_v24 = vrot.slane %v4231_v7, 5  ;;  %v2139_v30 = vrot.slane %v4232_v9, 5  ;;  %v4363_v6 = vld [vmem:[%s4878_s19 + $0xa4] sm:$0x1] }
  0xdc   : > { %4682 = vmatprep.mubr.msk.bf16.mxu0 %vm3369_vm0, %v3335_v16  ;;  %v1724_v27 = vsel %vm4921_vm5, %v1719_v12, %v1723_v61  ;;  %v1729_v28 = vrot.slane %v1728_v17, 4  ;;  %v1757_v29 = vrot.slane %v1755_v19, 5  ;;  %v4259_v38 = vrot.slane %v4233_v58, 9  ;;  %v4782_v54 = vld [vmem:[%s4878_s19 + $0x90] sm:$0xff]   ;;  %v4424_v19 = vld [vmem:[%s4878_s19 + $0x98] sm:$0x1] }
  0xdd   : > { %v1189_v25 = vpop.permute.xlu0 %1188  ;;  %v1743_v33 = vrot.slane %v1742_v21, 4  ;;  %v1752_v32 = vor.u32 %v1751_v22, %v1747_v18  ;;  %v2137_v39 = vsel %vm4880_vm2, %v4258_v23, %v2136_v24  ;;  %v2138_v34 = vrot.slane %v2136_v24, 4  ;;  %v4422_v9 = vld [vmem:[%s4878_s19 + $0x90] sm:$0xe] }
  0xde   : > { %v867_v31 = vpop.permute.xlu1 %866  ;;  %1233 = vst.msk [vmem:[#allocation2 + $0x20] sm:$0xff] %vm1228_vm8, %v1189_v25  ;;  %v1734_v37 = vsel %vm4921_vm5, %v1729_v28, %v1733_v10  ;;  %v2143_v40 = vrot.slane %v4234_v14, 5  ;;  %v2146_v41 = vrot.slane %v4235_v15, 5  ;;  %v2756_v55 = vshrl.u32 %v4358_v35, 16  ;;  %v4423_v14 = vld [vmem:[%s4878_s19 + $0x94] sm:$0xf] }
  0xdf   : > { %910 = vst.msk [vmem:[#allocation2 + $0x28] sm:$0xff] %vm904_vm7, %v867_v31  ;;  %v3336_v36 = vld [vmem:[#allocation2 + $0x18] sm:$0xff]  ;;  %1380 = vrot.lane.b32.xlu1 %v4779_v20, %s4826_s20  ;;  %v4194_v43 = vcombine.low %v1724_v27, %v1734_v37  ;;  %v1748_v44 = vsel %vm4921_vm5, %v1743_v33, %v1747_v18  ;;  %v1753_v45 = vrot.slane %v1752_v32, 4  ;;  %v2140_v46 = vsel %vm4880_vm2, %v2138_v34, %v2139_v30  ;;  %v409_v20 = vld [vmem:[%s4878_s19 + $0x90] sm:$0xf] }
  0xe0   : > { %4683 = vmatmul.mubr.msk.bf16.gmra.mrb[4].mxu0 %vm3369_vm0, %v3336_v36  ;;  %v4274_v49 = vcombine.low %v2137_v39, %v2140_v46  ;;  %v2144_v50 = vsel %vm4880_vm2, %v4259_v38, %v2143_v40  ;;  %v2145_v51 = vrot.slane %v2143_v40, 4  ;;  %v2759_v61 = vshll.u32 %v4358_v35, 16  ;;  %v410_v25 = vld [vmem:[%s4878_s19 + $0x94] sm:$0xf]  ;;  %v411_v31 = vld [vmem:[%s4878_s19 + $0x98] sm:$0x1] }
  0xe1   : > { %v1367_v48 = vpop.permute.xlu0 %1366  ;;  %1923 = vrot.lane.b32.xlu0 %v4194_v43, %s4830_s24  ;;  %v1758_v59 = vsel %vm4921_vm5, %v1753_v45, %v1757_v29  ;;  %v2765_v62 = vshll.u32 %v4359_v42, 16  ;;  %v2769_v63 = vshrl.u32 %v4359_v42, 16  ;;  %v2758_v4 = vrot.slane %v2756_v55, 4  ;;  %v4783_v33 = vld [vmem:[%s4878_s19 + $0x9c] sm:$0xff]  }
  0xe2   : > { %v1191_v52 = vpop.permute.xlu1 %1190  ;;  %1411 = vst.msk [vmem:[#allocation2 + $0x20] sm:$0xff] %vm1406_vm9, %v1367_v48  ;;  %v4195_v1 = vcombine.low %v1748_v44, %v1758_v59  ;;  %v2147_v2 = vsel %vm4880_vm2, %v2145_v51, %v2146_v41  ;;  %v2775_v5 = vshll.u32 %v4360_v47, 16  ;;  %v2761_v60 = vrot.slane %v2759_v61, 5  ;;  %v4425_v43 = vld [vmem:[%s4878_s19 + $0x9c] sm:$0xe]  ;;  %v4798_v44 = vld [vmem:[%s4878_s19 + $0x90] sm:$0xff]  }
  0xe3   : > { %1234 = vst.msk [vmem:[#allocation2 + $0x28] sm:$0xff] %vm1228_vm8, %v1191_v52  ;;  %v4275_v7 = vcombine.low %v2144_v50, %v2147_v2  ;;  %v2767_v3 = vrot.slane %v2765_v62, 5  ;;  %v2771_v8 = vrot.slane %v2769_v63, 4  ;;  %v2780_v11 = vshrl.u32 %v4361_v56, 16  ;;  %v4426_v55 = vld [vmem:[%s4878_s19 + $0xa0] sm:$0xf] }
  0xe4   : > { %1925 = vrot.lane.b32.xlu1 %v4195_v1, %s4830_s24  ;;  %v2777_v10 = vrot.slane %v2775_v5, 5  ;;  %v2783_v26 = vshll.u32 %v4361_v56, 16  ;;  %v2789_v13 = vshll.u32 %v4362_v57, 16  ;;  %v2762_v16 = vor.u32 %v2761_v60, %v2758_v4  ;;  %369 = vst.msk [vmem:[#allocation2 + $0x60] sm:$0xff] %vm356_vm6, %v4798_v44  ;;  %v4427_v62 = vld [vmem:[%s4878_s19 + $0xa4] sm:$0x1] }
  0xe5   : > { %2244 = vrot.lane.b32.xlu0 %v4274_v49, %s4827_s21  ;;  %v2772_v12 = vor.u32 %v2771_v8, %v2767_v3  ;;  %v2793_v17 = vshrl.u32 %v4362_v57, 16  ;;  %v2799_v18 = vshll.u32 %v4363_v6, 16  ;;  %v2782_v21 = vrot.slane %v2780_v11, 4  ;;  %v412_v63 = vld [vmem:[%s4878_s19 + $0x9c] sm:$0xf] }
  0xe6   : > { %v1369_v58 = vpop.permute.xlu1 %1368  ;;  %v1912_v15 = vpop.permute.xlu0 %1911  ;;  %v2785_v22 = vrot.slane %v2783_v26, 5  ;;  %v2791_v23 = vrot.slane %v2789_v13, 5  ;;  %v4450_v24 = vrot.slane %v4422_v9, 9  ;;  %v2763_v27 = vrot.slane %v2762_v16, 4  ;;  %v4799_v60 = vld [vmem:[%s4878_s19 + $0x9c] sm:$0xff]  }
  0xe7   : > { %1412 = vst.msk [vmem:[#allocation2 + $0x28] sm:$0xff] %vm1406_vm9, %v1369_v58  ;;  %v2773_v28 = vrot.slane %v2772_v12, 4  ;;  %v2795_v29 = vrot.slane %v2793_v17, 4  ;;  %v2801_v30 = vrot.slane %v2799_v18, 5  ;;  %v3180_v39 = vrot.slane %v4423_v14, 5 }
  0xe8   : > { %1956 = vst.msk [vmem:[#allocation2 + $0x20] sm:$0xff] %vm1951_vm10, %v1912_v15  ;;  %2246 = vrot.lane.b32.xlu1 %v4275_v7, %s4827_s21  ;;  %v2786_v32 = vor.u32 %v2785_v22, %v2782_v21  ;;  %v3183_v34 = vrot.slane %v4424_v19, 5  ;;  %v713_v35 = vshrl.u32 %v409_v20, 16  ;;  %v2768_v38 = vsel %vm4921_vm5, %v2763_v27, %v2767_v3  ;;  %v414_v11 = vld [vmem:[%s4878_s19 + $0xa4] sm:$0x1] }
  0xe9   : > { %2422 = vrot.lane.b32.xlu0 %v4782_v54, %s4831_s25  ;;  %v2778_v40 = vsel %vm4921_vm5, %v2773_v28, %v2777_v10  ;;  %v2796_v41 = vor.u32 %v2795_v29, %v2791_v23  ;;  %v716_v42 = vshll.u32 %v409_v20, 16  ;;  %v3181_v47 = vsel %vm4880_vm2, %v4450_v24, %v3180_v39  ;;  %v413_v54 = vld [vmem:[%s4878_s19 + $0xa0] sm:$0xf]  ;;  %v957_v15 = vld [vmem:[%s4878_s19 + $0x90] sm:$0xe]  ;;  %370 = vst.msk [vmem:[#allocation2 + $0x68] sm:$0xff] %vm356_vm6, %v4799_v60 }
  0xea   : > { %v1914_v36 = vpop.permute.xlu1 %1913  ;;  %v2233_v37 = vpop.permute.xlu0 %2232  ;;  %v4386_v45 = vcombine.low %v2768_v38, %v2778_v40  ;;  %v2787_v46 = vrot.slane %v2786_v32, 4  ;;  %v3182_v48 = vrot.slane %v3180_v39, 4  ;;  %v715_v50 = vrot.slane %v713_v35, 4  ;;  %v958_v19 = vld [vmem:[%s4878_s19 + $0x94] sm:$0xf] }
  0xeb   : > { %1957 = vst.msk [vmem:[#allocation2 + $0x28] sm:$0xff] %vm1951_vm10, %v1914_v36  ;;  %v2797_v49 = vrot.slane %v2796_v41, 4  ;;  %v718_v51 = vrot.slane %v716_v42, 5  ;;  %v722_v52 = vshll.u32 %v410_v25, 16  ;;  %v726_v59 = vshrl.u32 %v410_v25, 16 }
  0xec   : > { %2277 = vst.msk [vmem:[#allocation2 + $0x20] sm:$0xff] %vm2272_vm11, %v2233_v37  ;;  %2424 = vrot.lane.b32.xlu1 %v4783_v33, %s4831_s25  ;;  %v2792_v56 = vsel %vm4921_vm5, %v2787_v46, %v2791_v23  ;;  %v3184_v57 = vsel %vm4880_vm2, %v3182_v48, %v3183_v34  ;;  %v732_v61 = vshll.u32 %v411_v31, 16  ;;  %v4451_v10 = vrot.slane %v4425_v43, 9  ;;  %v959_v31 = vld [vmem:[%s4878_s19 + $0x98] sm:$0x1] }
  0xed   : > { %2967 = vrot.lane.b32.xlu0 %v4386_v45, %s4832_s26  ;;  %v2802_v4 = vsel %vm4921_vm5, %v2797_v49, %v2801_v30  ;;  %v4466_v5 = vcombine.low %v3181_v47, %v3184_v57  ;;  %v719_v6 = vor.u32 %v718_v51, %v715_v50  ;;  %v724_v7 = vrot.slane %v722_v52, 5  ;;  %v960_v35 = vld [vmem:[%s4878_s19 + $0x9c] sm:$0xe]  ;;  %v961_v41 = vld [vmem:[%s4878_s19 + $0xa0] sm:$0xf] }
  0xee   : > { %v2235_v1 = vpop.permute.xlu1 %2234  ;;  %v2411_v2 = vpop.permute.xlu0 %2410  ;;  %v4387_v3 = vcombine.low %v2792_v56, %v2802_v4  ;;  %v728_v8 = vrot.slane %v726_v59, 4  ;;  %v734_v9 = vrot.slane %v732_v61, 5  ;;  %v3187_v13 = vrot.slane %v4426_v55, 5  ;;  %v962_v42 = vld [vmem:[%s4878_s19 + $0xa4] sm:$0x1] }
  0xef   : > { %2278 = vst.msk [vmem:[#allocation2 + $0x28] sm:$0xff] %vm2272_vm11, %v2235_v1  ;;  %v720_v26 = vrot.slane %v719_v6, 4  ;;  %v3190_v58 = vrot.slane %v4427_v62, 5  ;;  %v737_v14 = vshrl.u32 %v412_v63, 16  ;;  %v740_v12 = vshll.u32 %v412_v63, 16 }
  0xf0   : > { %2455 = vst.msk [vmem:[#allocation2 + $0x20] sm:$0xff] %vm2450_vm12, %v2411_v2  ;;  %2969 = vrot.lane.b32.xlu1 %v4387_v3, %s4832_s26  ;;  %v729_v16 = vor.u32 %v728_v8, %v724_v7  ;;  %v746_v17 = vshll.u32 %v413_v54, 16  ;;  %v750_v18 = vshrl.u32 %v413_v54, 16  ;;  %v3188_v22 = vsel %vm4880_vm2, %v4451_v10, %v3187_v13  ;;  %v4172_v44 = vld [vmem:[%s4878_s19 + $0x9c] sm:$0xf] }
  0xf1   : > { %3288 = vrot.lane.b32.xlu0 %v4466_v5, %s4833_s27  ;;  %v725_v21 = vsel %vm4921_vm5, %v720_v26, %v724_v7  ;;  %v3189_v23 = vrot.slane %v3187_v13, 4  ;;  %v739_v24 = vrot.slane %v737_v14, 4  ;;  %v742_v28 = vrot.slane %v740_v12, 5  ;;  %v4173_v49 = vld [vmem:[%s4878_s19 + $0xa0] sm:$0xf] }
  0xf2   : > { %v2413_v20 = vpop.permute.xlu1 %2412  ;;  %v730_v27 = vrot.slane %v729_v16, 4  ;;  %v748_v29 = vrot.slane %v746_v17, 5  ;;  %v752_v30 = vrot.slane %v750_v18, 4  ;;  %v756_v32 = vshll.u32 %v414_v11, 16  ;;  %v4174_v4 = vld [vmem:[%s4878_s19 + $0xa4] sm:$0x1] }
  0xf3   : > { %2456 = vst.msk [vmem:[#allocation2 + $0x28] sm:$0xff] %vm2450_vm12, %v2413_v20  ;;  %v2956_v25 = vpop.permute.xlu0 %2955  ;;  %v3191_v33 = vsel %vm4880_vm2, %v3189_v23, %v3190_v58  ;;  %v4068_v39 = vrot.slane %v957_v15, 9  ;;  %v1106_v34 = vrot.slane %v958_v19, 5  ;;  %v743_v38 = vor.u32 %v742_v28, %v739_v24  ;;  %v4175_v6 = vld [vmem:[%s4878_s19 + $0xa8] sm:$0xf]  ;;  %v4784_v17 = vld [vmem:[%s4878_s19 + $0x9c] sm:$0xff]  }
  0xf4   : > { %3000 = vst.msk [vmem:[#allocation2 + $0x20] sm:$0xff] %vm2995_vm13, %v2956_v25  ;;  %v735_v36 = vsel %vm4921_vm5, %v730_v27, %v734_v9  ;;  %v4467_v37 = vcombine.low %v3188_v22, %v3191_v33  ;;  %v753_v40 = vor.u32 %v752_v30, %v748_v29  ;;  %v758_v46 = vrot.slane %v756_v32, 5  ;;  %v4176_v8 = vld [vmem:[%s4878_s19 + $0xac] sm:$0xf]  ;;  %v4177_v9 = vld [vmem:[%s4878_s19 + $0xb0] sm:$0x1] }
  0xf5   : > { %v4052_v45 = vcombine.low %v725_v21, %v735_v36  ;;  %v1107_v47 = vsel %vm4880_vm2, %v4068_v39, %v1106_v34  ;;  %v1108_v48 = vrot.slane %v1106_v34, 4  ;;  %v744_v51 = vrot.slane %v743_v38, 4  ;;  %v4236_v15 = vld [vmem:[%s4878_s19 + $0x9c] sm:$0xe]  ;;  %v4237_v16 = vld [vmem:[%s4878_s19 + $0xa0] sm:$0xf] }
  0xf6   : > { %v2958_v43 = vpop.permute.xlu1 %2957  ;;  %3290 = vrot.lane.b32.xlu0 %v4467_v37, %s4833_s27  ;;  %v754_v52 = vrot.slane %v753_v40, 4  ;;  %v1109_v55 = vrot.slane %v959_v31, 5  ;;  %v4069_v56 = vrot.slane %v960_v35, 9  ;;  %v1113_v57 = vrot.slane %v961_v41, 5  ;;  %v4238_v21 = vld [vmem:[%s4878_s19 + $0xa4] sm:$0x1] }
  0xf7   : > { %3001 = vst.msk [vmem:[#allocation2 + $0x28] sm:$0xff] %vm2995_vm13, %v2958_v43  ;;  %v3277_v50 = vpop.permute.xlu0 %3276  ;;  %880 = vrot.lane.b32.xlu1 %v4052_v45, %s4829_s23  ;;  %v1116_v59 = vrot.slane %v962_v42, 5  ;;  %v1760_v61 = vshrl.u32 %v4172_v44, 16  ;;  %v1763_v62 = vshll.u32 %v4172_v44, 16  ;;  %v749_v63 = vsel %vm4921_vm5, %v744_v51, %v748_v29  ;;  %v4239_v31 = vld [vmem:[%s4878_s19 + $0xa8] sm:$0xe] }
  0xf8   : > { %3321 = vst.msk [vmem:[#allocation2 + $0x20] sm:$0xff] %vm3316_vm14, %v3277_v50  ;;  %v759_v1 = vsel %vm4921_vm5, %v754_v52, %v758_v46  ;;  %v1110_v2 = vsel %vm4880_vm2, %v1108_v48, %v1109_v55  ;;  %v1769_v5 = vshll.u32 %v4173_v49, 16  ;;  %v1114_v60 = vsel %vm4880_vm2, %v4069_v56, %v1113_v57  ;;  %v4240_v33 = vld [vmem:[%s4878_s19 + $0xac] sm:$0xf]  ;;  %v4241_v43 = vld [vmem:[%s4878_s19 + $0xb0] sm:$0x1] }
  0xf9   : > { %v4053_v7 = vcombine.low %v749_v63, %v759_v1  ;;  %v4084_v54 = vcombine.low %v1107_v47, %v1110_v2  ;;  %v1115_v3 = vrot.slane %v1113_v57, 4  ;;  %v1762_v26 = vrot.slane %v1760_v61, 4  ;;  %v4785_v37 = vld [vmem:[%s4878_s19 + $0xa8] sm:$0xff]  }
  0xfa   : > { %v1765_v13 = vrot.slane %v1763_v62, 5  ;;  %v1771_v58 = vrot.slane %v1769_v5, 5  ;;  %v1773_v14 = vshrl.u32 %v4173_v49, 16  ;;  %v1779_v18 = vshll.u32 %v4174_v4, 16  ;;  %v4364_v56 = vld [vmem:[%s4878_s19 + $0xa8] sm:$0xf] }
  0xfb   : > { %v3279_v11 = vpop.permute.xlu0 %3278  ;;  %882 = vrot.lane.b32.xlu1 %v4053_v7, %s4829_s23  ;;  %1204 = vrot.lane.b32.xlu0 %v4084_v54, %s4828_s22  ;;  %v1117_v12 = vsel %vm4880_vm2, %v1115_v3, %v1116_v59  ;;  %v1784_v19 = vshrl.u32 %v4175_v6, 16  ;;  %v1787_v20 = vshll.u32 %v4175_v6, 16  ;;  %v1793_v25 = vshll.u32 %v4176_v8, 16  ;;  %v4365_v1 = vld [vmem:[%s4878_s19 + $0xac] sm:$0xf] }
  0xfc   : > { %v869_v10 = vpop.permute.xlu1 %868  ;;  %3322 = vst.msk [vmem:[#allocation2 + $0x28] sm:$0xff] %vm3316_vm14, %v3279_v11  ;;  %v4085_v22 = vcombine.low %v1114_v60, %v1117_v12  ;;  %v1766_v23 = vor.u32 %v1765_v13, %v1762_v26  ;;  %v1775_v24 = vrot.slane %v1773_v14, 4  ;;  %v1781_v27 = vrot.slane %v1779_v18, 5  ;;  %v4366_v7 = vld [vmem:[%s4878_s19 + $0xb0] sm:$0x1] }
  0xfd   : > { %911 = vst.msk [vmem:[#allocation2 + $0x30] sm:$0xff] %vm904_vm7, %v869_v10  ;;  %v1786_v28 = vrot.slane %v1784_v19, 4  ;;  %v1789_v29 = vrot.slane %v1787_v20, 5  ;;  %v1797_v30 = vshrl.u32 %v4176_v8, 16  ;;  %v1795_v35 = vrot.slane %v1793_v25, 5 }
  0xfe   : > { %v1767_v39 = vrot.slane %v1766_v23, 4  ;;  %v1776_v34 = vor.u32 %v1775_v24, %v1771_v58  ;;  %v1803_v36 = vshll.u32 %v4177_v9, 16  ;;  %v4260_v41 = vrot.slane %v4236_v15, 9  ;;  %v4367_v54 = vld [vmem:[%s4878_s19 + $0xb4] sm:$0xf] }
  0xff   : > { %v3337_v32 = vld [vmem:[#allocation2 + $0x20] sm:$0xff]  ;;  %1206 = vrot.lane.b32.xlu1 %v4085_v22, %s4828_s22  ;;  %1382 = vrot.lane.b32.xlu0 %v4784_v17, %s4826_s20  ;;  %v1790_v38 = vor.u32 %v1789_v29, %v1786_v28  ;;  %v1799_v40 = vrot.slane %v1797_v30, 4  ;;  %v2150_v42 = vrot.slane %v4237_v16, 5  ;;  %v2153_v48 = vrot.slane %v4238_v21, 5  ;;  %v4368_v15 = vld [vmem:[%s4878_s19 + $0xb8] sm:$0xf] }
 0x100   : > { %4686 = vmatprep.mubr.msk.bf16.mxu0 %vm3369_vm0, %v3337_v32  ;;  %v1772_v45 = vsel %vm4921_vm5, %v1767_v39, %v1771_v58  ;;  %v1777_v46 = vrot.slane %v1776_v34, 4  ;;  %v1805_v47 = vrot.slane %v1803_v36, 5  ;;  %v4261_v61 = vrot.slane %v4239_v31, 9  ;;  %v4369_v19 = vld [vmem:[%s4878_s19 + $0xbc] sm:$0x1]  ;;  %v4788_v22 = vld [vmem:[%s4878_s19 + $0xa8] sm:$0xff]  }
 0x101   : > { %v1193_v44 = vpop.permute.xlu0 %1192  ;;  %v1791_v50 = vrot.slane %v1790_v38, 4  ;;  %v1800_v51 = vor.u32 %v1799_v40, %v1795_v35  ;;  %v2151_v52 = vsel %vm4880_vm2, %v4260_v41, %v2150_v42  ;;  %v2152_v55 = vrot.slane %v2150_v42, 4  ;;  %v4428_v20 = vld [vmem:[%s4878_s19 + $0xa8] sm:$0xe]  ;;  %v4430_v32 = vld [vmem:[%s4878_s19 + $0xb0] sm:$0x1] }
 0x102   : > { %v871_v49 = vpop.permute.xlu1 %870  ;;  %1235 = vst.msk [vmem:[#allocation2 + $0x30] sm:$0xff] %vm1228_vm8, %v1193_v44  ;;  %v1782_v59 = vsel %vm4921_vm5, %v1777_v46, %v1781_v27  ;;  %v2157_v62 = vrot.slane %v4240_v33, 5  ;;  %v2160_v63 = vrot.slane %v4241_v43, 5  ;;  %v2804_v11 = vshrl.u32 %v4364_v56, 16  ;;  %v4429_v27 = vld [vmem:[%s4878_s19 + $0xac] sm:$0xf] }
 0x103   : > { %912 = vst.msk [vmem:[#allocation2 + $0x38] sm:$0xff] %vm904_vm7, %v871_v49  ;;  %v3338_v57 = vld [vmem:[#allocation2 + $0x28] sm:$0xff]  ;;  %1384 = vrot.lane.b32.xlu1 %v4785_v37, %s4826_s20  ;;  %v4196_v2 = vcombine.low %v1772_v45, %v1782_v59  ;;  %v1796_v4 = vsel %vm4921_vm5, %v1791_v50, %v1795_v35  ;;  %v1801_v5 = vrot.slane %v1800_v51, 4  ;;  %v2154_v6 = vsel %vm4880_vm2, %v2152_v55, %v2153_v48  ;;  %v4789_v40 = vld [vmem:[%s4878_s19 + $0xb4] sm:$0xff]   ;;  %v417_v50 = vld [vmem:[%s4878_s19 + $0xb0] sm:$0x1] }
 0x104   : > { %4687 = vmatmul.mubr.msk.bf16.gmra.mrb[8].mxu0 %vm3369_vm0, %v3338_v57  ;;  %v4276_v3 = vcombine.low %v2151_v52, %v2154_v6  ;;  %v2158_v8 = vsel %vm4880_vm2, %v4261_v61, %v2157_v62  ;;  %v2159_v9 = vrot.slane %v2157_v62, 4  ;;  %v2807_v13 = vshll.u32 %v4364_v56, 16  ;;  %v415_v38 = vld [vmem:[%s4878_s19 + $0xa8] sm:$0xf]  ;;  %v416_v45 = vld [vmem:[%s4878_s19 + $0xac] sm:$0xf] }
 0x105   : > { %v1371_v60 = vpop.permute.xlu0 %1370  ;;  %1927 = vrot.lane.b32.xlu0 %v4196_v2, %s4830_s24  ;;  %v1806_v26 = vsel %vm4921_vm5, %v1801_v5, %v1805_v47  ;;  %v2813_v58 = vshll.u32 %v4365_v1, 16  ;;  %v2817_v14 = vshrl.u32 %v4365_v1, 16  ;;  %v2806_v17 = vrot.slane %v2804_v11, 4  ;;  %v4800_v61 = vld [vmem:[%s4878_s19 + $0xa8] sm:$0xff]  }
 0x106   : > { %v1195_v10 = vpop.permute.xlu1 %1194  ;;  %1413 = vst.msk [vmem:[#allocation2 + $0x30] sm:$0xff] %vm1406_vm9, %v1371_v60  ;;  %v4197_v16 = vcombine.low %v1796_v4, %v1806_v26  ;;  %v2161_v12 = vsel %vm4880_vm2, %v2159_v9, %v2160_v63  ;;  %v2823_v18 = vshll.u32 %v4366_v7, 16  ;;  %v2809_v23 = vrot.slane %v2807_v13, 5 }
 0x107   : > { %1236 = vst.msk [vmem:[#allocation2 + $0x38] sm:$0xff] %vm1228_vm8, %v1195_v10  ;;  %v4277_v21 = vcombine.low %v2158_v8, %v2161_v12  ;;  %v2815_v24 = vrot.slane %v2813_v58, 5  ;;  %v2819_v25 = vrot.slane %v2817_v14, 4  ;;  %v2828_v29 = vshrl.u32 %v4367_v54, 16  ;;  %v4432_v10 = vld [vmem:[%s4878_s19 + $0xb8] sm:$0xf] }
 0x108   : > { %1929 = vrot.lane.b32.xlu1 %v4197_v16, %s4830_s24  ;;  %v2825_v28 = vrot.slane %v2823_v18, 5  ;;  %v2831_v30 = vshll.u32 %v4367_v54, 16  ;;  %v2837_v31 = vshll.u32 %v4368_v15, 16  ;;  %v2810_v34 = vor.u32 %v2809_v23, %v2806_v17  ;;  %v4431_v54 = vld [vmem:[%s4878_s19 + $0xb4] sm:$0xe]  ;;  %371 = vst.msk [vmem:[#allocation2 + $0x70] sm:$0xff] %vm356_vm6, %v4800_v61 }
 0x109   : > { %2248 = vrot.lane.b32.xlu0 %v4276_v3, %s4827_s21  ;;  %v2820_v35 = vor.u32 %v2819_v25, %v2815_v24  ;;  %v2841_v36 = vshrl.u32 %v4368_v15, 16  ;;  %v2847_v37 = vshll.u32 %v4369_v19, 16  ;;  %v2830_v41 = vrot.slane %v2828_v29, 4  ;;  %v4433_v14 = vld [vmem:[%s4878_s19 + $0xbc] sm:$0x1] }
 0x10a   : > { %v1373_v33 = vpop.permute.xlu1 %1372  ;;  %v1916_v39 = vpop.permute.xlu0 %1915  ;;  %v2833_v42 = vrot.slane %v2831_v30, 5  ;;  %v2839_v43 = vrot.slane %v2837_v31, 5  ;;  %v4452_v44 = vrot.slane %v4428_v20, 9  ;;  %v2811_v46 = vrot.slane %v2810_v34, 4  ;;  %v418_v15 = vld [vmem:[%s4878_s19 + $0xb4] sm:$0xf] }
 0x10b   : > { %1414 = vst.msk [vmem:[#allocation2 + $0x38] sm:$0xff] %vm1406_vm9, %v1373_v33  ;;  %v2821_v47 = vrot.slane %v2820_v35, 4  ;;  %v2843_v48 = vrot.slane %v2841_v36, 4  ;;  %v2849_v49 = vrot.slane %v2847_v37, 5  ;;  %v3194_v52 = vrot.slane %v4429_v27, 5 }
 0x10c   : > { %1958 = vst.msk [vmem:[#allocation2 + $0x30] sm:$0xff] %vm1951_vm10, %v1916_v39  ;;  %2250 = vrot.lane.b32.xlu1 %v4277_v21, %s4827_s21  ;;  %v2834_v51 = vor.u32 %v2833_v42, %v2830_v41  ;;  %v3197_v55 = vrot.slane %v4430_v32, 5  ;;  %v761_v56 = vshrl.u32 %v415_v38, 16  ;;  %v2816_v62 = vsel %vm4921_vm5, %v2811_v46, %v2815_v24  ;;  %v419_v21 = vld [vmem:[%s4878_s19 + $0xb8] sm:$0xf] }
 0x10d   : > { %2426 = vrot.lane.b32.xlu0 %v4788_v22, %s4831_s25  ;;  %v2826_v63 = vsel %vm4921_vm5, %v2821_v47, %v2825_v28  ;;  %v2844_v1 = vor.u32 %v2843_v48, %v2839_v43  ;;  %v764_v2 = vshll.u32 %v415_v38, 16  ;;  %v3195_v6 = vsel %vm4880_vm2, %v4452_v44, %v3194_v52  ;;  %v4801_v22 = vld [vmem:[%s4878_s19 + $0xb4] sm:$0xff]   ;;  %v420_v28 = vld [vmem:[%s4878_s19 + $0xbc] sm:$0x1]  ;;  %v963_v32 = vld [vmem:[%s4878_s19 + $0xa8] sm:$0xe] }
 0x10e   : > { %v1918_v57 = vpop.permute.xlu1 %1917  ;;  %v2237_v59 = vpop.permute.xlu0 %2236  ;;  %v4388_v4 = vcombine.low %v2816_v62, %v2826_v63  ;;  %v2835_v5 = vrot.slane %v2834_v51, 4  ;;  %v3196_v7 = vrot.slane %v3194_v52, 4  ;;  %v763_v3 = vrot.slane %v761_v56, 4  ;;  %372 = vst.msk [vmem:[#allocation2 + $0x78] sm:$0xff] %vm356_vm6, %v4801_v22  ;;  %v964_v37 = vld [vmem:[%s4878_s19 + $0xac] sm:$0xf] }
 0x10f   : > { %1959 = vst.msk [vmem:[#allocation2 + $0x38] sm:$0xff] %vm1951_vm10, %v1918_v57  ;;  %v2845_v60 = vrot.slane %v2844_v1, 4  ;;  %v766_v8 = vrot.slane %v764_v2, 5  ;;  %v770_v9 = vshll.u32 %v416_v45, 16  ;;  %v774_v13 = vshrl.u32 %v416_v45, 16 }
 0x110   : > { %2279 = vst.msk [vmem:[#allocation2 + $0x30] sm:$0xff] %vm2272_vm11, %v2237_v59  ;;  %2428 = vrot.lane.b32.xlu1 %v4789_v40, %s4831_s25  ;;  %v2840_v11 = vsel %vm4921_vm5, %v2835_v5, %v2839_v43  ;;  %v3198_v26 = vsel %vm4880_vm2, %v3196_v7, %v3197_v55  ;;  %v780_v58 = vshll.u32 %v417_v50, 16  ;;  %v4453_v27 = vrot.slane %v4431_v54, 9  ;;  %v965_v44 = vld [vmem:[%s4878_s19 + $0xb0] sm:$0x1] }
 0x111   : > { %2971 = vrot.lane.b32.xlu0 %v4388_v4, %s4832_s26  ;;  %v2850_v17 = vsel %vm4921_vm5, %v2845_v60, %v2849_v49  ;;  %v4468_v18 = vcombine.low %v3195_v6, %v3198_v26  ;;  %v767_v19 = vor.u32 %v766_v8, %v763_v3  ;;  %v772_v20 = vrot.slane %v770_v9, 5  ;;  %v966_v45 = vld [vmem:[%s4878_s19 + $0xb4] sm:$0xe]  ;;  %v967_v51 = vld [vmem:[%s4878_s19 + $0xb8] sm:$0xf] }
 0x112   : > { %v2239_v16 = vpop.permute.xlu1 %2238  ;;  %v2415_v12 = vpop.permute.xlu0 %2414  ;;  %v4389_v23 = vcombine.low %v2840_v11, %v2850_v17  ;;  %v776_v24 = vrot.slane %v774_v13, 4  ;;  %v782_v25 = vrot.slane %v780_v58, 5  ;;  %v3201_v30 = vrot.slane %v4432_v10, 5  ;;  %v968_v52 = vld [vmem:[%s4878_s19 + $0xbc] sm:$0x1] }
 0x113   : > { %2280 = vst.msk [vmem:[#allocation2 + $0x38] sm:$0xff] %vm2272_vm11, %v2239_v16  ;;  %v768_v29 = vrot.slane %v767_v19, 4  ;;  %v3204_v31 = vrot.slane %v4433_v14, 5  ;;  %v785_v33 = vshrl.u32 %v418_v15, 16  ;;  %v788_v34 = vshll.u32 %v418_v15, 16 }
 0x114   : > { %2457 = vst.msk [vmem:[#allocation2 + $0x30] sm:$0xff] %vm2450_vm12, %v2415_v12  ;;  %2973 = vrot.lane.b32.xlu1 %v4389_v23, %s4832_s26  ;;  %v777_v39 = vor.u32 %v776_v24, %v772_v20  ;;  %v794_v35 = vshll.u32 %v419_v21, 16  ;;  %v798_v36 = vshrl.u32 %v419_v21, 16  ;;  %v3202_v41 = vsel %vm4880_vm2, %v4453_v27, %v3201_v30  ;;  %v4178_v55 = vld [vmem:[%s4878_s19 + $0xb4] sm:$0xf] }
 0x115   : > { %3292 = vrot.lane.b32.xlu0 %v4468_v18, %s4833_s27  ;;  %v773_v40 = vsel %vm4921_vm5, %v768_v29, %v772_v20  ;;  %v3203_v42 = vrot.slane %v3201_v30, 4  ;;  %v787_v43 = vrot.slane %v785_v33, 4  ;;  %v790_v48 = vrot.slane %v788_v34, 5  ;;  %v4179_v62 = vld [vmem:[%s4878_s19 + $0xb8] sm:$0xf] }
 0x116   : > { %v2417_v38 = vpop.permute.xlu1 %2416  ;;  %v778_v47 = vrot.slane %v777_v39, 4  ;;  %v796_v49 = vrot.slane %v794_v35, 5  ;;  %v800_v50 = vrot.slane %v798_v36, 4  ;;  %v804_v57 = vshll.u32 %v420_v28, 16  ;;  %v4180_v26 = vld [vmem:[%s4878_s19 + $0xbc] sm:$0x1] }
 0x117   : > { %2458 = vst.msk [vmem:[#allocation2 + $0x38] sm:$0xff] %vm2450_vm12, %v2417_v38  ;;  %v2960_v46 = vpop.permute.xlu0 %2959  ;;  %v3205_v56 = vsel %vm4880_vm2, %v3203_v42, %v3204_v31  ;;  %v4070_v59 = vrot.slane %v963_v32, 9  ;;  %v1120_v61 = vrot.slane %v964_v37, 5  ;;  %v791_v2 = vor.u32 %v790_v48, %v787_v43  ;;  %v4181_v13 = vld [vmem:[%s4878_s19 + $0xc0] sm:$0xf]  ;;  %v4790_v32 = vld [vmem:[%s4878_s19 + $0xb4] sm:$0xff]  }
 0x118   : > { %3002 = vst.msk [vmem:[#allocation2 + $0x30] sm:$0xff] %vm2995_vm13, %v2960_v46  ;;  %v783_v63 = vsel %vm4921_vm5, %v778_v47, %v782_v25  ;;  %v4469_v1 = vcombine.low %v3202_v41, %v3205_v56  ;;  %v801_v4 = vor.u32 %v800_v50, %v796_v49  ;;  %v806_v7 = vrot.slane %v804_v57, 5  ;;  %v4182_v24 = vld [vmem:[%s4878_s19 + $0xc4] sm:$0xf]  ;;  %v4183_v31 = vld [vmem:[%s4878_s19 + $0xc8] sm:$0x1] }
 0x119   : > { %v4054_v6 = vcombine.low %v773_v40, %v783_v63  ;;  %v1121_v54 = vsel %vm4880_vm2, %v4070_v59, %v1120_v61  ;;  %v1122_v60 = vrot.slane %v1120_v61, 4  ;;  %v792_v8 = vrot.slane %v791_v2, 4  ;;  %v4242_v36 = vld [vmem:[%s4878_s19 + $0xb4] sm:$0xe]  ;;  %v4243_v43 = vld [vmem:[%s4878_s19 + $0xb8] sm:$0xf] }
 0x11a   : > { %v2962_v5 = vpop.permute.xlu1 %2961  ;;  %3294 = vrot.lane.b32.xlu0 %v4469_v1, %s4833_s27  ;;  %v802_v9 = vrot.slane %v801_v4, 4  ;;  %v1123_v10 = vrot.slane %v965_v44, 5  ;;  %v4071_v11 = vrot.slane %v966_v45, 9  ;;  %v1127_v58 = vrot.slane %v967_v51, 5  ;;  %v4244_v44 = vld [vmem:[%s4878_s19 + $0xbc] sm:$0x1] }
 0x11b   : > { %3003 = vst.msk [vmem:[#allocation2 + $0x38] sm:$0xff] %vm2995_vm13, %v2962_v5  ;;  %v3281_v3 = vpop.permute.xlu0 %3280  ;;  %884 = vrot.lane.b32.xlu1 %v4054_v6, %s4829_s23  ;;  %v1130_v14 = vrot.slane %v968_v52, 5  ;;  %v1808_v15 = vshrl.u32 %v4178_v55, 16  ;;  %v1811_v16 = vshll.u32 %v4178_v55, 16  ;;  %v797_v12 = vsel %vm4921_vm5, %v792_v8, %v796_v49  ;;  %v4245_v49 = vld [vmem:[%s4878_s19 + $0xc0] sm:$0xe] }
 0x11c   : > { %3323 = vst.msk [vmem:[#allocation2 + $0x30] sm:$0xff] %vm3316_vm14, %v3281_v3  ;;  %v807_v17 = vsel %vm4921_vm5, %v802_v9, %v806_v7  ;;  %v1124_v18 = vsel %vm4880_vm2, %v1122_v60, %v1123_v10  ;;  %v1817_v19 = vshll.u32 %v4179_v62, 16  ;;  %v1128_v22 = vsel %vm4880_vm2, %v4071_v11, %v1127_v58  ;;  %v4246_v57 = vld [vmem:[%s4878_s19 + $0xc4] sm:$0xf]  ;;  %v4247_v2 = vld [vmem:[%s4878_s19 + $0xc8] sm:$0x1] }
 0x11d   : > { %v4055_v20 = vcombine.low %v797_v12, %v807_v17  ;;  %v4086_v21 = vcombine.low %v1121_v54, %v1124_v18  ;;  %v1129_v23 = vrot.slane %v1127_v58, 4  ;;  %v1810_v27 = vrot.slane %v1808_v15, 4  ;;  %v4791_v59 = vld [vmem:[%s4878_s19 + $0xc0] sm:$0xff]  }
 0x11e   : > { %v1813_v28 = vrot.slane %v1811_v16, 5  ;;  %v1819_v29 = vrot.slane %v1817_v19, 5  ;;  %v1821_v30 = vshrl.u32 %v4179_v62, 16  ;;  %v1827_v39 = vshll.u32 %v4180_v26, 16  ;;  %v4370_v11 = vld [vmem:[%s4878_s19 + $0xc0] sm:$0xf] }
 0x11f   : > { %v3283_v25 = vpop.permute.xlu0 %3282  ;;  %886 = vrot.lane.b32.xlu1 %v4055_v20, %s4829_s23  ;;  %1208 = vrot.lane.b32.xlu0 %v4086_v21, %s4828_s22  ;;  %v1131_v33 = vsel %vm4880_vm2, %v1129_v23, %v1130_v14  ;;  %v1832_v34 = vshrl.u32 %v4181_v13, 16  ;;  %v1835_v35 = vshll.u32 %v4181_v13, 16  ;;  %v1841_v41 = vshll.u32 %v4182_v24, 16  ;;  %v4371_v16 = vld [vmem:[%s4878_s19 + $0xc4] sm:$0xf] }
 0x120   : > { %3324 = vst.msk [vmem:[#allocation2 + $0x38] sm:$0xff] %vm3316_vm14, %v3283_v25  ;;  %v4087_v37 = vcombine.low %v1128_v22, %v1131_v33  ;;  %v1814_v38 = vor.u32 %v1813_v28, %v1810_v27  ;;  %v1823_v40 = vrot.slane %v1821_v30, 4  ;;  %v1829_v45 = vrot.slane %v1827_v39, 5  ;;  %v4372_v20 = vld [vmem:[%s4878_s19 + $0xc8] sm:$0x1] }
 0x121   : > { %v873_v42 = vpop.permute.xlu1 %872  ;;  %v1834_v46 = vrot.slane %v1832_v34, 4  ;;  %v1837_v47 = vrot.slane %v1835_v35, 5  ;;  %v1845_v48 = vshrl.u32 %v4182_v24, 16  ;;  %v1843_v55 = vrot.slane %v1841_v41, 5  ;;  %v4373_v28 = vld [vmem:[%s4878_s19 + $0xcc] sm:$0xf] }
 0x122   : > { %913 = vst.msk [vmem:[#allocation2 + $0x40] sm:$0xff] %vm904_vm7, %v873_v42  ;;  %v1815_v51 = vrot.slane %v1814_v38, 4  ;;  %v1824_v52 = vor.u32 %v1823_v40, %v1819_v29  ;;  %v1851_v56 = vshll.u32 %v4183_v31, 16  ;;  %v4262_v63 = vrot.slane %v4242_v36, 9  ;;  %v4794_v40 = vld [vmem:[%s4878_s19 + $0xc0] sm:$0xff]  }
 0x123   : > { %v3339_v50 = vld [vmem:[#allocation2 + $0x30] sm:$0xff]  ;;  %1210 = vrot.lane.b32.xlu1 %v4087_v37, %s4828_s22  ;;  %1386 = vrot.lane.b32.xlu0 %v4790_v32, %s4826_s20  ;;  %v1838_v61 = vor.u32 %v1837_v47, %v1834_v46  ;;  %v1847_v62 = vrot.slane %v1845_v48, 4  ;;  %v2164_v1 = vrot.slane %v4243_v43, 5  ;;  %v2167_v54 = vrot.slane %v4244_v44, 5  ;;  %v4434_v44 = vld [vmem:[%s4878_s19 + $0xc0] sm:$0xe] }
 0x124   : > { %4690 = vmatprep.mubr.msk.bf16.mxu0 %vm3369_vm0, %v3339_v50  ;;  %v1820_v5 = vsel %vm4921_vm5, %v1815_v51, %v1819_v29  ;;  %v1825_v6 = vrot.slane %v1824_v52, 4  ;;  %v1853_v7 = vrot.slane %v1851_v56, 5  ;;  %v4263_v58 = vrot.slane %v4245_v49, 9  ;;  %v4374_v32 = vld [vmem:[%s4878_s19 + $0xd0] sm:$0xf] }
 0x125   : > { %v1197_v4 = vpop.permute.xlu0 %1196  ;;  %v1839_v3 = vrot.slane %v1838_v61, 4  ;;  %v1848_v8 = vor.u32 %v1847_v62, %v1843_v55  ;;  %v2165_v9 = vsel %vm4880_vm2, %v4262_v63, %v2164_v1  ;;  %v2166_v10 = vrot.slane %v2164_v1, 4  ;;  %v4375_v37 = vld [vmem:[%s4878_s19 + $0xd4] sm:$0x1]  ;;  %v4435_v50 = vld [vmem:[%s4878_s19 + $0xc4] sm:$0xf] }
 0x126   : > { %v875_v60 = vpop.permute.xlu1 %874  ;;  %1237 = vst.msk [vmem:[#allocation2 + $0x40] sm:$0xff] %vm1228_vm8, %v1197_v4  ;;  %v1830_v13 = vsel %vm4921_vm5, %v1825_v6, %v1829_v45  ;;  %v2171_v14 = vrot.slane %v4246_v57, 5  ;;  %v2174_v15 = vrot.slane %v4247_v2, 5  ;;  %v2852_v27 = vshrl.u32 %v4370_v11, 16  ;;  %v4436_v57 = vld [vmem:[%s4878_s19 + $0xc8] sm:$0x1] }
 0x127   : > { %914 = vst.msk [vmem:[#allocation2 + $0x48] sm:$0xff] %vm904_vm7, %v875_v60  ;;  %v3340_v26 = vld [vmem:[#allocation2 + $0x38] sm:$0xff]  ;;  %1388 = vrot.lane.b32.xlu1 %v4791_v59, %s4826_s20  ;;  %v4198_v12 = vcombine.low %v1820_v5, %v1830_v13  ;;  %v1844_v17 = vsel %vm4921_vm5, %v1839_v3, %v1843_v55  ;;  %v1849_v18 = vrot.slane %v1848_v8, 4  ;;  %v2168_v19 = vsel %vm4880_vm2, %v2166_v10, %v2167_v54  ;;  %v4437_v59 = vld [vmem:[%s4878_s19 + $0xcc] sm:$0xe] }
 0x128   : > { %4691 = vmatmul.mubr.msk.bf16.gmra.mrb[12].mxu0 %vm3369_vm0, %v3340_v26  ;;  %v4278_v22 = vcombine.low %v2165_v9, %v2168_v19  ;;  %v2172_v23 = vsel %vm4880_vm2, %v4263_v58, %v2171_v14  ;;  %v2173_v24 = vrot.slane %v2171_v14, 4  ;;  %v2855_v30 = vshll.u32 %v4370_v11, 16  ;;  %v4438_v2 = vld [vmem:[%s4878_s19 + $0xd0] sm:$0xf]  ;;  %v4439_v10 = vld [vmem:[%s4878_s19 + $0xd4] sm:$0x1] }
 0x129   : > { %v1375_v21 = vpop.permute.xlu0 %1374  ;;  %1931 = vrot.lane.b32.xlu0 %v4198_v12, %s4830_s24  ;;  %v1854_v29 = vsel %vm4921_vm5, %v1849_v18, %v1853_v7  ;;  %v2861_v31 = vshll.u32 %v4371_v16, 16  ;;  %v2865_v33 = vshrl.u32 %v4371_v16, 16  ;;  %v2854_v35 = vrot.slane %v2852_v27, 4  ;;  %v4795_v60 = vld [vmem:[%s4878_s19 + $0xcc] sm:$0xff]  }
 0x12a   : > { %v1199_v25 = vpop.permute.xlu1 %1198  ;;  %1415 = vst.msk [vmem:[#allocation2 + $0x40] sm:$0xff] %vm1406_vm9, %v1375_v21  ;;  %v4199_v39 = vcombine.low %v1844_v17, %v1854_v29  ;;  %v2175_v34 = vsel %vm4880_vm2, %v2173_v24, %v2174_v15  ;;  %v2871_v36 = vshll.u32 %v4372_v20, 16  ;;  %v2857_v41 = vrot.slane %v2855_v30, 5 }
 0x12b   : > { %1238 = vst.msk [vmem:[#allocation2 + $0x48] sm:$0xff] %vm1228_vm8, %v1199_v25  ;;  %v4279_v38 = vcombine.low %v2172_v23, %v2175_v34  ;;  %v2863_v42 = vrot.slane %v2861_v31, 5  ;;  %v2867_v43 = vrot.slane %v2865_v33, 4  ;;  %v2876_v46 = vshrl.u32 %v4373_v28, 16 }
 0x12c   : > { %1933 = vrot.lane.b32.xlu1 %v4199_v39, %s4830_s24  ;;  %v2873_v45 = vrot.slane %v2871_v36, 5  ;;  %v2879_v47 = vshll.u32 %v4373_v28, 16  ;;  %v2885_v48 = vshll.u32 %v4374_v32, 16  ;;  %v2858_v51 = vor.u32 %v2857_v41, %v2854_v35 }
 0x12d   : > { %2252 = vrot.lane.b32.xlu0 %v4278_v22, %s4827_s21  ;;  %v2868_v52 = vor.u32 %v2867_v43, %v2863_v42  ;;  %v2889_v55 = vshrl.u32 %v4374_v32, 16  ;;  %v2895_v56 = vshll.u32 %v4375_v37, 16  ;;  %v2878_v61 = vrot.slane %v2876_v46, 4 }
 0x12e   : > { %v1377_v49 = vpop.permute.xlu1 %1376  ;;  %v2881_v62 = vrot.slane %v2879_v47, 5  ;;  %v2887_v63 = vrot.slane %v2885_v48, 5  ;;  %v4454_v1 = vrot.slane %v4434_v44, 9  ;;  %v1920_v4 = vpop.permute.xlu0 %1919  ;;  %v2859_v5 = vrot.slane %v2858_v51, 4 }
 0x12f   : > { %1416 = vst.msk [vmem:[#allocation2 + $0x48] sm:$0xff] %vm1406_vm9, %v1377_v49  ;;  %v2869_v6 = vrot.slane %v2868_v52, 4  ;;  %v2891_v7 = vrot.slane %v2889_v55, 4  ;;  %v2897_v54 = vrot.slane %v2895_v56, 5  ;;  %v3208_v8 = vrot.slane %v4435_v50, 5 }
 0x130   : > { %1960 = vst.msk [vmem:[#allocation2 + $0x40] sm:$0xff] %vm1951_vm10, %v1920_v4  ;;  %2254 = vrot.lane.b32.xlu1 %v4279_v38, %s4827_s21  ;;  %v2882_v3 = vor.u32 %v2881_v62, %v2878_v61  ;;  %v3211_v9 = vrot.slane %v4436_v57, 5  ;;  %v4455_v11 = vrot.slane %v4437_v59, 9  ;;  %v2864_v26 = vsel %vm4921_vm5, %v2859_v5, %v2863_v42 }
 0x131   : > { %2430 = vrot.lane.b32.xlu0 %v4794_v40, %s4831_s25  ;;  %v2874_v13 = vsel %vm4921_vm5, %v2869_v6, %v2873_v45  ;;  %v2892_v58 = vor.u32 %v2891_v7, %v2887_v63  ;;  %v3215_v14 = vrot.slane %v4438_v2, 5  ;;  %v3209_v17 = vsel %vm4880_vm2, %v4454_v1, %v3208_v8 }
 0x132   : > { %v1922_v15 = vpop.permute.xlu1 %1921  ;;  %v4390_v16 = vcombine.low %v2864_v26, %v2874_v13  ;;  %v2883_v12 = vrot.slane %v2882_v3, 4  ;;  %v3210_v18 = vrot.slane %v3208_v8, 4  ;;  %v2241_v19 = vpop.permute.xlu0 %2240  ;;  %v3218_v22 = vrot.slane %v4439_v10, 5 }
 0x133   : > { %1961 = vst.msk [vmem:[#allocation2 + $0x48] sm:$0xff] %vm1951_vm10, %v1922_v15  ;;  %v2893_v20 = vrot.slane %v2892_v58, 4  ;;  %v3217_v21 = vrot.slane %v3215_v14, 4  ;;  %v3216_v28 = vsel %vm4880_vm2, %v4455_v11, %v3215_v14 }
 0x134   : > { %2281 = vst.msk [vmem:[#allocation2 + $0x40] sm:$0xff] %vm2272_vm11, %v2241_v19  ;;  %2432 = vrot.lane.b32.xlu1 %v4795_v60, %s4831_s25  ;;  %v2888_v23 = vsel %vm4921_vm5, %v2883_v12, %v2887_v63  ;;  %v3212_v24 = vsel %vm4880_vm2, %v3210_v18, %v3211_v9 }
 0x135   : > { %2975 = vrot.lane.b32.xlu0 %v4390_v16, %s4832_s26  ;;  %v2898_v25 = vsel %vm4921_vm5, %v2893_v20, %v2897_v54  ;;  %v4470_v27 = vcombine.low %v3209_v17, %v3212_v24  ;;  %v3219_v29 = vsel %vm4880_vm2, %v3217_v21, %v3218_v22 }
 0x136   : > { %v2243_v30 = vpop.permute.xlu1 %2242  ;;  %v4391_v31 = vcombine.low %v2888_v23, %v2898_v25  ;;  %v2419_v33 = vpop.permute.xlu0 %2418  ;;  %v4471_v32 = vcombine.low %v3216_v28, %v3219_v29 }
 0x137   : > { %2282 = vst.msk [vmem:[#allocation2 + $0x48] sm:$0xff] %vm2272_vm11, %v2243_v30 }
 0x138   : > { %2459 = vst.msk [vmem:[#allocation2 + $0x40] sm:$0xff] %vm2450_vm12, %v2419_v33  ;;  %2977 = vrot.lane.b32.xlu1 %v4391_v31, %s4832_s26 }
 0x139   : > { %3296 = vrot.lane.b32.xlu0 %v4470_v27, %s4833_s27 }
 0x13a   : > { %v2421_v53 = vpop.permute.xlu1 %2420 }
 0x13b   : > { %2460 = vst.msk [vmem:[#allocation2 + $0x48] sm:$0xff] %vm2450_vm12, %v2421_v53  ;;  %v2964_v39 = vpop.permute.xlu0 %2963 }
 0x13c   : > { %3298 = vrot.lane.b32.xlu1 %v4471_v32, %s4833_s27  ;;  %3004 = vst.msk [vmem:[#allocation2 + $0x40] sm:$0xff] %vm2995_vm13, %v2964_v39 }
 0x13e   : > { %v2966_v0 = vpop.permute.xlu1 %2965 }
 0x13f   : > { %3005 = vst.msk [vmem:[#allocation2 + $0x48] sm:$0xff] %vm2995_vm13, %v2966_v0  ;;  %v3285_v34 = vpop.permute.xlu0 %3284 }
 0x140   : > { %3325 = vst.msk [vmem:[#allocation2 + $0x40] sm:$0xff] %vm3316_vm14, %v3285_v34 }
 0x144   : > { %v3287_v35 = vpop.permute.xlu0 %3286 }
 0x145   : > { %v877_v36 = vpop.permute.xlu1 %876  ;;  %3326 = vst.msk [vmem:[#allocation2 + $0x48] sm:$0xff] %vm3316_vm14, %v3287_v35 }
 0x146   : > { %915 = vst.msk [vmem:[#allocation2 + $0x50] sm:$0xff] %vm904_vm7, %v877_v36 }
 0x147   : > { %v3341_v37 = vld [vmem:[#allocation2 + $0x40] sm:$0xff] }
 0x148   : > { %4694 = vmatprep.mubr.msk.bf16.mxu1 %vm3369_vm0, %v3341_v37 }
 0x149   : > { %v879_v38 = vpop.permute.xlu1 %878  ;;  %v1201_v40 = vpop.permute.xlu0 %1200 }
 0x14a   : > { %916 = vst.msk [vmem:[#allocation2 + $0x58] sm:$0xff] %vm904_vm7, %v879_v38 }
 0x14b   : > { %1239 = vst.msk [vmem:[#allocation2 + $0x50] sm:$0xff] %vm1228_vm8, %v1201_v40 }
 0x14c   : > { %v3342_v41 = vld [vmem:[#allocation2 + $0x48] sm:$0xff] }
 0x14d   : > { %v1203_v42 = vpop.permute.xlu1 %1202  ;;  %v1379_v43 = vpop.permute.xlu0 %1378  ;;  %4695 = vmatmul.mubr.msk.bf16.vlgmr.msra.gmra.mrb[0].mxu1 %vm3369_vm0, %v3342_v41 }
 0x14e   : > { %1240 = vst.msk [vmem:[#allocation2 + $0x58] sm:$0xff] %vm1228_vm8, %v1203_v42 }
 0x14f   : > { %1417 = vst.msk [vmem:[#allocation2 + $0x50] sm:$0xff] %vm1406_vm9, %v1379_v43 }
 0x151   : > { %v1381_v44 = vpop.permute.xlu1 %1380 }
 0x152   : > { %1418 = vst.msk [vmem:[#allocation2 + $0x58] sm:$0xff] %vm1406_vm9, %v1381_v44 }
 0x153   : > { %v1924_v45 = vpop.permute.xlu0 %1923 }
 0x154   : > { %1962 = vst.msk [vmem:[#allocation2 + $0x50] sm:$0xff] %vm1951_vm10, %v1924_v45 }
 0x156   : > { %v1926_v46 = vpop.permute.xlu1 %1925 }
 0x157   : > { %1963 = vst.msk [vmem:[#allocation2 + $0x58] sm:$0xff] %vm1951_vm10, %v1926_v46  ;;  %v2245_v47 = vpop.permute.xlu0 %2244 }
 0x158   : > { %2283 = vst.msk [vmem:[#allocation2 + $0x50] sm:$0xff] %vm2272_vm11, %v2245_v47 }
 0x15a   : > { %v2247_v48 = vpop.permute.xlu1 %2246 }
 0x15b   : > { %2284 = vst.msk [vmem:[#allocation2 + $0x58] sm:$0xff] %vm2272_vm11, %v2247_v48  ;;  %v2423_v49 = vpop.permute.xlu0 %2422 }
 0x15c   : > { %2461 = vst.msk [vmem:[#allocation2 + $0x50] sm:$0xff] %vm2450_vm12, %v2423_v49 }
 0x15e   : > { %v2425_v50 = vpop.permute.xlu1 %2424 }
 0x15f   : > { %2462 = vst.msk [vmem:[#allocation2 + $0x58] sm:$0xff] %vm2450_vm12, %v2425_v50  ;;  %v2968_v51 = vpop.permute.xlu0 %2967 }
 0x160   : > { %3006 = vst.msk [vmem:[#allocation2 + $0x50] sm:$0xff] %vm2995_vm13, %v2968_v51 }
 0x162   : > { %v2970_v52 = vpop.permute.xlu1 %2969 }
 0x163   : > { %3007 = vst.msk [vmem:[#allocation2 + $0x58] sm:$0xff] %vm2995_vm13, %v2970_v52  ;;  %v3289_v55 = vpop.permute.xlu0 %3288 }
 0x164   : > { %3327 = vst.msk [vmem:[#allocation2 + $0x50] sm:$0xff] %vm3316_vm14, %v3289_v55 }
 0x168   : > { %v3291_v56 = vpop.permute.xlu0 %3290 }
 0x169   : > { %v881_v57 = vpop.permute.xlu1 %880  ;;  %3328 = vst.msk [vmem:[#allocation2 + $0x58] sm:$0xff] %vm3316_vm14, %v3291_v56 }
 0x16a   : > { %917 = vst.msk [vmem:[#allocation2 + $0x60] sm:$0xff] %vm904_vm7, %v881_v57 }
 0x16b   : > { %v3343_v59 = vld [vmem:[#allocation2 + $0x50] sm:$0xff] }
 0x16c   : > { %4698 = vmatprep.mubr.msk.bf16.mxu1 %vm3369_vm0, %v3343_v59 }
 0x16d   : > { %v883_v61 = vpop.permute.xlu1 %882  ;;  %v1205_v62 = vpop.permute.xlu0 %1204 }
 0x16e   : > { %918 = vst.msk [vmem:[#allocation2 + $0x68] sm:$0xff] %vm904_vm7, %v883_v61 }
 0x16f   : > { %1241 = vst.msk [vmem:[#allocation2 + $0x60] sm:$0xff] %vm1228_vm8, %v1205_v62 }
 0x170   : > { %v3344_v63 = vld [vmem:[#allocation2 + $0x58] sm:$0xff] }
 0x171   : > { %v1207_v1 = vpop.permute.xlu1 %1206  ;;  %v1383_v2 = vpop.permute.xlu0 %1382  ;;  %4699 = vmatmul.mubr.msk.bf16.gmra.mrb[4].mxu1 %vm3369_vm0, %v3344_v63 }
 0x172   : > { %1242 = vst.msk [vmem:[#allocation2 + $0x68] sm:$0xff] %vm1228_vm8, %v1207_v1 }
 0x173   : > { %1419 = vst.msk [vmem:[#allocation2 + $0x60] sm:$0xff] %vm1406_vm9, %v1383_v2 }
 0x175   : > { %v1385_v4 = vpop.permute.xlu1 %1384 }
 0x176   : > { %1420 = vst.msk [vmem:[#allocation2 + $0x68] sm:$0xff] %vm1406_vm9, %v1385_v4 }
 0x177   : > { %v1928_v5 = vpop.permute.xlu0 %1927 }
 0x178   : > { %1964 = vst.msk [vmem:[#allocation2 + $0x60] sm:$0xff] %vm1951_vm10, %v1928_v5 }
 0x17a   : > { %v1930_v6 = vpop.permute.xlu1 %1929 }
 0x17b   : > { %1965 = vst.msk [vmem:[#allocation2 + $0x68] sm:$0xff] %vm1951_vm10, %v1930_v6  ;;  %v2249_v7 = vpop.permute.xlu0 %2248 }
 0x17c   : > { %2285 = vst.msk [vmem:[#allocation2 + $0x60] sm:$0xff] %vm2272_vm11, %v2249_v7 }
 0x17e   : > { %v2251_v54 = vpop.permute.xlu1 %2250 }
 0x17f   : > { %2286 = vst.msk [vmem:[#allocation2 + $0x68] sm:$0xff] %vm2272_vm11, %v2251_v54  ;;  %v2427_v60 = vpop.permute.xlu0 %2426 }
 0x180   : > { %2463 = vst.msk [vmem:[#allocation2 + $0x60] sm:$0xff] %vm2450_vm12, %v2427_v60 }
 0x182   : > { %v2429_v3 = vpop.permute.xlu1 %2428 }
 0x183   : > { %2464 = vst.msk [vmem:[#allocation2 + $0x68] sm:$0xff] %vm2450_vm12, %v2429_v3  ;;  %v2972_v8 = vpop.permute.xlu0 %2971 }
 0x184   : > { %3008 = vst.msk [vmem:[#allocation2 + $0x60] sm:$0xff] %vm2995_vm13, %v2972_v8 }
 0x186   : > { %v2974_v9 = vpop.permute.xlu1 %2973 }
 0x187   : > { %3009 = vst.msk [vmem:[#allocation2 + $0x68] sm:$0xff] %vm2995_vm13, %v2974_v9  ;;  %v3293_v10 = vpop.permute.xlu0 %3292 }
 0x188   : > { %3329 = vst.msk [vmem:[#allocation2 + $0x60] sm:$0xff] %vm3316_vm14, %v3293_v10 }
 0x18c   : > { %v3295_v11 = vpop.permute.xlu0 %3294 }
 0x18d   : > { %v885_v26 = vpop.permute.xlu1 %884  ;;  %3330 = vst.msk [vmem:[#allocation2 + $0x68] sm:$0xff] %vm3316_vm14, %v3295_v11 }
 0x18e   : > { %919 = vst.msk [vmem:[#allocation2 + $0x70] sm:$0xff] %vm904_vm7, %v885_v26 }
 0x18f   : > { %v3345_v13 = vld [vmem:[#allocation2 + $0x60] sm:$0xff] }
 0x190   : > { %4702 = vmatprep.mubr.msk.bf16.mxu1 %vm3369_vm0, %v3345_v13 }
 0x191   : > { %v887_v58 = vpop.permute.xlu1 %886  ;;  %v1209_v14 = vpop.permute.xlu0 %1208 }
 0x192   : > { %920 = vst.msk [vmem:[#allocation2 + $0x78] sm:$0xff] %vm904_vm7, %v887_v58 }
 0x193   : > { %1243 = vst.msk [vmem:[#allocation2 + $0x70] sm:$0xff] %vm1228_vm8, %v1209_v14 }
 0x194   : > { %v4680_v15 = vpop.f32.mrb[0].mxu0  ;;  %v3346_v16 = vld [vmem:[#allocation2 + $0x68] sm:$0xff] }
 0x195   : > { %v3456_v12 = vpop.f32.mrb[1].mxu0  ;;  %v1211_v17 = vpop.permute.xlu1 %1210  ;;  %4703 = vmatmul.mubr.msk.bf16.gmra.mrb[8].mxu1 %vm3369_vm0, %v3346_v16 }
 0x196   : > { %v1387_v18 = vpop.permute.xlu0 %1386  ;;  %1244 = vst.msk [vmem:[#allocation2 + $0x78] sm:$0xff] %vm1228_vm8, %v1211_v17  ;;  %v4681_v19 = vpop.f32.mrb[2].mxu0 }
 0x197   : > { %1421 = vst.msk [vmem:[#allocation2 + $0x70] sm:$0xff] %vm1406_vm9, %v1387_v18  ;;  %v3584_v20 = vpack.c.bf16 %v4681_v19, %v4680_v15  ;;  %v3459_v21 = vpop.f32.mrb[3].mxu0 }
 0x198   : > { %v3583_v22 = vpack.c.bf16 %v3459_v21, %v3456_v12 }
 0x199   : > { %v1389_v23 = vpop.permute.xlu1 %1388  ;;  %4638 = vst [vmem:[%s5941_s10 + $0x8] sm:$0xff] %v3584_v20   ;;  %v3745_v24 = vunpack.c.l.bf16 %v3584_v20  ;;  %v3746_v29 = vunpack.c.h.bf16 %v3584_v20 }
 0x19a   : > { %1422 = vst.msk [vmem:[#allocation2 + $0x78] sm:$0xff] %vm1406_vm9, %v1389_v23  ;;  %4562 = vst [vmem:[%s5941_s10] sm:$0xff] %v3583_v22   ;;  %v3743_v25 = vunpack.c.l.bf16 %v3583_v22  ;;  %v3744_v27 = vunpack.c.h.bf16 %v3583_v22 }
 0x19b   : > { %v1932_v28 = vpop.permute.xlu0 %1931  ;;  %v3814_v53 = vmul.f32 %v3745_v24, %v3745_v24  ;;  %v3815_v35 = vmul.f32 %v3746_v29, %v3746_v29 }
 0x19c   : > { %1966 = vst.msk [vmem:[#allocation2 + $0x70] sm:$0xff] %vm1951_vm10, %v1932_v28  ;;  %v3775_v30 = vadd.f32 %v3744_v27, %v3743_v25  ;;  %v3812_v31 = vmul.f32 %v3743_v25, %v3743_v25  ;;  %v3813_v33 = vmul.f32 %v3744_v27, %v3744_v27 }
 0x19e   : > { %v1934_v32 = vpop.permute.xlu1 %1933  ;;  %v3776_v39 = vadd.f32 %v3775_v30, %v3745_v24  ;;  %v3844_v0 = vadd.f32 %v3813_v33, %v3812_v31 }
 0x19f   : > { %1967 = vst.msk [vmem:[#allocation2 + $0x78] sm:$0xff] %vm1951_vm10, %v1934_v32  ;;  %v2253_v34 = vpop.permute.xlu0 %2252 }
 0x1a0   : > { %2287 = vst.msk [vmem:[#allocation2 + $0x70] sm:$0xff] %vm2272_vm11, %v2253_v34  ;;  %v3845_v36 = vadd.f32 %v3844_v0, %v3814_v53  ;;  %v3777_v37 = vadd.f32 %v3776_v39, %v3746_v29 }
 0x1a2   : > { %v2255_v38 = vpop.permute.xlu1 %2254  ;;  %v3846_v40 = vadd.f32 %v3845_v36, %v3815_v35 }
 0x1a3   : > { %2288 = vst.msk [vmem:[#allocation2 + $0x78] sm:$0xff] %vm2272_vm11, %v2255_v38  ;;  %v2431_v41 = vpop.permute.xlu0 %2430 }
 0x1a4   : > { %2465 = vst.msk [vmem:[#allocation2 + $0x70] sm:$0xff] %vm2450_vm12, %v2431_v41 }
 0x1a6   : > { %v2433_v42 = vpop.permute.xlu1 %2432 }
 0x1a7   : > { %2466 = vst.msk [vmem:[#allocation2 + $0x78] sm:$0xff] %vm2450_vm12, %v2433_v42  ;;  %v2976_v43 = vpop.permute.xlu0 %2975 }
 0x1a8   : > { %3010 = vst.msk [vmem:[#allocation2 + $0x70] sm:$0xff] %vm2995_vm13, %v2976_v43 }
 0x1aa   : > { %v2978_v44 = vpop.permute.xlu1 %2977 }
 0x1ab   : > { %3011 = vst.msk [vmem:[#allocation2 + $0x78] sm:$0xff] %vm2995_vm13, %v2978_v44  ;;  %v3297_v45 = vpop.permute.xlu0 %3296 }
 0x1ac   : > { %3331 = vst.msk [vmem:[#allocation2 + $0x70] sm:$0xff] %vm3316_vm14, %v3297_v45 }
 0x1ae   : > { %v3299_v46 = vpop.permute.xlu1 %3298 }
 0x1af   : > { %3332 = vst.msk [vmem:[#allocation2 + $0x78] sm:$0xff] %vm3316_vm14, %v3299_v46 }
 0x1b3   : > { %v4684_v47 = vpop.f32.mrb[4].mxu0  ;;  %v3347_v49 = vld [vmem:[#allocation2 + $0x70] sm:$0xff] }
 0x1b4   : > { %v3472_v48 = vpop.f32.mrb[5].mxu0  ;;  %4706 = vmatprep.mubr.msk.bf16.mxu1 %vm3369_vm0, %v3347_v49 }
 0x1b5   : > { %v4685_v50 = vpop.f32.mrb[6].mxu0 }
 0x1b6   : > { %v3586_v51 = vpack.c.bf16 %v4685_v50, %v4684_v47  ;;  %v3475_v52 = vpop.f32.mrb[7].mxu0  ;;  %v3348_v56 = vld [vmem:[#allocation2 + $0x78] sm:$0xff] }
 0x1b7   : > { %v3585_v55 = vpack.c.bf16 %v3475_v52, %v3472_v48  ;;  %4707 = vmatmul.mubr.msk.bf16.gmra.mrb[12].mxu1 %vm3369_vm0, %v3348_v56 }
 0x1b8   : > { %4640 = vst [vmem:[%s5941_s10 + $0x18] sm:$0xff] %v3586_v51   ;;  %v3749_v61 = vunpack.c.l.bf16 %v3586_v51  ;;  %v3750_v1 = vunpack.c.h.bf16 %v3586_v51 }
 0x1b9   : > { %4639 = vst [vmem:[%s5941_s10 + $0x10] sm:$0xff] %v3585_v55   ;;  %v3747_v57 = vunpack.c.l.bf16 %v3585_v55  ;;  %v3748_v59 = vunpack.c.h.bf16 %v3585_v55 }
 0x1ba   : > { %v3818_v6 = vmul.f32 %v3749_v61, %v3749_v61  ;;  %v3819_v60 = vmul.f32 %v3750_v1, %v3750_v1 }
 0x1bb   : > { %v3778_v62 = vadd.f32 %v3777_v37, %v3747_v57  ;;  %v3816_v63 = vmul.f32 %v3747_v57, %v3747_v57  ;;  %v3817_v4 = vmul.f32 %v3748_v59, %v3748_v59 }
 0x1bd   : > { %v3779_v2 = vadd.f32 %v3778_v62, %v3748_v59  ;;  %v3847_v5 = vadd.f32 %v3846_v40, %v3816_v63 }
 0x1bf   : > { %v3780_v7 = vadd.f32 %v3779_v2, %v3749_v61  ;;  %v3848_v54 = vadd.f32 %v3847_v5, %v3817_v4 }
 0x1c1   : > { %v3849_v3 = vadd.f32 %v3848_v54, %v3818_v6  ;;  %v3781_v8 = vadd.f32 %v3780_v7, %v3750_v1 }
 0x1c3   : > { %v3850_v9 = vadd.f32 %v3849_v3, %v3819_v60 }
 0x1d7   : > { %v4688_v10 = vpop.f32.mrb[8].mxu0 }
 0x1d8   : > { %v3488_v11 = vpop.f32.mrb[9].mxu0 }
 0x1d9   : > { %v4689_v26 = vpop.f32.mrb[10].mxu0 }
 0x1da   : > { %v3588_v13 = vpack.c.bf16 %v4689_v26, %v4688_v10  ;;  %v3491_v58 = vpop.f32.mrb[11].mxu0 }
 0x1db   : > { %v3587_v14 = vpack.c.bf16 %v3491_v58, %v3488_v11 }
 0x1dc   : > { %4642 = vst [vmem:[%s5941_s10 + $0x28] sm:$0xff] %v3588_v13   ;;  %v3753_v12 = vunpack.c.l.bf16 %v3588_v13  ;;  %v3754_v19 = vunpack.c.h.bf16 %v3588_v13 }
 0x1dd   : > { %4641 = vst [vmem:[%s5941_s10 + $0x20] sm:$0xff] %v3587_v14   ;;  %v3751_v15 = vunpack.c.l.bf16 %v3587_v14  ;;  %v3752_v16 = vunpack.c.h.bf16 %v3587_v14 }
 0x1de   : > { %v3822_v23 = vmul.f32 %v3753_v12, %v3753_v12  ;;  %v3823_v27 = vmul.f32 %v3754_v19, %v3754_v19 }
 0x1df   : > { %v3782_v17 = vadd.f32 %v3781_v8, %v3751_v15  ;;  %v3820_v18 = vmul.f32 %v3751_v15, %v3751_v15  ;;  %v3821_v21 = vmul.f32 %v3752_v16, %v3752_v16 }
 0x1e1   : > { %v3783_v20 = vadd.f32 %v3782_v17, %v3752_v16  ;;  %v3851_v22 = vadd.f32 %v3850_v9, %v3820_v18 }
 0x1e3   : > { %v3784_v24 = vadd.f32 %v3783_v20, %v3753_v12  ;;  %v3852_v25 = vadd.f32 %v3851_v22, %v3821_v21 }
 0x1e5   : > { %v3853_v28 = vadd.f32 %v3852_v25, %v3822_v23  ;;  %v3785_v29 = vadd.f32 %v3784_v24, %v3754_v19 }
 0x1e7   : > { %v3854_v30 = vadd.f32 %v3853_v28, %v3823_v27 }
 0x1fb   : > { %v4692_v31 = vpop.f32.mrb[12].mxu0 }
 0x1fc   : > { %v3504_v33 = vpop.f32.mrb[13].mxu0 }
 0x1fd   : > { %v4693_v32 = vpop.f32.mrb[14].mxu0 }
 0x1fe   : > { %v3590_v53 = vpack.c.bf16 %v4693_v32, %v4692_v31  ;;  %v3507_v39 = vpop.f32.mrb[15].mxu0 }
 0x1ff   : > { %v3589_v0 = vpack.c.bf16 %v3507_v39, %v3504_v33 }
 0x200   : > { %4644 = vst [vmem:[%s5941_s10 + $0x38] sm:$0xff] %v3590_v53   ;;  %v3757_v36 = vunpack.c.l.bf16 %v3590_v53  ;;  %v3758_v40 = vunpack.c.h.bf16 %v3590_v53 }
 0x201   : > { %4643 = vst [vmem:[%s5941_s10 + $0x30] sm:$0xff] %v3589_v0   ;;  %v3755_v34 = vunpack.c.l.bf16 %v3589_v0  ;;  %v3756_v35 = vunpack.c.h.bf16 %v3589_v0 }
 0x202   : > { %v3826_v44 = vmul.f32 %v3757_v36, %v3757_v36  ;;  %v3827_v47 = vmul.f32 %v3758_v40, %v3758_v40 }
 0x203   : > { %v3786_v37 = vadd.f32 %v3785_v29, %v3755_v34  ;;  %v3824_v38 = vmul.f32 %v3755_v34, %v3755_v34  ;;  %v3825_v42 = vmul.f32 %v3756_v35, %v3756_v35 }
 0x205   : > { %v3787_v41 = vadd.f32 %v3786_v37, %v3756_v35  ;;  %v3855_v43 = vadd.f32 %v3854_v30, %v3824_v38 }
 0x207   : > { %v3788_v45 = vadd.f32 %v3787_v41, %v3757_v36  ;;  %v3856_v46 = vadd.f32 %v3855_v43, %v3825_v42 }
 0x209   : > { %v3857_v48 = vadd.f32 %v3856_v46, %v3826_v44  ;;  %v3789_v49 = vadd.f32 %v3788_v45, %v3758_v40 }
 0x20b   : > { %v3858_v50 = vadd.f32 %v3857_v48, %v3827_v47 }
 0x220   : > { %v4696_v51 = vpop.f32.mrb[0].mxu1 }
 0x221   : > { %v3520_v52 = vpop.f32.mrb[1].mxu1 }
 0x222   : > { %v4697_v55 = vpop.f32.mrb[2].mxu1 }
 0x223   : > { %v3592_v56 = vpack.c.bf16 %v4697_v55, %v4696_v51  ;;  %v3523_v57 = vpop.f32.mrb[3].mxu1 }
 0x224   : > { %v3591_v59 = vpack.c.bf16 %v3523_v57, %v3520_v52 }
 0x225   : > { %4646 = vst [vmem:[%s5941_s10 + $0x48] sm:$0xff] %v3592_v56   ;;  %v3761_v63 = vunpack.c.l.bf16 %v3592_v56  ;;  %v3762_v4 = vunpack.c.h.bf16 %v3592_v56 }
 0x226   : > { %4645 = vst [vmem:[%s5941_s10 + $0x40] sm:$0xff] %v3591_v59   ;;  %v3759_v61 = vunpack.c.l.bf16 %v3591_v59  ;;  %v3760_v62 = vunpack.c.h.bf16 %v3591_v59 }
 0x227   : > { %v3830_v54 = vmul.f32 %v3761_v63, %v3761_v63  ;;  %v3831_v8 = vmul.f32 %v3762_v4, %v3762_v4 }
 0x228   : > { %v3790_v1 = vadd.f32 %v3789_v49, %v3759_v61  ;;  %v3828_v2 = vmul.f32 %v3759_v61, %v3759_v61  ;;  %v3829_v6 = vmul.f32 %v3760_v62, %v3760_v62 }
 0x22a   : > { %v3791_v5 = vadd.f32 %v3790_v1, %v3760_v62  ;;  %v3859_v7 = vadd.f32 %v3858_v50, %v3828_v2 }
 0x22c   : > { %v3792_v60 = vadd.f32 %v3791_v5, %v3761_v63  ;;  %v3860_v3 = vadd.f32 %v3859_v7, %v3829_v6 }
 0x22e   : > { %v3861_v9 = vadd.f32 %v3860_v3, %v3830_v54  ;;  %v3793_v10 = vadd.f32 %v3792_v60, %v3762_v4 }
 0x230   : > { %v3862_v11 = vadd.f32 %v3861_v9, %v3831_v8 }
 0x244   : > { %v4700_v26 = vpop.f32.mrb[4].mxu1 }
 0x245   : > { %v3536_v13 = vpop.f32.mrb[5].mxu1 }
 0x246   : > { %v4701_v58 = vpop.f32.mrb[6].mxu1 }
 0x247   : > { %v3594_v14 = vpack.c.bf16 %v4701_v58, %v4700_v26  ;;  %v3539_v15 = vpop.f32.mrb[7].mxu1 }
 0x248   : > { %v3593_v16 = vpack.c.bf16 %v3539_v15, %v3536_v13 }
 0x249   : > { %4648 = vst [vmem:[%s5941_s10 + $0x58] sm:$0xff] %v3594_v14   ;;  %v3765_v18 = vunpack.c.l.bf16 %v3594_v14  ;;  %v3766_v21 = vunpack.c.h.bf16 %v3594_v14 }
 0x24a   : > { %4647 = vst [vmem:[%s5941_s10 + $0x50] sm:$0xff] %v3593_v16   ;;  %v3763_v12 = vunpack.c.l.bf16 %v3593_v16  ;;  %v3764_v17 = vunpack.c.h.bf16 %v3593_v16 }
 0x24b   : > { %v3834_v25 = vmul.f32 %v3765_v18, %v3765_v18  ;;  %v3835_v29 = vmul.f32 %v3766_v21, %v3766_v21 }
 0x24c   : > { %v3794_v19 = vadd.f32 %v3793_v10, %v3763_v12  ;;  %v3832_v20 = vmul.f32 %v3763_v12, %v3763_v12  ;;  %v3833_v23 = vmul.f32 %v3764_v17, %v3764_v17 }
 0x24e   : > { %v3795_v22 = vadd.f32 %v3794_v19, %v3764_v17  ;;  %v3863_v24 = vadd.f32 %v3862_v11, %v3832_v20 }
 0x250   : > { %v3796_v27 = vadd.f32 %v3795_v22, %v3765_v18  ;;  %v3864_v28 = vadd.f32 %v3863_v24, %v3833_v23 }
 0x252   : > { %v3865_v30 = vadd.f32 %v3864_v28, %v3834_v25  ;;  %v3797_v31 = vadd.f32 %v3796_v27, %v3766_v21 }
 0x254   : > { %v3866_v33 = vadd.f32 %v3865_v30, %v3835_v29 }
 0x268   : > { %v4704_v32 = vpop.f32.mrb[8].mxu1 }
 0x269   : > { %v3552_v53 = vpop.f32.mrb[9].mxu1 }
 0x26a   : > { %v4705_v39 = vpop.f32.mrb[10].mxu1 }
 0x26b   : > { %v3596_v0 = vpack.c.bf16 %v4705_v39, %v4704_v32  ;;  %v3555_v34 = vpop.f32.mrb[11].mxu1 }
 0x26c   : > { %v3595_v35 = vpack.c.bf16 %v3555_v34, %v3552_v53 }
 0x26d   : > { %4650 = vst [vmem:[%s5941_s10 + $0x68] sm:$0xff] %v3596_v0   ;;  %v3769_v38 = vunpack.c.l.bf16 %v3596_v0  ;;  %v3770_v42 = vunpack.c.h.bf16 %v3596_v0 }
 0x26e   : > { %4649 = vst [vmem:[%s5941_s10 + $0x60] sm:$0xff] %v3595_v35   ;;  %v3767_v36 = vunpack.c.l.bf16 %v3595_v35  ;;  %v3768_v37 = vunpack.c.h.bf16 %v3595_v35 }
 0x26f   : > { %v3838_v46 = vmul.f32 %v3769_v38, %v3769_v38  ;;  %v3839_v49 = vmul.f32 %v3770_v42, %v3770_v42 }
 0x270   : > { %v3798_v40 = vadd.f32 %v3797_v31, %v3767_v36  ;;  %v3836_v41 = vmul.f32 %v3767_v36, %v3767_v36  ;;  %v3837_v44 = vmul.f32 %v3768_v37, %v3768_v37 }
 0x272   : > { %v3799_v43 = vadd.f32 %v3798_v40, %v3768_v37  ;;  %v3867_v45 = vadd.f32 %v3866_v33, %v3836_v41 }
 0x274   : > { %v3800_v47 = vadd.f32 %v3799_v43, %v3769_v38  ;;  %v3868_v48 = vadd.f32 %v3867_v45, %v3837_v44 }
 0x276   : > { %v3869_v50 = vadd.f32 %v3868_v48, %v3838_v46  ;;  %v3801_v51 = vadd.f32 %v3800_v47, %v3770_v42 }
 0x278   : > { %v3870_v52 = vadd.f32 %v3869_v50, %v3839_v49 }
 0x28a   : > { %v4708_v55 = vpop.f32.mrb[12].mxu1 }
 0x28b   : > { %v3568_v56 = vpop.f32.mrb[13].mxu1 }
 0x28c   : > { %v4709_v57 = vpop.f32.mrb[14].mxu1 }
 0x28d   : > { %v3598_v59 = vpack.c.bf16 %v4709_v57, %v4708_v55  ;;  %v3571_v61 = vpop.f32.mrb[15].mxu1 }
 0x28e   : > { %v3597_v62 = vpack.c.bf16 %v3571_v61, %v3568_v56 }
 0x28f   : > { %4652 = vst [vmem:[%s5941_s10 + $0x78] sm:$0xff] %v3598_v59   ;;  %v3773_v2 = vunpack.c.l.bf16 %v3598_v59  ;;  %v3774_v6 = vunpack.c.h.bf16 %v3598_v59 }
 0x290   : > { %4651 = vst [vmem:[%s5941_s10 + $0x70] sm:$0xff] %v3597_v62   ;;  %v3771_v63 = vunpack.c.l.bf16 %v3597_v62  ;;  %v3772_v1 = vunpack.c.h.bf16 %v3597_v62 }
 0x291   : > { %v3842_v3 = vmul.f32 %v3773_v2, %v3773_v2  ;;  %v3843_v10 = vmul.f32 %v3774_v6, %v3774_v6 }
 0x292   : > { %v3802_v4 = vadd.f32 %v3801_v51, %v3771_v63  ;;  %v3840_v5 = vmul.f32 %v3771_v63, %v3771_v63  ;;  %v3841_v54 = vmul.f32 %v3772_v1, %v3772_v1 }
 0x294   : > { %v3803_v7 = vadd.f32 %v3802_v4, %v3772_v1  ;;  %v3871_v60 = vadd.f32 %v3870_v52, %v3840_v5 }
 0x296   : > { %v3804_v8 = vadd.f32 %v3803_v7, %v3773_v2  ;;  %v3872_v9 = vadd.f32 %v3871_v60, %v3841_v54 }
 0x298   : > { %v3805_v11 = vadd.f32 %v3804_v8, %v3774_v6  ;;  %v3873_v26 = vadd.f32 %v3872_v9, %v3842_v3 }
 0x29a   : > { %v3806_v13 = vrot.slane %v3805_v11, 4  ;;  %v3874_v58 = vadd.f32 %v3873_v26, %v3843_v10 }
 0x29c   : > { %v3807_v14 = vadd.f32 %v3806_v13, %v3805_v11  ;;  %v3875_v15 = vrot.slane %v3874_v58, 4 }
 0x29e   : > { %v3808_v16 = vrot.slane %v3807_v14, 2  ;;  %v3876_v12 = vadd.f32 %v3875_v15, %v3874_v58 }
 0x2a0   : > { %v3809_v17 = vadd.f32 %v3808_v16, %v3807_v14  ;;  %v3877_v18 = vrot.slane %v3876_v12, 2 }
 0x2a2   : > { %v3810_v19 = vrot.slane %v3809_v17, 1  ;;  %v3878_v20 = vadd.f32 %v3877_v18, %v3876_v12 }
 0x2a4   : > { %v3879_v21 = vrot.slane %v3878_v20, 1  ;;  %v3811_v22 = vadd.f32 %v3810_v19, %v3809_v17 }
 0x2a6   : > { %v3880_v23 = vadd.f32 %v3879_v21, %v3878_v20 }
 0x2a8   : > { %v3882_v24 = vsel %vm3881_vm1, %v3811_v22, %v3880_v23 }
 0x2a9   : > { %3883 = vst [vmem:[%s226_s18] sm:$0x3] %v3882_v24 }
 0x2aa PF: > { %s14_s14 = sadd.s32 1, %s4824_s14   ;;  %s5993_s12 = smov %s4820_s13 }
 0x2ab   : > { %p11_p5 = scmp.ge.s32.totalorder %s14_s14, 4   ;;  %s5994_s13 = smov %s5996_s15 }
 0x2ad   :  { %13 = sbr.rel (!%p11_p5) target bundleno = 2 (0x2), region = 72 }

</bundles_post_ra>
